<compile_context>
chip_gen: v6e
topology: v6e:2x2x1
jax: 0.10.0
libtpu: 0.0.40
codegen_flags: <defaults>
</compile_context>

<pallas_src>
import numpy as np
import jax
import jax.numpy as jnp
from jax.experimental import pallas as pl
from jax.experimental.pallas import tpu as pltpu

LEAKY_SLOPE = 0.01   # InPlaceABN default activation: leaky_relu(0.01)
BN_EPS = 1e-5


# ---------------------------------------------------------------------------
# Parameter packing (init-time, numpy)
# ---------------------------------------------------------------------------
def _pack_wband(w, Hin, Win, stride, pad):
    """Pack a KxK conv for the lane-dense (H, W*C) layout with a height halo.

    Returns
      Wband: (KH, Win*Cin, Wo*Cout)  banded width-tap / channel-mixing matrices
      S:     (KH, Ho, Hin+2*pad)     0/1 strided row selection (stride>1 only, else None)
    so that, with `buf` the zero-halo (Hin+2*pad, Win*Cin) activation,
      stride==1:  out2d = sum_kh buf[kh:kh+Ho] @ Wband[kh]
      stride>1 :  out2d = sum_kh (S[kh] @ buf) @ Wband[kh]
    equals the zero-padded convolution.
    """
    w = np.asarray(w, np.float32)
    KH, KW, Cin, Cout = w.shape
    Ho = (Hin + 2 * pad - KH) // stride + 1
    Wo = (Win + 2 * pad - KW) // stride + 1
    Wband = np.zeros((KH, Win * Cin, Wo * Cout), np.float32)
    for kh in range(KH):
        for jo in range(Wo):
            for kw in range(KW):
                jw = stride * jo + kw - pad
                if 0 <= jw < Win:
                    Wband[kh, jw * Cin:(jw + 1) * Cin,
                          jo * Cout:(jo + 1) * Cout] = w[kh, kw]
    S = None
    if stride != 1:
        S = np.zeros((KH, Ho, Hin + 2 * pad), np.float32)
        for kh in range(KH):
            for i in range(Ho):
                S[kh, i, stride * i + kh] = 1.0
    return Wband, S, Ho, Wo


def _upsample_matrix(n_in, n_out):
    """1-D bilinear interpolation matrix, align_corners=True (as in FeatureNet)."""
    m = np.zeros((n_out, n_in), np.float32)
    if n_in == 1:
        m[:, 0] = 1.0
    else:
        for i in range(n_out):
            src = i * (n_in - 1) / (n_out - 1)
            i0 = min(int(np.floor(src)), n_in - 2)
            f = src - i0
            m[i, i0] += 1.0 - f
            m[i, i0 + 1] += f
    return m


def _pack_upsample(Hi, Wi, Ho, Wo, C):
    """Bilinear x2 (align_corners=True) as two MXU matmuls on (H, W*C) tiles."""
    Uh = _upsample_matrix(Hi, Ho)                        # (Ho, Hi)
    Uw = _upsample_matrix(Wi, Wo)                        # (Wo, Wi)
    UwC = np.zeros((Wi * C, Wo * C), np.float32)         # Uw^T (kron) I_C
    eye = np.eye(C, dtype=np.float32)
    for wo in range(Wo):
        for wi in range(Wi):
            if Uw[wo, wi] != 0.0:
                UwC[wi * C:(wi + 1) * C, wo * C:(wo + 1) * C] = Uw[wo, wi] * eye
    # 0 / 0.5 / 1 entries -> exact in bf16
    return jnp.asarray(Uh, jnp.bfloat16), jnp.asarray(UwC, jnp.bfloat16)


# (name, stride, pad, act, input-pyramid-level)
_LAYER_SPECS = (
    ("c0a", 1, 1, True, 0), ("c0b", 1, 1, True, 0),
    ("c1a", 2, 2, True, 0), ("c1b", 1, 1, True, 1), ("c1c", 1, 1, True, 1),
    ("c2a", 2, 2, True, 1), ("c2b", 1, 1, True, 2), ("c2c", 1, 1, True, 2),
    ("top", 1, 0, False, 2), ("lat1", 1, 0, False, 1), ("lat0", 1, 0, False, 0),
    ("sm1", 1, 1, False, 1), ("sm0", 1, 1, False, 0),
)


def build_featurenet_plan(P, H, W):
    """Pack all FeatureNet parameters into a few coalesced bf16 constant arrays."""
    H1, W1 = (H - 1) // 2 + 1, (W - 1) // 2 + 1          # 5x5 stride-2 pad-2
    H2, W2 = (H1 - 1) // 2 + 1, (W1 - 1) // 2 + 1
    sizes = {0: (H, W), 1: (H1, W1), 2: (H2, W2)}

    group_keys, group_members = [], []                   # coalesce same-shape constants

    def _add(kind, arr):
        key = (kind, arr.shape)
        if key in group_keys:
            gid = group_keys.index(key)
        else:
            gid = len(group_keys)
            group_keys.append(key)
            group_members.append([])
        group_members[gid].append(arr)
        return gid, len(group_members[gid]) - 1

    layers, affines = {}, []
    buffer_names, buffer_shapes = [], []
    for li, (name, stride, pad, act, lvl) in enumerate(_LAYER_SPECS):
        w, scale, bias = (np.asarray(a, np.float32) for a in P[name])
        KH, KW, Cin, Cout = w.shape
        Hin, Win = sizes[lvl]
        Wband, S, Ho, Wo = _pack_wband(w, Hin, Win, stride, pad)
        wb = _add("wb", Wband)
        s = _add("sel", S) if S is not None else None
        m = dict(KH=KH, stride=stride, pad=pad, act=act, Ho=Ho,
                 width=Wo * Cout, wb=wb, s=s, sb_row=li, needs_buf=(KH > 1))
        layers[name] = m
        if m["needs_buf"]:
            buffer_names.append(name)
            buffer_shapes.append((int(Hin + 2 * pad), int(Win * Cin)))
        affines.append((np.tile(scale.reshape(1, Cout), (1, Wo)).reshape(-1),
                        np.tile(bias.reshape(1, Cout), (1, Wo)).reshape(-1)))

    # all per-layer folded scale/bias in one lane-padded f32 array (rows 2i / 2i+1)
    maxw = max(a[0].size for a in affines)
    maxw = ((maxw + 127) // 128) * 128
    sb = np.zeros((2 * len(_LAYER_SPECS), maxw), np.float32)
    for li, (sc, bi) in enumerate(affines):
        sb[2 * li, :sc.size] = sc
        sb[2 * li + 1, :bi.size] = bi

    groups = [jnp.asarray(np.stack(ms), jnp.bfloat16) for ms in group_members]
    uh21, uwc21 = _pack_upsample(H2, W2, H1, W1, 32)
    uh10, uwc10 = _pack_upsample(H1, W1, H, W, 32)
    consts = groups + [jnp.asarray(sb), uh21, uwc21, uh10, uwc10]

    out_info = ((H, W, layers["sm0"]["width"] // W),
                (H1, W1, layers["sm1"]["width"] // W1),
                (H2, W2, layers["top"]["width"] // W2))
    plan = dict(layers=layers, n_groups=len(groups),
                buffer_names=buffer_names, buffer_shapes=buffer_shapes,
                out_info=out_info)
    return consts, plan


# ---------------------------------------------------------------------------
# The fused Pallas kernel (one grid step == one batch element)
# ---------------------------------------------------------------------------
def _make_featurenet_kernel(plan):
    L = plan["layers"]
    n_groups = plan["n_groups"]
    buf_names = plan["buffer_names"]

    def kernel(*refs):
        i = 0
        x_ref = refs[i]; i += 1
        groups = refs[i:i + n_groups]; i += n_groups
        sb_ref = refs[i]; i += 1
        uh21, uwc21, uh10, uwc10 = refs[i:i + 4]; i += 4
        o0_ref, o1_ref, o2_ref = refs[i:i + 3]; i += 3
        bufs = {name: refs[i + k] for k, name in enumerate(buf_names)}

        def affine(acc, m):
            r, w = m["sb_row"], m["width"]
            acc = acc * sb_ref[2 * r:2 * r + 1, 0:w] + sb_ref[2 * r + 1:2 * r + 2, 0:w]
            if m["act"]:
                acc = jnp.where(acc >= 0.0, acc, LEAKY_SLOPE * acc)
            return acc

        def wband(m, kh):
            gid, gi = m["wb"]
            return groups[gid][gi, kh]

        def put(name, val):
            """Write an activation into its zero-halo VMEM buffer (f32)."""
            m = L[name]
            p, b = m["pad"], bufs[name]
            rows = val.shape[0]
            z = jnp.zeros((p, b.shape[1]), b.dtype)
            b[0:p, :] = z
            b[p + rows:p + rows + p, :] = z
            b[p:p + rows, :] = val.astype(b.dtype)

        def conv(name):
            """KxK conv on this layer's halo buffer.  Height taps are static sublane
            slices (stride 1) or one tiny 0/1 selection matmul per tap (stride 2)."""
            m = L[name]
            b, Ho = bufs[name], m["Ho"]
            full = b[...].astype(jnp.bfloat16) if m["stride"] != 1 else None
            acc = None
            for kh in range(m["KH"]):
                if m["stride"] == 1:
                    rows = b[kh:kh + Ho, :].astype(jnp.bfloat16)
                else:
                    gid, gi = m["s"]
                    rows = jnp.dot(groups[gid][gi, kh], full,
                                   preferred_element_type=jnp.float32
                                   ).astype(jnp.bfloat16)
                term = jnp.dot(rows, wband(m, kh),
                               preferred_element_type=jnp.float32)
                acc = term if acc is None else acc + term
            return affine(acc, m)

        def conv1x1(name, rows_bf16):
            m = L[name]
            return affine(jnp.dot(rows_bf16, wband(m, 0),
                                  preferred_element_type=jnp.float32), m)

        def upsample_add(x_f32, y_f32, uh_ref, uwc_ref):
            up = jnp.dot(x_f32.astype(jnp.bfloat16), uwc_ref[...],
                         preferred_element_type=jnp.float32)
            up = jnp.dot(uh_ref[...], up.astype(jnp.bfloat16),
                         preferred_element_type=jnp.float32)
            return up + y_f32

        # ---- forward pass: activations never leave VMEM ----
        put("c0a", x_ref[0])                              # (H, W*32) lane-dense
        put("c0b", conv("c0a"))
        conv0 = conv("c0b")
        put("c1a", conv0)
        put("c1b", conv("c1a"))
        put("c1c", conv("c1b"))
        conv1 = conv("c1c")
        put("c2a", conv1)
        put("c2b", conv("c2a"))
        put("c2c", conv("c2b"))
        conv2 = conv("c2c")

        feat2 = conv1x1("top", conv2.astype(jnp.bfloat16))
        feat1 = upsample_add(feat2, conv1x1("lat1", conv1.astype(jnp.bfloat16)),
                             uh21, uwc21)
        feat0 = upsample_add(feat1, conv1x1("lat0", conv0.astype(jnp.bfloat16)),
                             uh10, uwc10)
        put("sm1", feat1)
        put("sm0", feat0)
        o2_ref[0] = feat2.astype(o2_ref.dtype)
        o1_ref[0] = conv("sm1").astype(o1_ref.dtype)      # smooth1
        o0_ref[0] = conv("sm0").astype(o0_ref.dtype)      # smooth0

    return kernel


def featurenet_pallas(x_nchw, consts, plan):
    N, Cin, H, W = x_nchw.shape
    x2d = jnp.transpose(x_nchw, (0, 2, 3, 1)).reshape(N, H, W * Cin)
    x2d = x2d.astype(jnp.bfloat16)                        # activations travel as bf16

    def const_spec(a):
        shape = tuple(int(s) for s in a.shape)
        nd = len(shape)
        return pl.BlockSpec(shape, lambda n, _nd=nd: (0,) * _nd)

    in_specs = [pl.BlockSpec((1, H, W * Cin), lambda n: (n, 0, 0))]
    in_specs += [const_spec(a) for a in consts]

    out_info = plan["out_info"]
    out_shape = tuple(jax.ShapeDtypeStruct((N, h, w * c), jnp.float32)
                      for (h, w, c) in out_info)
    out_specs = tuple(pl.BlockSpec((1, h, w * c), lambda n: (n, 0, 0))
                      for (h, w, c) in out_info)
    scratch_shapes = [pltpu.VMEM(s, jnp.float32) for s in plan["buffer_shapes"]]

    o0, o1, o2 = pl.pallas_call(
        _make_featurenet_kernel(plan),
        out_shape=out_shape,
        grid=(N,),
        in_specs=in_specs,
        out_specs=out_specs,
        scratch_shapes=scratch_shapes,
        compiler_params=pltpu.CompilerParams(
            dimension_semantics=("parallel",),
            vmem_limit_bytes=32 * 1024 * 1024,
        ),
    )(x2d, *consts)

    def to_nchw(o, h, w, c):
        return jnp.transpose(o.reshape(N, h, w, c), (0, 3, 1, 2))

    (H0, W0, C0), (H1, W1, C1), (H2, W2, C2) = out_info
    return {"level_0": to_nchw(o0, H0, W0, C0),
            "level_1": to_nchw(o1, H1, W1, C1),
            "level_2": to_nchw(o2, H2, W2, C2)}


# ---------------------------------------------------------------------------
# Pure-JAX f32 reference (correctness check only)
# ---------------------------------------------------------------------------
def _ref_conv(x, w, scale, bias, *, stride=1, pad=0, act=False):
    out = jax.lax.conv_general_dilated(
        x, w, (stride, stride), [(pad, pad), (pad, pad)],
        dimension_numbers=("NHWC", "HWIO", "NHWC"),
        precision=jax.lax.Precision.HIGHEST)
    out = out * scale.reshape(1, 1, 1, -1) + bias.reshape(1, 1, 1, -1)
    return jnp.where(out >= 0.0, out, LEAKY_SLOPE * out) if act else out


def _ref_upadd(x, y):
    Uh = jnp.asarray(_upsample_matrix(x.shape[1], y.shape[1]))
    Uw = jnp.asarray(_upsample_matrix(x.shape[2], y.shape[2]))
    up = jnp.einsum("ih,nhwc->niwc", Uh, x, precision=jax.lax.Precision.HIGHEST)
    up = jnp.einsum("jw,niwc->nijc", Uw, up, precision=jax.lax.Precision.HIGHEST)
    return up + y


def _ref_forward(x_nchw, P):
    x = jnp.transpose(x_nchw, (0, 2, 3, 1))
    c = _ref_conv(x, *P["c0a"], stride=1, pad=1, act=True)
    conv0 = _ref_conv(c, *P["c0b"], stride=1, pad=1, act=True)
    c = _ref_conv(conv0, *P["c1a"], stride=2, pad=2, act=True)
    c = _ref_conv(c, *P["c1b"], stride=1, pad=1, act=True)
    conv1 = _ref_conv(c, *P["c1c"], stride=1, pad=1, act=True)
    c = _ref_conv(conv1, *P["c2a"], stride=2, pad=2, act=True)
    c = _ref_conv(c, *P["c2b"], stride=1, pad=1, act=True)
    conv2 = _ref_conv(c, *P["c2c"], stride=1, pad=1, act=True)
    feat2 = _ref_conv(conv2, *P["top"], stride=1, pad=0, act=False)
    lat1 = _ref_conv(conv1, *P["lat1"], stride=1, pad=0, act=False)
    lat0 = _ref_conv(conv0, *P["lat0"], stride=1, pad=0, act=False)
    feat1 = _ref_upadd(feat2, lat1)
    feat0 = _ref_upadd(feat1, lat0)
    feat1 = _ref_conv(feat1, *P["sm1"], stride=1, pad=1, act=False)
    feat0 = _ref_conv(feat0, *P["sm0"], stride=1, pad=1, act=False)
    nchw = lambda a: jnp.transpose(a, (0, 3, 1, 2))
    return {"level_0": nchw(feat0), "level_1": nchw(feat1), "level_2": nchw(feat2)}


# ---------------------------------------------------------------------------
# Deterministic synthetic parameters
# ---------------------------------------------------------------------------
def init_convbn(key, cin, cout, k):
    kw_, kg, kb, km, kv = jax.random.split(key, 5)
    w = jax.random.normal(kw_, (k, k, cin, cout), jnp.float32) / np.sqrt(k * k * cin)
    gamma = 1.0 + 0.1 * jax.random.normal(kg, (cout,), jnp.float32)
    beta = 0.1 * jax.random.normal(kb, (cout,), jnp.float32)
    mean = 0.1 * jax.random.normal(km, (cout,), jnp.float32)
    var = jax.random.uniform(kv, (cout,), jnp.float32, 0.5, 1.5)
    scale = gamma / jnp.sqrt(var + BN_EPS)                # folded BN (eval mode)
    bias = beta - mean * scale
    return w, scale.reshape(1, cout), bias.reshape(1, cout)


def init_conv(key, cin, cout, k):
    kw_, kb = jax.random.split(key)
    w = jax.random.normal(kw_, (k, k, cin, cout), jnp.float32) / np.sqrt(k * k * cin)
    b = 0.1 * jax.random.normal(kb, (cout,), jnp.float32)
    return w, jnp.ones((1, cout), jnp.float32), b.reshape(1, cout)


if __name__ == "__main__":
    key = jax.random.PRNGKey(0)
    ks = jax.random.split(key, 14)
    P = {
        "c0a": init_convbn(ks[0], 32, 8, 3),
        "c0b": init_convbn(ks[1], 8, 8, 3),
        "c1a": init_convbn(ks[2], 8, 16, 5),
        "c1b": init_convbn(ks[3], 16, 16, 3),
        "c1c": init_convbn(ks[4], 16, 16, 3),
        "c2a": init_convbn(ks[5], 16, 32, 5),
        "c2b": init_convbn(ks[6], 32, 32, 3),
        "c2c": init_convbn(ks[7], 32, 32, 3),
        "top": init_conv(ks[8], 32, 32, 1),
        "lat1": init_conv(ks[9], 16, 32, 1),
        "lat0": init_conv(ks[10], 8, 32, 1),
        "sm1": init_conv(ks[11], 32, 16, 3),
        "sm0": init_conv(ks[12], 32, 8, 3),
    }
    # FeatureNet expects 32 input channels; spatial 16x16, batch 2 (one per v7x TC).
    x = jax.random.normal(ks[13], (2, 32, 16, 16), jnp.float32)   # NCHW

    consts, plan = build_featurenet_plan(P, 16, 16)
    pallas_fwd = jax.jit(lambda xx: featurenet_pallas(xx, consts, plan))
    out = pallas_fwd(x)
    jax.block_until_ready(out)

    # Sanity-check against an f32 reference of the same math.  Tolerance reflects
    # bf16 weights/activations (f32 accumulation) vs the f32 HIGHEST reference.
    ref = jax.jit(lambda xx: _ref_forward(xx, P))(x)
    for name in ("level_0", "level_1", "level_2"):
        np.testing.assert_allclose(np.asarray(out[name], np.float32),
                                   np.asarray(ref[name]),
                                   rtol=5e-2, atol=5e-2)

    assert out["level_0"].shape == (2, 8, 16, 16)
    assert out["level_1"].shape == (2, 16, 8, 8)
    assert out["level_2"].shape == (2, 32, 4, 4)
    print("KERNEL_OK")
</pallas_src>

<mosaic_0001>
module attributes {stable_mosaic.version = 11 : i64} {
  func.func @kernel(%arg0: i32, %arg1: memref<1x16x512xbf16, #tpu.memory_space<vmem>>, %arg2: memref<2x3x512x128xbf16, #tpu.memory_space<vmem>>, %arg3: memref<5x3x128x128xbf16, #tpu.memory_space<vmem>>, %arg4: memref<2x5x128x128xbf16, #tpu.memory_space<vmem>>, %arg5: memref<1x5x8x20xbf16, #tpu.memory_space<vmem>>, %arg6: memref<1x5x4x12xbf16, #tpu.memory_space<vmem>>, %arg7: memref<1x1x128x128xbf16, #tpu.memory_space<vmem>>, %arg8: memref<1x1x128x256xbf16, #tpu.memory_space<vmem>>, %arg9: memref<1x1x128x512xbf16, #tpu.memory_space<vmem>>, %arg10: memref<1x3x256x128xbf16, #tpu.memory_space<vmem>>, %arg11: memref<26x512xf32, #tpu.memory_space<vmem>>, %arg12: memref<8x4xbf16, #tpu.memory_space<vmem>>, %arg13: memref<128x256xbf16, #tpu.memory_space<vmem>>, %arg14: memref<16x8xbf16, #tpu.memory_space<vmem>>, %arg15: memref<256x512xbf16, #tpu.memory_space<vmem>>, %arg16: memref<1x16x128xf32, #tpu.memory_space<vmem>>, %arg17: memref<1x8x128xf32, #tpu.memory_space<vmem>>, %arg18: memref<1x4x128xf32, #tpu.memory_space<vmem>>, %arg19: memref<18x512xf32, #tpu.memory_space<vmem>>, %arg20: memref<18x128xf32, #tpu.memory_space<vmem>>, %arg21: memref<20x128xf32, #tpu.memory_space<vmem>>, %arg22: memref<10x128xf32, #tpu.memory_space<vmem>>, %arg23: memref<10x128xf32, #tpu.memory_space<vmem>>, %arg24: memref<12x128xf32, #tpu.memory_space<vmem>>, %arg25: memref<6x128xf32, #tpu.memory_space<vmem>>, %arg26: memref<6x128xf32, #tpu.memory_space<vmem>>, %arg27: memref<10x256xf32, #tpu.memory_space<vmem>>, %arg28: memref<18x512xf32, #tpu.memory_space<vmem>>) attributes {dimension_semantics = [#tpu.dimension_semantics<parallel>], iteration_bounds = array<i64: 2>, scalar_prefetch = 0 : i64, scratch_operands = 10 : i64, tpu.core_type = #tpu.core_type<tc>, window_params = [{transform_indices = @transform_0, window_bounds = array<i64: 1, 16, 512>}, {pipeline_mode = #tpu.pipeline_mode<synchronous>, transform_indices = @transform_1, window_bounds = array<i64: 2, 3, 512, 128>}, {pipeline_mode = #tpu.pipeline_mode<synchronous>, transform_indices = @transform_2, window_bounds = array<i64: 5, 3, 128, 128>}, {pipeline_mode = #tpu.pipeline_mode<synchronous>, transform_indices = @transform_3, window_bounds = array<i64: 2, 5, 128, 128>}, {pipeline_mode = #tpu.pipeline_mode<synchronous>, transform_indices = @transform_4, window_bounds = array<i64: 1, 5, 8, 20>}, {pipeline_mode = #tpu.pipeline_mode<synchronous>, transform_indices = @transform_5, window_bounds = array<i64: 1, 5, 4, 12>}, {pipeline_mode = #tpu.pipeline_mode<synchronous>, transform_indices = @transform_6, window_bounds = array<i64: 1, 1, 128, 128>}, {pipeline_mode = #tpu.pipeline_mode<synchronous>, transform_indices = @transform_7, window_bounds = array<i64: 1, 1, 128, 256>}, {pipeline_mode = #tpu.pipeline_mode<synchronous>, transform_indices = @transform_8, window_bounds = array<i64: 1, 1, 128, 512>}, {pipeline_mode = #tpu.pipeline_mode<synchronous>, transform_indices = @transform_9, window_bounds = array<i64: 1, 3, 256, 128>}, {pipeline_mode = #tpu.pipeline_mode<synchronous>, transform_indices = @transform_10, window_bounds = array<i64: 26, 512>}, {pipeline_mode = #tpu.pipeline_mode<synchronous>, transform_indices = @transform_11, window_bounds = array<i64: 8, 4>}, {pipeline_mode = #tpu.pipeline_mode<synchronous>, transform_indices = @transform_12, window_bounds = array<i64: 128, 256>}, {pipeline_mode = #tpu.pipeline_mode<synchronous>, transform_indices = @transform_13, window_bounds = array<i64: 16, 8>}, {pipeline_mode = #tpu.pipeline_mode<synchronous>, transform_indices = @transform_14, window_bounds = array<i64: 256, 512>}, {transform_indices = @transform_15, window_bounds = array<i64: 1, 16, 128>}, {transform_indices = @transform_16, window_bounds = array<i64: 1, 8, 128>}, {transform_indices = @transform_17, window_bounds = array<i64: 1, 4, 128>}]} {
    %c0 = arith.constant 0 : index
    %c0_0 = arith.constant 0 : index
    %c0_1 = arith.constant 0 : index
    %0 = vector.load %arg1[%c0, %c0_0, %c0_1] : memref<1x16x512xbf16, #tpu.memory_space<vmem>>, vector<1x16x512xbf16>
    %1 = vector.shape_cast %0 : vector<1x16x512xbf16> to vector<16x512xbf16>
    %cst = arith.constant 0.000000e+00 : f32
    %2 = vector.broadcast %cst : f32 to vector<1x512xf32>
    %c0_2 = arith.constant 0 : index
    %c0_3 = arith.constant 0 : index
    %3 = vector.load %arg19[%c0_2, %c0_3] : memref<18x512xf32, #tpu.memory_space<vmem>>, vector<1x512xf32>
    tpu.vector_store %arg19[%c0_2, %c0_3], %2 {strides = array<i32>} : memref<18x512xf32, #tpu.memory_space<vmem>>, vector<1x512xf32>,
    %c17 = arith.constant 17 : index
    %c0_4 = arith.constant 0 : index
    %4 = vector.load %arg19[%c17, %c0_4] : memref<18x512xf32, #tpu.memory_space<vmem>>, vector<1x512xf32>
    tpu.vector_store %arg19[%c17, %c0_4], %2 {strides = array<i32>} : memref<18x512xf32, #tpu.memory_space<vmem>>, vector<1x512xf32>,
    %5 = arith.extf %1 : vector<16x512xbf16> to vector<16x512xf32>
    %c1 = arith.constant 1 : index
    %c0_5 = arith.constant 0 : index
    %6 = vector.load %arg19[%c1, %c0_5] : memref<18x512xf32, #tpu.memory_space<vmem>>, vector<16x512xf32>
    tpu.vector_store %arg19[%c1, %c0_5], %5 {strides = array<i32>} : memref<18x512xf32, #tpu.memory_space<vmem>>, vector<16x512xf32>,
    %c0_6 = arith.constant 0 : index
    %c0_7 = arith.constant 0 : index
    %7 = vector.load %arg19[%c0_6, %c0_7] : memref<18x512xf32, #tpu.memory_space<vmem>>, vector<16x512xf32>
    %8 = arith.truncf %7 : vector<16x512xf32> to vector<16x512xbf16>
    %c0_8 = arith.constant 0 : index
    %c0_9 = arith.constant 0 : index
    %c0_10 = arith.constant 0 : index
    %c0_11 = arith.constant 0 : index
    %9 = vector.load %arg2[%c0_8, %c0_9, %c0_10, %c0_11] : memref<2x3x512x128xbf16, #tpu.memory_space<vmem>>, vector<1x1x512x128xbf16>
    %10 = vector.shape_cast %9 : vector<1x1x512x128xbf16> to vector<512x128xbf16>
    %cst_12 = arith.constant dense<0.000000e+00> : vector<16x128xf32>
    %11 = tpu.matmul %8, %10, %cst_12 {dimension_numbers = #tpu.dot_dimension_numbers<[1], [0], [0], [1], [0, 0, 1, 1], [], []>} : vector<16x512xbf16>, vector<512x128xbf16>, vector<16x128xf32> -> vector<16x128xf32>
    %c1_13 = arith.constant 1 : index
    %c0_14 = arith.constant 0 : index
    %12 = vector.load %arg19[%c1_13, %c0_14] : memref<18x512xf32, #tpu.memory_space<vmem>>, vector<16x512xf32>
    %13 = arith.truncf %12 : vector<16x512xf32> to vector<16x512xbf16>
    %c0_15 = arith.constant 0 : index
    %c1_16 = arith.constant 1 : index
    %c0_17 = arith.constant 0 : index
    %c0_18 = arith.constant 0 : index
    %14 = vector.load %arg2[%c0_15, %c1_16, %c0_17, %c0_18] : memref<2x3x512x128xbf16, #tpu.memory_space<vmem>>, vector<1x1x512x128xbf16>
    %15 = vector.shape_cast %14 : vector<1x1x512x128xbf16> to vector<512x128xbf16>
    %cst_19 = arith.constant dense<0.000000e+00> : vector<16x128xf32>
    %16 = tpu.matmul %13, %15, %cst_19 {dimension_numbers = #tpu.dot_dimension_numbers<[1], [0], [0], [1], [0, 0, 1, 1], [], []>} : vector<16x512xbf16>, vector<512x128xbf16>, vector<16x128xf32> -> vector<16x128xf32>
    %17 = arith.addf %11, %16 : vector<16x128xf32>
    %c2 = arith.constant 2 : index
    %c0_20 = arith.constant 0 : index
    %18 = vector.load %arg19[%c2, %c0_20] : memref<18x512xf32, #tpu.memory_space<vmem>>, vector<16x512xf32>
    %19 = arith.truncf %18 : vector<16x512xf32> to vector<16x512xbf16>
    %c0_21 = arith.constant 0 : index
    %c2_22 = arith.constant 2 : index
    %c0_23 = arith.constant 0 : index
    %c0_24 = arith.constant 0 : index
    %20 = vector.load %arg2[%c0_21, %c2_22, %c0_23, %c0_24] : memref<2x3x512x128xbf16, #tpu.memory_space<vmem>>, vector<1x1x512x128xbf16>
    %21 = vector.shape_cast %20 : vector<1x1x512x128xbf16> to vector<512x128xbf16>
    %cst_25 = arith.constant dense<0.000000e+00> : vector<16x128xf32>
    %22 = tpu.matmul %19, %21, %cst_25 {dimension_numbers = #tpu.dot_dimension_numbers<[1], [0], [0], [1], [0, 0, 1, 1], [], []>} : vector<16x512xbf16>, vector<512x128xbf16>, vector<16x128xf32> -> vector<16x128xf32>
    %23 = arith.addf %17, %22 : vector<16x128xf32>
    %c0_26 = arith.constant 0 : index
    %c0_27 = arith.constant 0 : index
    %24 = vector.load %arg11[%c0_26, %c0_27] : memref<26x512xf32, #tpu.memory_space<vmem>>, vector<1x128xf32>
    %25 = vector.broadcast %24 : vector<1x128xf32> to vector<16x128xf32>
    %26 = arith.mulf %23, %25 : vector<16x128xf32>
    %c1_28 = arith.constant 1 : index
    %c0_29 = arith.constant 0 : index
    %27 = vector.load %arg11[%c1_28, %c0_29] : memref<26x512xf32, #tpu.memory_space<vmem>>, vector<1x128xf32>
    %28 = vector.broadcast %27 : vector<1x128xf32> to vector<16x128xf32>
    %29 = arith.addf %26, %28 : vector<16x128xf32>
    %cst_30 = arith.constant 0.000000e+00 : f32
    %30 = vector.broadcast %cst_30 : f32 to vector<16x128xf32>
    %31 = arith.cmpf oge, %29, %30 : vector<16x128xf32>
    %cst_31 = arith.constant 0.00999999977 : f32
    %32 = vector.broadcast %cst_31 : f32 to vector<16x128xf32>
    %33 = arith.mulf %32, %29 : vector<16x128xf32>
    %34 = arith.select %31, %29, %33 : vector<16x128xi1>, vector<16x128xf32>
    %cst_32 = arith.constant 0.000000e+00 : f32
    %35 = vector.broadcast %cst_32 : f32 to vector<1x128xf32>
    %c0_33 = arith.constant 0 : index
    %c0_34 = arith.constant 0 : index
    %36 = vector.load %arg20[%c0_33, %c0_34] : memref<18x128xf32, #tpu.memory_space<vmem>>, vector<1x128xf32>
    tpu.vector_store %arg20[%c0_33, %c0_34], %35 {strides = array<i32>} : memref<18x128xf32, #tpu.memory_space<vmem>>, vector<1x128xf32>,
    %c17_35 = arith.constant 17 : index
    %c0_36 = arith.constant 0 : index
    %37 = vector.load %arg20[%c17_35, %c0_36] : memref<18x128xf32, #tpu.memory_space<vmem>>, vector<1x128xf32>
    tpu.vector_store %arg20[%c17_35, %c0_36], %35 {strides = array<i32>} : memref<18x128xf32, #tpu.memory_space<vmem>>, vector<1x128xf32>,
    %c1_37 = arith.constant 1 : index
    %c0_38 = arith.constant 0 : index
    %38 = vector.load %arg20[%c1_37, %c0_38] : memref<18x128xf32, #tpu.memory_space<vmem>>, vector<16x128xf32>
    tpu.vector_store %arg20[%c1_37, %c0_38], %34 {strides = array<i32>} : memref<18x128xf32, #tpu.memory_space<vmem>>, vector<16x128xf32>,
    %c0_39 = arith.constant 0 : index
    %c0_40 = arith.constant 0 : index
    %39 = vector.load %arg20[%c0_39, %c0_40] : memref<18x128xf32, #tpu.memory_space<vmem>>, vector<16x128xf32>
    %40 = arith.truncf %39 : vector<16x128xf32> to vector<16x128xbf16>
    %c0_41 = arith.constant 0 : index
    %c0_42 = arith.constant 0 : index
    %c0_43 = arith.constant 0 : index
    %c0_44 = arith.constant 0 : index
    %41 = vector.load %arg3[%c0_41, %c0_42, %c0_43, %c0_44] : memref<5x3x128x128xbf16, #tpu.memory_space<vmem>>, vector<1x1x128x128xbf16>
    %42 = vector.shape_cast %41 : vector<1x1x128x128xbf16> to vector<128x128xbf16>
    %cst_45 = arith.constant dense<0.000000e+00> : vector<16x128xf32>
    %43 = tpu.matmul %40, %42, %cst_45 {dimension_numbers = #tpu.dot_dimension_numbers<[1], [0], [0], [1], [0, 0, 1, 1], [], []>} : vector<16x128xbf16>, vector<128x128xbf16>, vector<16x128xf32> -> vector<16x128xf32>
    %c1_46 = arith.constant 1 : index
    %c0_47 = arith.constant 0 : index
    %44 = vector.load %arg20[%c1_46, %c0_47] : memref<18x128xf32, #tpu.memory_space<vmem>>, vector<16x128xf32>
    %45 = arith.truncf %44 : vector<16x128xf32> to vector<16x128xbf16>
    %c0_48 = arith.constant 0 : index
    %c1_49 = arith.constant 1 : index
    %c0_50 = arith.constant 0 : index
    %c0_51 = arith.constant 0 : index
    %46 = vector.load %arg3[%c0_48, %c1_49, %c0_50, %c0_51] : memref<5x3x128x128xbf16, #tpu.memory_space<vmem>>, vector<1x1x128x128xbf16>
    %47 = vector.shape_cast %46 : vector<1x1x128x128xbf16> to vector<128x128xbf16>
    %cst_52 = arith.constant dense<0.000000e+00> : vector<16x128xf32>
    %48 = tpu.matmul %45, %47, %cst_52 {dimension_numbers = #tpu.dot_dimension_numbers<[1], [0], [0], [1], [0, 0, 1, 1], [], []>} : vector<16x128xbf16>, vector<128x128xbf16>, vector<16x128xf32> -> vector<16x128xf32>
    %49 = arith.addf %43, %48 : vector<16x128xf32>
    %c2_53 = arith.constant 2 : index
    %c0_54 = arith.constant 0 : index
    %50 = vector.load %arg20[%c2_53, %c0_54] : memref<18x128xf32, #tpu.memory_space<vmem>>, vector<16x128xf32>
    %51 = arith.truncf %50 : vector<16x128xf32> to vector<16x128xbf16>
    %c0_55 = arith.constant 0 : index
    %c2_56 = arith.constant 2 : index
    %c0_57 = arith.constant 0 : index
    %c0_58 = arith.constant 0 : index
    %52 = vector.load %arg3[%c0_55, %c2_56, %c0_57, %c0_58] : memref<5x3x128x128xbf16, #tpu.memory_space<vmem>>, vector<1x1x128x128xbf16>
    %53 = vector.shape_cast %52 : vector<1x1x128x128xbf16> to vector<128x128xbf16>
    %cst_59 = arith.constant dense<0.000000e+00> : vector<16x128xf32>
    %54 = tpu.matmul %51, %53, %cst_59 {dimension_numbers = #tpu.dot_dimension_numbers<[1], [0], [0], [1], [0, 0, 1, 1], [], []>} : vector<16x128xbf16>, vector<128x128xbf16>, vector<16x128xf32> -> vector<16x128xf32>
    %55 = arith.addf %49, %54 : vector<16x128xf32>
    %c2_60 = arith.constant 2 : index
    %c0_61 = arith.constant 0 : index
    %56 = vector.load %arg11[%c2_60, %c0_61] : memref<26x512xf32, #tpu.memory_space<vmem>>, vector<1x128xf32>
    %57 = vector.broadcast %56 : vector<1x128xf32> to vector<16x128xf32>
    %58 = arith.mulf %55, %57 : vector<16x128xf32>
    %c3 = arith.constant 3 : index
    %c0_62 = arith.constant 0 : index
    %59 = vector.load %arg11[%c3, %c0_62] : memref<26x512xf32, #tpu.memory_space<vmem>>, vector<1x128xf32>
    %60 = vector.broadcast %59 : vector<1x128xf32> to vector<16x128xf32>
    %61 = arith.addf %58, %60 : vector<16x128xf32>
    %cst_63 = arith.constant 0.000000e+00 : f32
    %62 = vector.broadcast %cst_63 : f32 to vector<16x128xf32>
    %63 = arith.cmpf oge, %61, %62 : vector<16x128xf32>
    %cst_64 = arith.constant 0.00999999977 : f32
    %64 = vector.broadcast %cst_64 : f32 to vector<16x128xf32>
    %65 = arith.mulf %64, %61 : vector<16x128xf32>
    %66 = arith.select %63, %61, %65 : vector<16x128xi1>, vector<16x128xf32>
    %cst_65 = arith.constant 0.000000e+00 : f32
    %67 = vector.broadcast %cst_65 : f32 to vector<2x128xf32>
    %c0_66 = arith.constant 0 : index
    %c0_67 = arith.constant 0 : index
    %68 = vector.load %arg21[%c0_66, %c0_67] : memref<20x128xf32, #tpu.memory_space<vmem>>, vector<2x128xf32>
    tpu.vector_store %arg21[%c0_66, %c0_67], %67 {strides = array<i32>} : memref<20x128xf32, #tpu.memory_space<vmem>>, vector<2x128xf32>,
    %c18 = arith.constant 18 : index
    %c0_68 = arith.constant 0 : index
    %69 = vector.load %arg21[%c18, %c0_68] : memref<20x128xf32, #tpu.memory_space<vmem>>, vector<2x128xf32>
    tpu.vector_store %arg21[%c18, %c0_68], %67 {strides = array<i32>} : memref<20x128xf32, #tpu.memory_space<vmem>>, vector<2x128xf32>,
    %c2_69 = arith.constant 2 : index
    %c0_70 = arith.constant 0 : index
    %70 = vector.load %arg21[%c2_69, %c0_70] : memref<20x128xf32, #tpu.memory_space<vmem>>, vector<16x128xf32>
    tpu.vector_store %arg21[%c2_69, %c0_70], %66 {strides = array<i32>} : memref<20x128xf32, #tpu.memory_space<vmem>>, vector<16x128xf32>,
    %c0_71 = arith.constant 0 : index
    %c0_72 = arith.constant 0 : index
    %71 = vector.load %arg21[%c0_71, %c0_72] : memref<20x128xf32, #tpu.memory_space<vmem>>, vector<20x128xf32>
    %72 = arith.truncf %71 : vector<20x128xf32> to vector<20x128xbf16>
    %c0_73 = arith.constant 0 : index
    %c0_74 = arith.constant 0 : index
    %c0_75 = arith.constant 0 : index
    %c0_76 = arith.constant 0 : index
    %73 = vector.load %arg5[%c0_73, %c0_74, %c0_75, %c0_76] : memref<1x5x8x20xbf16, #tpu.memory_space<vmem>>, vector<1x1x8x20xbf16>
    %74 = vector.shape_cast %73 : vector<1x1x8x20xbf16> to vector<8x20xbf16>
    %cst_77 = arith.constant dense<0.000000e+00> : vector<8x128xf32>
    %75 = tpu.matmul %74, %72, %cst_77 {dimension_numbers = #tpu.dot_dimension_numbers<[1], [0], [0], [1], [0, 0, 1, 1], [], []>} : vector<8x20xbf16>, vector<20x128xbf16>, vector<8x128xf32> -> vector<8x128xf32>
    %76 = arith.truncf %75 : vector<8x128xf32> to vector<8x128xbf16>
    %c0_78 = arith.constant 0 : index
    %c0_79 = arith.constant 0 : index
    %c0_80 = arith.constant 0 : index
    %c0_81 = arith.constant 0 : index
    %77 = vector.load %arg4[%c0_78, %c0_79, %c0_80, %c0_81] : memref<2x5x128x128xbf16, #tpu.memory_space<vmem>>, vector<1x1x128x128xbf16>
    %78 = vector.shape_cast %77 : vector<1x1x128x128xbf16> to vector<128x128xbf16>
    %cst_82 = arith.constant dense<0.000000e+00> : vector<8x128xf32>
    %79 = tpu.matmul %76, %78, %cst_82 {dimension_numbers = #tpu.dot_dimension_numbers<[1], [0], [0], [1], [0, 0, 1, 1], [], []>} : vector<8x128xbf16>, vector<128x128xbf16>, vector<8x128xf32> -> vector<8x128xf32>
    %c0_83 = arith.constant 0 : index
    %c1_84 = arith.constant 1 : index
    %c0_85 = arith.constant 0 : index
    %c0_86 = arith.constant 0 : index
    %80 = vector.load %arg5[%c0_83, %c1_84, %c0_85, %c0_86] : memref<1x5x8x20xbf16, #tpu.memory_space<vmem>>, vector<1x1x8x20xbf16>
    %81 = vector.shape_cast %80 : vector<1x1x8x20xbf16> to vector<8x20xbf16>
    %cst_87 = arith.constant dense<0.000000e+00> : vector<8x128xf32>
    %82 = tpu.matmul %81, %72, %cst_87 {dimension_numbers = #tpu.dot_dimension_numbers<[1], [0], [0], [1], [0, 0, 1, 1], [], []>} : vector<8x20xbf16>, vector<20x128xbf16>, vector<8x128xf32> -> vector<8x128xf32>
    %83 = arith.truncf %82 : vector<8x128xf32> to vector<8x128xbf16>
    %c0_88 = arith.constant 0 : index
    %c1_89 = arith.constant 1 : index
    %c0_90 = arith.constant 0 : index
    %c0_91 = arith.constant 0 : index
    %84 = vector.load %arg4[%c0_88, %c1_89, %c0_90, %c0_91] : memref<2x5x128x128xbf16, #tpu.memory_space<vmem>>, vector<1x1x128x128xbf16>
    %85 = vector.shape_cast %84 : vector<1x1x128x128xbf16> to vector<128x128xbf16>
    %cst_92 = arith.constant dense<0.000000e+00> : vector<8x128xf32>
    %86 = tpu.matmul %83, %85, %cst_92 {dimension_numbers = #tpu.dot_dimension_numbers<[1], [0], [0], [1], [0, 0, 1, 1], [], []>} : vector<8x128xbf16>, vector<128x128xbf16>, vector<8x128xf32> -> vector<8x128xf32>
    %87 = arith.addf %79, %86 : vector<8x128xf32>
    %c0_93 = arith.constant 0 : index
    %c2_94 = arith.constant 2 : index
    %c0_95 = arith.constant 0 : index
    %c0_96 = arith.constant 0 : index
    %88 = vector.load %arg5[%c0_93, %c2_94, %c0_95, %c0_96] : memref<1x5x8x20xbf16, #tpu.memory_space<vmem>>, vector<1x1x8x20xbf16>
    %89 = vector.shape_cast %88 : vector<1x1x8x20xbf16> to vector<8x20xbf16>
    %cst_97 = arith.constant dense<0.000000e+00> : vector<8x128xf32>
    %90 = tpu.matmul %89, %72, %cst_97 {dimension_numbers = #tpu.dot_dimension_numbers<[1], [0], [0], [1], [0, 0, 1, 1], [], []>} : vector<8x20xbf16>, vector<20x128xbf16>, vector<8x128xf32> -> vector<8x128xf32>
    %91 = arith.truncf %90 : vector<8x128xf32> to vector<8x128xbf16>
    %c0_98 = arith.constant 0 : index
    %c2_99 = arith.constant 2 : index
    %c0_100 = arith.constant 0 : index
    %c0_101 = arith.constant 0 : index
    %92 = vector.load %arg4[%c0_98, %c2_99, %c0_100, %c0_101] : memref<2x5x128x128xbf16, #tpu.memory_space<vmem>>, vector<1x1x128x128xbf16>
    %93 = vector.shape_cast %92 : vector<1x1x128x128xbf16> to vector<128x128xbf16>
    %cst_102 = arith.constant dense<0.000000e+00> : vector<8x128xf32>
    %94 = tpu.matmul %91, %93, %cst_102 {dimension_numbers = #tpu.dot_dimension_numbers<[1], [0], [0], [1], [0, 0, 1, 1], [], []>} : vector<8x128xbf16>, vector<128x128xbf16>, vector<8x128xf32> -> vector<8x128xf32>
    %95 = arith.addf %87, %94 : vector<8x128xf32>
    %c0_103 = arith.constant 0 : index
    %c3_104 = arith.constant 3 : index
    %c0_105 = arith.constant 0 : index
    %c0_106 = arith.constant 0 : index
    %96 = vector.load %arg5[%c0_103, %c3_104, %c0_105, %c0_106] : memref<1x5x8x20xbf16, #tpu.memory_space<vmem>>, vector<1x1x8x20xbf16>
    %97 = vector.shape_cast %96 : vector<1x1x8x20xbf16> to vector<8x20xbf16>
    %cst_107 = arith.constant dense<0.000000e+00> : vector<8x128xf32>
    %98 = tpu.matmul %97, %72, %cst_107 {dimension_numbers = #tpu.dot_dimension_numbers<[1], [0], [0], [1], [0, 0, 1, 1], [], []>} : vector<8x20xbf16>, vector<20x128xbf16>, vector<8x128xf32> -> vector<8x128xf32>
    %99 = arith.truncf %98 : vector<8x128xf32> to vector<8x128xbf16>
    %c0_108 = arith.constant 0 : index
    %c3_109 = arith.constant 3 : index
    %c0_110 = arith.constant 0 : index
    %c0_111 = arith.constant 0 : index
    %100 = vector.load %arg4[%c0_108, %c3_109, %c0_110, %c0_111] : memref<2x5x128x128xbf16, #tpu.memory_space<vmem>>, vector<1x1x128x128xbf16>
    %101 = vector.shape_cast %100 : vector<1x1x128x128xbf16> to vector<128x128xbf16>
    %cst_112 = arith.constant dense<0.000000e+00> : vector<8x128xf32>
    %102 = tpu.matmul %99, %101, %cst_112 {dimension_numbers = #tpu.dot_dimension_numbers<[1], [0], [0], [1], [0, 0, 1, 1], [], []>} : vector<8x128xbf16>, vector<128x128xbf16>, vector<8x128xf32> -> vector<8x128xf32>
    %103 = arith.addf %95, %102 : vector<8x128xf32>
    %c0_113 = arith.constant 0 : index
    %c4 = arith.constant 4 : index
    %c0_114 = arith.constant 0 : index
    %c0_115 = arith.constant 0 : index
    %104 = vector.load %arg5[%c0_113, %c4, %c0_114, %c0_115] : memref<1x5x8x20xbf16, #tpu.memory_space<vmem>>, vector<1x1x8x20xbf16>
    %105 = vector.shape_cast %104 : vector<1x1x8x20xbf16> to vector<8x20xbf16>
    %cst_116 = arith.constant dense<0.000000e+00> : vector<8x128xf32>
    %106 = tpu.matmul %105, %72, %cst_116 {dimension_numbers = #tpu.dot_dimension_numbers<[1], [0], [0], [1], [0, 0, 1, 1], [], []>} : vector<8x20xbf16>, vector<20x128xbf16>, vector<8x128xf32> -> vector<8x128xf32>
    %107 = arith.truncf %106 : vector<8x128xf32> to vector<8x128xbf16>
    %c0_117 = arith.constant 0 : index
    %c4_118 = arith.constant 4 : index
    %c0_119 = arith.constant 0 : index
    %c0_120 = arith.constant 0 : index
    %108 = vector.load %arg4[%c0_117, %c4_118, %c0_119, %c0_120] : memref<2x5x128x128xbf16, #tpu.memory_space<vmem>>, vector<1x1x128x128xbf16>
    %109 = vector.shape_cast %108 : vector<1x1x128x128xbf16> to vector<128x128xbf16>
    %cst_121 = arith.constant dense<0.000000e+00> : vector<8x128xf32>
    %110 = tpu.matmul %107, %109, %cst_121 {dimension_numbers = #tpu.dot_dimension_numbers<[1], [0], [0], [1], [0, 0, 1, 1], [], []>} : vector<8x128xbf16>, vector<128x128xbf16>, vector<8x128xf32> -> vector<8x128xf32>
    %111 = arith.addf %103, %110 : vector<8x128xf32>
    %c4_122 = arith.constant 4 : index
    %c0_123 = arith.constant 0 : index
    %112 = vector.load %arg11[%c4_122, %c0_123] : memref<26x512xf32, #tpu.memory_space<vmem>>, vector<1x128xf32>
    %113 = vector.broadcast %112 : vector<1x128xf32> to vector<8x128xf32>
    %114 = arith.mulf %111, %113 : vector<8x128xf32>
    %c5 = arith.constant 5 : index
    %c0_124 = arith.constant 0 : index
    %115 = vector.load %arg11[%c5, %c0_124] : memref<26x512xf32, #tpu.memory_space<vmem>>, vector<1x128xf32>
    %116 = vector.broadcast %115 : vector<1x128xf32> to vector<8x128xf32>
    %117 = arith.addf %114, %116 : vector<8x128xf32>
    %cst_125 = arith.constant 0.000000e+00 : f32
    %118 = vector.broadcast %cst_125 : f32 to vector<8x128xf32>
    %119 = arith.cmpf oge, %117, %118 : vector<8x128xf32>
    %cst_126 = arith.constant 0.00999999977 : f32
    %120 = vector.broadcast %cst_126 : f32 to vector<8x128xf32>
    %121 = arith.mulf %120, %117 : vector<8x128xf32>
    %122 = arith.select %119, %117, %121 : vector<8x128xi1>, vector<8x128xf32>
    %cst_127 = arith.constant 0.000000e+00 : f32
    %123 = vector.broadcast %cst_127 : f32 to vector<1x128xf32>
    %c0_128 = arith.constant 0 : index
    %c0_129 = arith.constant 0 : index
    %124 = vector.load %arg22[%c0_128, %c0_129] : memref<10x128xf32, #tpu.memory_space<vmem>>, vector<1x128xf32>
    tpu.vector_store %arg22[%c0_128, %c0_129], %123 {strides = array<i32>} : memref<10x128xf32, #tpu.memory_space<vmem>>, vector<1x128xf32>,
    %c9 = arith.constant 9 : index
    %c0_130 = arith.constant 0 : index
    %125 = vector.load %arg22[%c9, %c0_130] : memref<10x128xf32, #tpu.memory_space<vmem>>, vector<1x128xf32>
    tpu.vector_store %arg22[%c9, %c0_130], %123 {strides = array<i32>} : memref<10x128xf32, #tpu.memory_space<vmem>>, vector<1x128xf32>,
    %c1_131 = arith.constant 1 : index
    %c0_132 = arith.constant 0 : index
    %126 = vector.load %arg22[%c1_131, %c0_132] : memref<10x128xf32, #tpu.memory_space<vmem>>, vector<8x128xf32>
    tpu.vector_store %arg22[%c1_131, %c0_132], %122 {strides = array<i32>} : memref<10x128xf32, #tpu.memory_space<vmem>>, vector<8x128xf32>,
    %c0_133 = arith.constant 0 : index
    %c0_134 = arith.constant 0 : index
    %127 = vector.load %arg22[%c0_133, %c0_134] : memref<10x128xf32, #tpu.memory_space<vmem>>, vector<8x128xf32>
    %128 = arith.truncf %127 : vector<8x128xf32> to vector<8x128xbf16>
    %c1_135 = arith.constant 1 : index
    %c0_136 = arith.constant 0 : index
    %c0_137 = arith.constant 0 : index
    %c0_138 = arith.constant 0 : index
    %129 = vector.load %arg3[%c1_135, %c0_136, %c0_137, %c0_138] : memref<5x3x128x128xbf16, #tpu.memory_space<vmem>>, vector<1x1x128x128xbf16>
    %130 = vector.shape_cast %129 : vector<1x1x128x128xbf16> to vector<128x128xbf16>
    %cst_139 = arith.constant dense<0.000000e+00> : vector<8x128xf32>
    %131 = tpu.matmul %128, %130, %cst_139 {dimension_numbers = #tpu.dot_dimension_numbers<[1], [0], [0], [1], [0, 0, 1, 1], [], []>} : vector<8x128xbf16>, vector<128x128xbf16>, vector<8x128xf32> -> vector<8x128xf32>
    %c1_140 = arith.constant 1 : index
    %c0_141 = arith.constant 0 : index
    %132 = vector.load %arg22[%c1_140, %c0_141] : memref<10x128xf32, #tpu.memory_space<vmem>>, vector<8x128xf32>
    %133 = arith.truncf %132 : vector<8x128xf32> to vector<8x128xbf16>
    %c1_142 = arith.constant 1 : index
    %c1_143 = arith.constant 1 : index
    %c0_144 = arith.constant 0 : index
    %c0_145 = arith.constant 0 : index
    %134 = vector.load %arg3[%c1_142, %c1_143, %c0_144, %c0_145] : memref<5x3x128x128xbf16, #tpu.memory_space<vmem>>, vector<1x1x128x128xbf16>
    %135 = vector.shape_cast %134 : vector<1x1x128x128xbf16> to vector<128x128xbf16>
    %cst_146 = arith.constant dense<0.000000e+00> : vector<8x128xf32>
    %136 = tpu.matmul %133, %135, %cst_146 {dimension_numbers = #tpu.dot_dimension_numbers<[1], [0], [0], [1], [0, 0, 1, 1], [], []>} : vector<8x128xbf16>, vector<128x128xbf16>, vector<8x128xf32> -> vector<8x128xf32>
    %137 = arith.addf %131, %136 : vector<8x128xf32>
    %c2_147 = arith.constant 2 : index
    %c0_148 = arith.constant 0 : index
    %138 = vector.load %arg22[%c2_147, %c0_148] : memref<10x128xf32, #tpu.memory_space<vmem>>, vector<8x128xf32>
    %139 = arith.truncf %138 : vector<8x128xf32> to vector<8x128xbf16>
    %c1_149 = arith.constant 1 : index
    %c2_150 = arith.constant 2 : index
    %c0_151 = arith.constant 0 : index
    %c0_152 = arith.constant 0 : index
    %140 = vector.load %arg3[%c1_149, %c2_150, %c0_151, %c0_152] : memref<5x3x128x128xbf16, #tpu.memory_space<vmem>>, vector<1x1x128x128xbf16>
    %141 = vector.shape_cast %140 : vector<1x1x128x128xbf16> to vector<128x128xbf16>
    %cst_153 = arith.constant dense<0.000000e+00> : vector<8x128xf32>
    %142 = tpu.matmul %139, %141, %cst_153 {dimension_numbers = #tpu.dot_dimension_numbers<[1], [0], [0], [1], [0, 0, 1, 1], [], []>} : vector<8x128xbf16>, vector<128x128xbf16>, vector<8x128xf32> -> vector<8x128xf32>
    %143 = arith.addf %137, %142 : vector<8x128xf32>
    %c6 = arith.constant 6 : index
    %c0_154 = arith.constant 0 : index
    %144 = vector.load %arg11[%c6, %c0_154] : memref<26x512xf32, #tpu.memory_space<vmem>>, vector<1x128xf32>
    %145 = vector.broadcast %144 : vector<1x128xf32> to vector<8x128xf32>
    %146 = arith.mulf %143, %145 : vector<8x128xf32>
    %c7 = arith.constant 7 : index
    %c0_155 = arith.constant 0 : index
    %147 = vector.load %arg11[%c7, %c0_155] : memref<26x512xf32, #tpu.memory_space<vmem>>, vector<1x128xf32>
    %148 = vector.broadcast %147 : vector<1x128xf32> to vector<8x128xf32>
    %149 = arith.addf %146, %148 : vector<8x128xf32>
    %cst_156 = arith.constant 0.000000e+00 : f32
    %150 = vector.broadcast %cst_156 : f32 to vector<8x128xf32>
    %151 = arith.cmpf oge, %149, %150 : vector<8x128xf32>
    %cst_157 = arith.constant 0.00999999977 : f32
    %152 = vector.broadcast %cst_157 : f32 to vector<8x128xf32>
    %153 = arith.mulf %152, %149 : vector<8x128xf32>
    %154 = arith.select %151, %149, %153 : vector<8x128xi1>, vector<8x128xf32>
    %cst_158 = arith.constant 0.000000e+00 : f32
    %155 = vector.broadcast %cst_158 : f32 to vector<1x128xf32>
    %c0_159 = arith.constant 0 : index
    %c0_160 = arith.constant 0 : index
    %156 = vector.load %arg23[%c0_159, %c0_160] : memref<10x128xf32, #tpu.memory_space<vmem>>, vector<1x128xf32>
    tpu.vector_store %arg23[%c0_159, %c0_160], %155 {strides = array<i32>} : memref<10x128xf32, #tpu.memory_space<vmem>>, vector<1x128xf32>,
    %c9_161 = arith.constant 9 : index
    %c0_162 = arith.constant 0 : index
    %157 = vector.load %arg23[%c9_161, %c0_162] : memref<10x128xf32, #tpu.memory_space<vmem>>, vector<1x128xf32>
    tpu.vector_store %arg23[%c9_161, %c0_162], %155 {strides = array<i32>} : memref<10x128xf32, #tpu.memory_space<vmem>>, vector<1x128xf32>,
    %c1_163 = arith.constant 1 : index
    %c0_164 = arith.constant 0 : index
    %158 = vector.load %arg23[%c1_163, %c0_164] : memref<10x128xf32, #tpu.memory_space<vmem>>, vector<8x128xf32>
    tpu.vector_store %arg23[%c1_163, %c0_164], %154 {strides = array<i32>} : memref<10x128xf32, #tpu.memory_space<vmem>>, vector<8x128xf32>,
    %c0_165 = arith.constant 0 : index
    %c0_166 = arith.constant 0 : index
    %159 = vector.load %arg23[%c0_165, %c0_166] : memref<10x128xf32, #tpu.memory_space<vmem>>, vector<8x128xf32>
    %160 = arith.truncf %159 : vector<8x128xf32> to vector<8x128xbf16>
    %c2_167 = arith.constant 2 : index
    %c0_168 = arith.constant 0 : index
    %c0_169 = arith.constant 0 : index
    %c0_170 = arith.constant 0 : index
    %161 = vector.load %arg3[%c2_167, %c0_168, %c0_169, %c0_170] : memref<5x3x128x128xbf16, #tpu.memory_space<vmem>>, vector<1x1x128x128xbf16>
    %162 = vector.shape_cast %161 : vector<1x1x128x128xbf16> to vector<128x128xbf16>
    %cst_171 = arith.constant dense<0.000000e+00> : vector<8x128xf32>
    %163 = tpu.matmul %160, %162, %cst_171 {dimension_numbers = #tpu.dot_dimension_numbers<[1], [0], [0], [1], [0, 0, 1, 1], [], []>} : vector<8x128xbf16>, vector<128x128xbf16>, vector<8x128xf32> -> vector<8x128xf32>
    %c1_172 = arith.constant 1 : index
    %c0_173 = arith.constant 0 : index
    %164 = vector.load %arg23[%c1_172, %c0_173] : memref<10x128xf32, #tpu.memory_space<vmem>>, vector<8x128xf32>
    %165 = arith.truncf %164 : vector<8x128xf32> to vector<8x128xbf16>
    %c2_174 = arith.constant 2 : index
    %c1_175 = arith.constant 1 : index
    %c0_176 = arith.constant 0 : index
    %c0_177 = arith.constant 0 : index
    %166 = vector.load %arg3[%c2_174, %c1_175, %c0_176, %c0_177] : memref<5x3x128x128xbf16, #tpu.memory_space<vmem>>, vector<1x1x128x128xbf16>
    %167 = vector.shape_cast %166 : vector<1x1x128x128xbf16> to vector<128x128xbf16>
    %cst_178 = arith.constant dense<0.000000e+00> : vector<8x128xf32>
    %168 = tpu.matmul %165, %167, %cst_178 {dimension_numbers = #tpu.dot_dimension_numbers<[1], [0], [0], [1], [0, 0, 1, 1], [], []>} : vector<8x128xbf16>, vector<128x128xbf16>, vector<8x128xf32> -> vector<8x128xf32>
    %169 = arith.addf %163, %168 : vector<8x128xf32>
    %c2_179 = arith.constant 2 : index
    %c0_180 = arith.constant 0 : index
    %170 = vector.load %arg23[%c2_179, %c0_180] : memref<10x128xf32, #tpu.memory_space<vmem>>, vector<8x128xf32>
    %171 = arith.truncf %170 : vector<8x128xf32> to vector<8x128xbf16>
    %c2_181 = arith.constant 2 : index
    %c2_182 = arith.constant 2 : index
    %c0_183 = arith.constant 0 : index
    %c0_184 = arith.constant 0 : index
    %172 = vector.load %arg3[%c2_181, %c2_182, %c0_183, %c0_184] : memref<5x3x128x128xbf16, #tpu.memory_space<vmem>>, vector<1x1x128x128xbf16>
    %173 = vector.shape_cast %172 : vector<1x1x128x128xbf16> to vector<128x128xbf16>
    %cst_185 = arith.constant dense<0.000000e+00> : vector<8x128xf32>
    %174 = tpu.matmul %171, %173, %cst_185 {dimension_numbers = #tpu.dot_dimension_numbers<[1], [0], [0], [1], [0, 0, 1, 1], [], []>} : vector<8x128xbf16>, vector<128x128xbf16>, vector<8x128xf32> -> vector<8x128xf32>
    %175 = arith.addf %169, %174 : vector<8x128xf32>
    %c8 = arith.constant 8 : index
    %c0_186 = arith.constant 0 : index
    %176 = vector.load %arg11[%c8, %c0_186] : memref<26x512xf32, #tpu.memory_space<vmem>>, vector<1x128xf32>
    %177 = vector.broadcast %176 : vector<1x128xf32> to vector<8x128xf32>
    %178 = arith.mulf %175, %177 : vector<8x128xf32>
    %c9_187 = arith.constant 9 : index
    %c0_188 = arith.constant 0 : index
    %179 = vector.load %arg11[%c9_187, %c0_188] : memref<26x512xf32, #tpu.memory_space<vmem>>, vector<1x128xf32>
    %180 = vector.broadcast %179 : vector<1x128xf32> to vector<8x128xf32>
    %181 = arith.addf %178, %180 : vector<8x128xf32>
    %cst_189 = arith.constant 0.000000e+00 : f32
    %182 = vector.broadcast %cst_189 : f32 to vector<8x128xf32>
    %183 = arith.cmpf oge, %181, %182 : vector<8x128xf32>
    %cst_190 = arith.constant 0.00999999977 : f32
    %184 = vector.broadcast %cst_190 : f32 to vector<8x128xf32>
    %185 = arith.mulf %184, %181 : vector<8x128xf32>
    %186 = arith.select %183, %181, %185 : vector<8x128xi1>, vector<8x128xf32>
    %cst_191 = arith.constant 0.000000e+00 : f32
    %187 = vector.broadcast %cst_191 : f32 to vector<2x128xf32>
    %c0_192 = arith.constant 0 : index
    %c0_193 = arith.constant 0 : index
    %188 = vector.load %arg24[%c0_192, %c0_193] : memref<12x128xf32, #tpu.memory_space<vmem>>, vector<2x128xf32>
    tpu.vector_store %arg24[%c0_192, %c0_193], %187 {strides = array<i32>} : memref<12x128xf32, #tpu.memory_space<vmem>>, vector<2x128xf32>,
    %c10 = arith.constant 10 : index
    %c0_194 = arith.constant 0 : index
    %189 = vector.load %arg24[%c10, %c0_194] : memref<12x128xf32, #tpu.memory_space<vmem>>, vector<2x128xf32>
    tpu.vector_store %arg24[%c10, %c0_194], %187 {strides = array<i32>} : memref<12x128xf32, #tpu.memory_space<vmem>>, vector<2x128xf32>,
    %c2_195 = arith.constant 2 : index
    %c0_196 = arith.constant 0 : index
    %190 = vector.load %arg24[%c2_195, %c0_196] : memref<12x128xf32, #tpu.memory_space<vmem>>, vector<8x128xf32>
    tpu.vector_store %arg24[%c2_195, %c0_196], %186 {strides = array<i32>} : memref<12x128xf32, #tpu.memory_space<vmem>>, vector<8x128xf32>,
    %c0_197 = arith.constant 0 : index
    %c0_198 = arith.constant 0 : index
    %191 = vector.load %arg24[%c0_197, %c0_198] : memref<12x128xf32, #tpu.memory_space<vmem>>, vector<12x128xf32>
    %192 = arith.truncf %191 : vector<12x128xf32> to vector<12x128xbf16>
    %c0_199 = arith.constant 0 : index
    %c0_200 = arith.constant 0 : index
    %c0_201 = arith.constant 0 : index
    %c0_202 = arith.constant 0 : index
    %193 = vector.load %arg6[%c0_199, %c0_200, %c0_201, %c0_202] : memref<1x5x4x12xbf16, #tpu.memory_space<vmem>>, vector<1x1x4x12xbf16>
    %194 = vector.shape_cast %193 : vector<1x1x4x12xbf16> to vector<4x12xbf16>
    %cst_203 = arith.constant dense<0.000000e+00> : vector<4x128xf32>
    %195 = tpu.matmul %194, %192, %cst_203 {dimension_numbers = #tpu.dot_dimension_numbers<[1], [0], [0], [1], [0, 0, 1, 1], [], []>} : vector<4x12xbf16>, vector<12x128xbf16>, vector<4x128xf32> -> vector<4x128xf32>
    %196 = arith.truncf %195 : vector<4x128xf32> to vector<4x128xbf16>
    %c1_204 = arith.constant 1 : index
    %c0_205 = arith.constant 0 : index
    %c0_206 = arith.constant 0 : index
    %c0_207 = arith.constant 0 : index
    %197 = vector.load %arg4[%c1_204, %c0_205, %c0_206, %c0_207] : memref<2x5x128x128xbf16, #tpu.memory_space<vmem>>, vector<1x1x128x128xbf16>
    %198 = vector.shape_cast %197 : vector<1x1x128x128xbf16> to vector<128x128xbf16>
    %cst_208 = arith.constant dense<0.000000e+00> : vector<4x128xf32>
    %199 = tpu.matmul %196, %198, %cst_208 {dimension_numbers = #tpu.dot_dimension_numbers<[1], [0], [0], [1], [0, 0, 1, 1], [], []>} : vector<4x128xbf16>, vector<128x128xbf16>, vector<4x128xf32> -> vector<4x128xf32>
    %c0_209 = arith.constant 0 : index
    %c1_210 = arith.constant 1 : index
    %c0_211 = arith.constant 0 : index
    %c0_212 = arith.constant 0 : index
    %200 = vector.load %arg6[%c0_209, %c1_210, %c0_211, %c0_212] : memref<1x5x4x12xbf16, #tpu.memory_space<vmem>>, vector<1x1x4x12xbf16>
    %201 = vector.shape_cast %200 : vector<1x1x4x12xbf16> to vector<4x12xbf16>
    %cst_213 = arith.constant dense<0.000000e+00> : vector<4x128xf32>
    %202 = tpu.matmul %201, %192, %cst_213 {dimension_numbers = #tpu.dot_dimension_numbers<[1], [0], [0], [1], [0, 0, 1, 1], [], []>} : vector<4x12xbf16>, vector<12x128xbf16>, vector<4x128xf32> -> vector<4x128xf32>
    %203 = arith.truncf %202 : vector<4x128xf32> to vector<4x128xbf16>
    %c1_214 = arith.constant 1 : index
    %c1_215 = arith.constant 1 : index
    %c0_216 = arith.constant 0 : index
    %c0_217 = arith.constant 0 : index
    %204 = vector.load %arg4[%c1_214, %c1_215, %c0_216, %c0_217] : memref<2x5x128x128xbf16, #tpu.memory_space<vmem>>, vector<1x1x128x128xbf16>
    %205 = vector.shape_cast %204 : vector<1x1x128x128xbf16> to vector<128x128xbf16>
    %cst_218 = arith.constant dense<0.000000e+00> : vector<4x128xf32>
    %206 = tpu.matmul %203, %205, %cst_218 {dimension_numbers = #tpu.dot_dimension_numbers<[1], [0], [0], [1], [0, 0, 1, 1], [], []>} : vector<4x128xbf16>, vector<128x128xbf16>, vector<4x128xf32> -> vector<4x128xf32>
    %207 = arith.addf %199, %206 : vector<4x128xf32>
    %c0_219 = arith.constant 0 : index
    %c2_220 = arith.constant 2 : index
    %c0_221 = arith.constant 0 : index
    %c0_222 = arith.constant 0 : index
    %208 = vector.load %arg6[%c0_219, %c2_220, %c0_221, %c0_222] : memref<1x5x4x12xbf16, #tpu.memory_space<vmem>>, vector<1x1x4x12xbf16>
    %209 = vector.shape_cast %208 : vector<1x1x4x12xbf16> to vector<4x12xbf16>
    %cst_223 = arith.constant dense<0.000000e+00> : vector<4x128xf32>
    %210 = tpu.matmul %209, %192, %cst_223 {dimension_numbers = #tpu.dot_dimension_numbers<[1], [0], [0], [1], [0, 0, 1, 1], [], []>} : vector<4x12xbf16>, vector<12x128xbf16>, vector<4x128xf32> -> vector<4x128xf32>
    %211 = arith.truncf %210 : vector<4x128xf32> to vector<4x128xbf16>
    %c1_224 = arith.constant 1 : index
    %c2_225 = arith.constant 2 : index
    %c0_226 = arith.constant 0 : index
    %c0_227 = arith.constant 0 : index
    %212 = vector.load %arg4[%c1_224, %c2_225, %c0_226, %c0_227] : memref<2x5x128x128xbf16, #tpu.memory_space<vmem>>, vector<1x1x128x128xbf16>
    %213 = vector.shape_cast %212 : vector<1x1x128x128xbf16> to vector<128x128xbf16>
    %cst_228 = arith.constant dense<0.000000e+00> : vector<4x128xf32>
    %214 = tpu.matmul %211, %213, %cst_228 {dimension_numbers = #tpu.dot_dimension_numbers<[1], [0], [0], [1], [0, 0, 1, 1], [], []>} : vector<4x128xbf16>, vector<128x128xbf16>, vector<4x128xf32> -> vector<4x128xf32>
    %215 = arith.addf %207, %214 : vector<4x128xf32>
    %c0_229 = arith.constant 0 : index
    %c3_230 = arith.constant 3 : index
    %c0_231 = arith.constant 0 : index
    %c0_232 = arith.constant 0 : index
    %216 = vector.load %arg6[%c0_229, %c3_230, %c0_231, %c0_232] : memref<1x5x4x12xbf16, #tpu.memory_space<vmem>>, vector<1x1x4x12xbf16>
    %217 = vector.shape_cast %216 : vector<1x1x4x12xbf16> to vector<4x12xbf16>
    %cst_233 = arith.constant dense<0.000000e+00> : vector<4x128xf32>
    %218 = tpu.matmul %217, %192, %cst_233 {dimension_numbers = #tpu.dot_dimension_numbers<[1], [0], [0], [1], [0, 0, 1, 1], [], []>} : vector<4x12xbf16>, vector<12x128xbf16>, vector<4x128xf32> -> vector<4x128xf32>
    %219 = arith.truncf %218 : vector<4x128xf32> to vector<4x128xbf16>
    %c1_234 = arith.constant 1 : index
    %c3_235 = arith.constant 3 : index
    %c0_236 = arith.constant 0 : index
    %c0_237 = arith.constant 0 : index
    %220 = vector.load %arg4[%c1_234, %c3_235, %c0_236, %c0_237] : memref<2x5x128x128xbf16, #tpu.memory_space<vmem>>, vector<1x1x128x128xbf16>
    %221 = vector.shape_cast %220 : vector<1x1x128x128xbf16> to vector<128x128xbf16>
    %cst_238 = arith.constant dense<0.000000e+00> : vector<4x128xf32>
    %222 = tpu.matmul %219, %221, %cst_238 {dimension_numbers = #tpu.dot_dimension_numbers<[1], [0], [0], [1], [0, 0, 1, 1], [], []>} : vector<4x128xbf16>, vector<128x128xbf16>, vector<4x128xf32> -> vector<4x128xf32>
    %223 = arith.addf %215, %222 : vector<4x128xf32>
    %c0_239 = arith.constant 0 : index
    %c4_240 = arith.constant 4 : index
    %c0_241 = arith.constant 0 : index
    %c0_242 = arith.constant 0 : index
    %224 = vector.load %arg6[%c0_239, %c4_240, %c0_241, %c0_242] : memref<1x5x4x12xbf16, #tpu.memory_space<vmem>>, vector<1x1x4x12xbf16>
    %225 = vector.shape_cast %224 : vector<1x1x4x12xbf16> to vector<4x12xbf16>
    %cst_243 = arith.constant dense<0.000000e+00> : vector<4x128xf32>
    %226 = tpu.matmul %225, %192, %cst_243 {dimension_numbers = #tpu.dot_dimension_numbers<[1], [0], [0], [1], [0, 0, 1, 1], [], []>} : vector<4x12xbf16>, vector<12x128xbf16>, vector<4x128xf32> -> vector<4x128xf32>
    %227 = arith.truncf %226 : vector<4x128xf32> to vector<4x128xbf16>
    %c1_244 = arith.constant 1 : index
    %c4_245 = arith.constant 4 : index
    %c0_246 = arith.constant 0 : index
    %c0_247 = arith.constant 0 : index
    %228 = vector.load %arg4[%c1_244, %c4_245, %c0_246, %c0_247] : memref<2x5x128x128xbf16, #tpu.memory_space<vmem>>, vector<1x1x128x128xbf16>
    %229 = vector.shape_cast %228 : vector<1x1x128x128xbf16> to vector<128x128xbf16>
    %cst_248 = arith.constant dense<0.000000e+00> : vector<4x128xf32>
    %230 = tpu.matmul %227, %229, %cst_248 {dimension_numbers = #tpu.dot_dimension_numbers<[1], [0], [0], [1], [0, 0, 1, 1], [], []>} : vector<4x128xbf16>, vector<128x128xbf16>, vector<4x128xf32> -> vector<4x128xf32>
    %231 = arith.addf %223, %230 : vector<4x128xf32>
    %c10_249 = arith.constant 10 : index
    %c0_250 = arith.constant 0 : index
    %232 = vector.load %arg11[%c10_249, %c0_250] : memref<26x512xf32, #tpu.memory_space<vmem>>, vector<1x128xf32>
    %233 = vector.broadcast %232 : vector<1x128xf32> to vector<4x128xf32>
    %234 = arith.mulf %231, %233 : vector<4x128xf32>
    %c11 = arith.constant 11 : index
    %c0_251 = arith.constant 0 : index
    %235 = vector.load %arg11[%c11, %c0_251] : memref<26x512xf32, #tpu.memory_space<vmem>>, vector<1x128xf32>
    %236 = vector.broadcast %235 : vector<1x128xf32> to vector<4x128xf32>
    %237 = arith.addf %234, %236 : vector<4x128xf32>
    %cst_252 = arith.constant 0.000000e+00 : f32
    %238 = vector.broadcast %cst_252 : f32 to vector<4x128xf32>
    %239 = arith.cmpf oge, %237, %238 : vector<4x128xf32>
    %cst_253 = arith.constant 0.00999999977 : f32
    %240 = vector.broadcast %cst_253 : f32 to vector<4x128xf32>
    %241 = arith.mulf %240, %237 : vector<4x128xf32>
    %242 = arith.select %239, %237, %241 : vector<4x128xi1>, vector<4x128xf32>
    %cst_254 = arith.constant 0.000000e+00 : f32
    %243 = vector.broadcast %cst_254 : f32 to vector<1x128xf32>
    %c0_255 = arith.constant 0 : index
    %c0_256 = arith.constant 0 : index
    %244 = vector.load %arg25[%c0_255, %c0_256] : memref<6x128xf32, #tpu.memory_space<vmem>>, vector<1x128xf32>
    tpu.vector_store %arg25[%c0_255, %c0_256], %243 {strides = array<i32>} : memref<6x128xf32, #tpu.memory_space<vmem>>, vector<1x128xf32>,
    %c5_257 = arith.constant 5 : index
    %c0_258 = arith.constant 0 : index
    %245 = vector.load %arg25[%c5_257, %c0_258] : memref<6x128xf32, #tpu.memory_space<vmem>>, vector<1x128xf32>
    tpu.vector_store %arg25[%c5_257, %c0_258], %243 {strides = array<i32>} : memref<6x128xf32, #tpu.memory_space<vmem>>, vector<1x128xf32>,
    %c1_259 = arith.constant 1 : index
    %c0_260 = arith.constant 0 : index
    %246 = vector.load %arg25[%c1_259, %c0_260] : memref<6x128xf32, #tpu.memory_space<vmem>>, vector<4x128xf32>
    tpu.vector_store %arg25[%c1_259, %c0_260], %242 {strides = array<i32>} : memref<6x128xf32, #tpu.memory_space<vmem>>, vector<4x128xf32>,
    %c0_261 = arith.constant 0 : index
    %c0_262 = arith.constant 0 : index
    %247 = vector.load %arg25[%c0_261, %c0_262] : memref<6x128xf32, #tpu.memory_space<vmem>>, vector<4x128xf32>
    %248 = arith.truncf %247 : vector<4x128xf32> to vector<4x128xbf16>
    %c3_263 = arith.constant 3 : index
    %c0_264 = arith.constant 0 : index
    %c0_265 = arith.constant 0 : index
    %c0_266 = arith.constant 0 : index
    %249 = vector.load %arg3[%c3_263, %c0_264, %c0_265, %c0_266] : memref<5x3x128x128xbf16, #tpu.memory_space<vmem>>, vector<1x1x128x128xbf16>
    %250 = vector.shape_cast %249 : vector<1x1x128x128xbf16> to vector<128x128xbf16>
    %cst_267 = arith.constant dense<0.000000e+00> : vector<4x128xf32>
    %251 = tpu.matmul %248, %250, %cst_267 {dimension_numbers = #tpu.dot_dimension_numbers<[1], [0], [0], [1], [0, 0, 1, 1], [], []>} : vector<4x128xbf16>, vector<128x128xbf16>, vector<4x128xf32> -> vector<4x128xf32>
    %c1_268 = arith.constant 1 : index
    %c0_269 = arith.constant 0 : index
    %252 = vector.load %arg25[%c1_268, %c0_269] : memref<6x128xf32, #tpu.memory_space<vmem>>, vector<4x128xf32>
    %253 = arith.truncf %252 : vector<4x128xf32> to vector<4x128xbf16>
    %c3_270 = arith.constant 3 : index
    %c1_271 = arith.constant 1 : index
    %c0_272 = arith.constant 0 : index
    %c0_273 = arith.constant 0 : index
    %254 = vector.load %arg3[%c3_270, %c1_271, %c0_272, %c0_273] : memref<5x3x128x128xbf16, #tpu.memory_space<vmem>>, vector<1x1x128x128xbf16>
    %255 = vector.shape_cast %254 : vector<1x1x128x128xbf16> to vector<128x128xbf16>
    %cst_274 = arith.constant dense<0.000000e+00> : vector<4x128xf32>
    %256 = tpu.matmul %253, %255, %cst_274 {dimension_numbers = #tpu.dot_dimension_numbers<[1], [0], [0], [1], [0, 0, 1, 1], [], []>} : vector<4x128xbf16>, vector<128x128xbf16>, vector<4x128xf32> -> vector<4x128xf32>
    %257 = arith.addf %251, %256 : vector<4x128xf32>
    %c2_275 = arith.constant 2 : index
    %c0_276 = arith.constant 0 : index
    %258 = vector.load %arg25[%c2_275, %c0_276] : memref<6x128xf32, #tpu.memory_space<vmem>>, vector<4x128xf32>
    %259 = arith.truncf %258 : vector<4x128xf32> to vector<4x128xbf16>
    %c3_277 = arith.constant 3 : index
    %c2_278 = arith.constant 2 : index
    %c0_279 = arith.constant 0 : index
    %c0_280 = arith.constant 0 : index
    %260 = vector.load %arg3[%c3_277, %c2_278, %c0_279, %c0_280] : memref<5x3x128x128xbf16, #tpu.memory_space<vmem>>, vector<1x1x128x128xbf16>
    %261 = vector.shape_cast %260 : vector<1x1x128x128xbf16> to vector<128x128xbf16>
    %cst_281 = arith.constant dense<0.000000e+00> : vector<4x128xf32>
    %262 = tpu.matmul %259, %261, %cst_281 {dimension_numbers = #tpu.dot_dimension_numbers<[1], [0], [0], [1], [0, 0, 1, 1], [], []>} : vector<4x128xbf16>, vector<128x128xbf16>, vector<4x128xf32> -> vector<4x128xf32>
    %263 = arith.addf %257, %262 : vector<4x128xf32>
    %c12 = arith.constant 12 : index
    %c0_282 = arith.constant 0 : index
    %264 = vector.load %arg11[%c12, %c0_282] : memref<26x512xf32, #tpu.memory_space<vmem>>, vector<1x128xf32>
    %265 = vector.broadcast %264 : vector<1x128xf32> to vector<4x128xf32>
    %266 = arith.mulf %263, %265 : vector<4x128xf32>
    %c13 = arith.constant 13 : index
    %c0_283 = arith.constant 0 : index
    %267 = vector.load %arg11[%c13, %c0_283] : memref<26x512xf32, #tpu.memory_space<vmem>>, vector<1x128xf32>
    %268 = vector.broadcast %267 : vector<1x128xf32> to vector<4x128xf32>
    %269 = arith.addf %266, %268 : vector<4x128xf32>
    %cst_284 = arith.constant 0.000000e+00 : f32
    %270 = vector.broadcast %cst_284 : f32 to vector<4x128xf32>
    %271 = arith.cmpf oge, %269, %270 : vector<4x128xf32>
    %cst_285 = arith.constant 0.00999999977 : f32
    %272 = vector.broadcast %cst_285 : f32 to vector<4x128xf32>
    %273 = arith.mulf %272, %269 : vector<4x128xf32>
    %274 = arith.select %271, %269, %273 : vector<4x128xi1>, vector<4x128xf32>
    %cst_286 = arith.constant 0.000000e+00 : f32
    %275 = vector.broadcast %cst_286 : f32 to vector<1x128xf32>
    %c0_287 = arith.constant 0 : index
    %c0_288 = arith.constant 0 : index
    %276 = vector.load %arg26[%c0_287, %c0_288] : memref<6x128xf32, #tpu.memory_space<vmem>>, vector<1x128xf32>
    tpu.vector_store %arg26[%c0_287, %c0_288], %275 {strides = array<i32>} : memref<6x128xf32, #tpu.memory_space<vmem>>, vector<1x128xf32>,
    %c5_289 = arith.constant 5 : index
    %c0_290 = arith.constant 0 : index
    %277 = vector.load %arg26[%c5_289, %c0_290] : memref<6x128xf32, #tpu.memory_space<vmem>>, vector<1x128xf32>
    tpu.vector_store %arg26[%c5_289, %c0_290], %275 {strides = array<i32>} : memref<6x128xf32, #tpu.memory_space<vmem>>, vector<1x128xf32>,
    %c1_291 = arith.constant 1 : index
    %c0_292 = arith.constant 0 : index
    %278 = vector.load %arg26[%c1_291, %c0_292] : memref<6x128xf32, #tpu.memory_space<vmem>>, vector<4x128xf32>
    tpu.vector_store %arg26[%c1_291, %c0_292], %274 {strides = array<i32>} : memref<6x128xf32, #tpu.memory_space<vmem>>, vector<4x128xf32>,
    %c0_293 = arith.constant 0 : index
    %c0_294 = arith.constant 0 : index
    %279 = vector.load %arg26[%c0_293, %c0_294] : memref<6x128xf32, #tpu.memory_space<vmem>>, vector<4x128xf32>
    %280 = arith.truncf %279 : vector<4x128xf32> to vector<4x128xbf16>
    %c4_295 = arith.constant 4 : index
    %c0_296 = arith.constant 0 : index
    %c0_297 = arith.constant 0 : index
    %c0_298 = arith.constant 0 : index
    %281 = vector.load %arg3[%c4_295, %c0_296, %c0_297, %c0_298] : memref<5x3x128x128xbf16, #tpu.memory_space<vmem>>, vector<1x1x128x128xbf16>
    %282 = vector.shape_cast %281 : vector<1x1x128x128xbf16> to vector<128x128xbf16>
    %cst_299 = arith.constant dense<0.000000e+00> : vector<4x128xf32>
    %283 = tpu.matmul %280, %282, %cst_299 {dimension_numbers = #tpu.dot_dimension_numbers<[1], [0], [0], [1], [0, 0, 1, 1], [], []>} : vector<4x128xbf16>, vector<128x128xbf16>, vector<4x128xf32> -> vector<4x128xf32>
    %c1_300 = arith.constant 1 : index
    %c0_301 = arith.constant 0 : index
    %284 = vector.load %arg26[%c1_300, %c0_301] : memref<6x128xf32, #tpu.memory_space<vmem>>, vector<4x128xf32>
    %285 = arith.truncf %284 : vector<4x128xf32> to vector<4x128xbf16>
    %c4_302 = arith.constant 4 : index
    %c1_303 = arith.constant 1 : index
    %c0_304 = arith.constant 0 : index
    %c0_305 = arith.constant 0 : index
    %286 = vector.load %arg3[%c4_302, %c1_303, %c0_304, %c0_305] : memref<5x3x128x128xbf16, #tpu.memory_space<vmem>>, vector<1x1x128x128xbf16>
    %287 = vector.shape_cast %286 : vector<1x1x128x128xbf16> to vector<128x128xbf16>
    %cst_306 = arith.constant dense<0.000000e+00> : vector<4x128xf32>
    %288 = tpu.matmul %285, %287, %cst_306 {dimension_numbers = #tpu.dot_dimension_numbers<[1], [0], [0], [1], [0, 0, 1, 1], [], []>} : vector<4x128xbf16>, vector<128x128xbf16>, vector<4x128xf32> -> vector<4x128xf32>
    %289 = arith.addf %283, %288 : vector<4x128xf32>
    %c2_307 = arith.constant 2 : index
    %c0_308 = arith.constant 0 : index
    %290 = vector.load %arg26[%c2_307, %c0_308] : memref<6x128xf32, #tpu.memory_space<vmem>>, vector<4x128xf32>
    %291 = arith.truncf %290 : vector<4x128xf32> to vector<4x128xbf16>
    %c4_309 = arith.constant 4 : index
    %c2_310 = arith.constant 2 : index
    %c0_311 = arith.constant 0 : index
    %c0_312 = arith.constant 0 : index
    %292 = vector.load %arg3[%c4_309, %c2_310, %c0_311, %c0_312] : memref<5x3x128x128xbf16, #tpu.memory_space<vmem>>, vector<1x1x128x128xbf16>
    %293 = vector.shape_cast %292 : vector<1x1x128x128xbf16> to vector<128x128xbf16>
    %cst_313 = arith.constant dense<0.000000e+00> : vector<4x128xf32>
    %294 = tpu.matmul %291, %293, %cst_313 {dimension_numbers = #tpu.dot_dimension_numbers<[1], [0], [0], [1], [0, 0, 1, 1], [], []>} : vector<4x128xbf16>, vector<128x128xbf16>, vector<4x128xf32> -> vector<4x128xf32>
    %295 = arith.addf %289, %294 : vector<4x128xf32>
    %c14 = arith.constant 14 : index
    %c0_314 = arith.constant 0 : index
    %296 = vector.load %arg11[%c14, %c0_314] : memref<26x512xf32, #tpu.memory_space<vmem>>, vector<1x128xf32>
    %297 = vector.broadcast %296 : vector<1x128xf32> to vector<4x128xf32>
    %298 = arith.mulf %295, %297 : vector<4x128xf32>
    %c15 = arith.constant 15 : index
    %c0_315 = arith.constant 0 : index
    %299 = vector.load %arg11[%c15, %c0_315] : memref<26x512xf32, #tpu.memory_space<vmem>>, vector<1x128xf32>
    %300 = vector.broadcast %299 : vector<1x128xf32> to vector<4x128xf32>
    %301 = arith.addf %298, %300 : vector<4x128xf32>
    %cst_316 = arith.constant 0.000000e+00 : f32
    %302 = vector.broadcast %cst_316 : f32 to vector<4x128xf32>
    %303 = arith.cmpf oge, %301, %302 : vector<4x128xf32>
    %cst_317 = arith.constant 0.00999999977 : f32
    %304 = vector.broadcast %cst_317 : f32 to vector<4x128xf32>
    %305 = arith.mulf %304, %301 : vector<4x128xf32>
    %306 = arith.select %303, %301, %305 : vector<4x128xi1>, vector<4x128xf32>
    %307 = arith.truncf %306 : vector<4x128xf32> to vector<4x128xbf16>
    %c0_318 = arith.constant 0 : index
    %c0_319 = arith.constant 0 : index
    %c0_320 = arith.constant 0 : index
    %c0_321 = arith.constant 0 : index
    %308 = vector.load %arg7[%c0_318, %c0_319, %c0_320, %c0_321] : memref<1x1x128x128xbf16, #tpu.memory_space<vmem>>, vector<1x1x128x128xbf16>
    %309 = vector.shape_cast %308 : vector<1x1x128x128xbf16> to vector<128x128xbf16>
    %cst_322 = arith.constant dense<0.000000e+00> : vector<4x128xf32>
    %310 = tpu.matmul %307, %309, %cst_322 {dimension_numbers = #tpu.dot_dimension_numbers<[1], [0], [0], [1], [0, 0, 1, 1], [], []>} : vector<4x128xbf16>, vector<128x128xbf16>, vector<4x128xf32> -> vector<4x128xf32>
    %c16 = arith.constant 16 : index
    %c0_323 = arith.constant 0 : index
    %311 = vector.load %arg11[%c16, %c0_323] : memref<26x512xf32, #tpu.memory_space<vmem>>, vector<1x128xf32>
    %312 = vector.broadcast %311 : vector<1x128xf32> to vector<4x128xf32>
    %313 = arith.mulf %310, %312 : vector<4x128xf32>
    %c17_324 = arith.constant 17 : index
    %c0_325 = arith.constant 0 : index
    %314 = vector.load %arg11[%c17_324, %c0_325] : memref<26x512xf32, #tpu.memory_space<vmem>>, vector<1x128xf32>
    %315 = vector.broadcast %314 : vector<1x128xf32> to vector<4x128xf32>
    %316 = arith.addf %313, %315 : vector<4x128xf32>
    %317 = arith.truncf %186 : vector<8x128xf32> to vector<8x128xbf16>
    %c0_326 = arith.constant 0 : index
    %c0_327 = arith.constant 0 : index
    %c0_328 = arith.constant 0 : index
    %c0_329 = arith.constant 0 : index
    %318 = vector.load %arg8[%c0_326, %c0_327, %c0_328, %c0_329] : memref<1x1x128x256xbf16, #tpu.memory_space<vmem>>, vector<1x1x128x256xbf16>
    %319 = vector.shape_cast %318 : vector<1x1x128x256xbf16> to vector<128x256xbf16>
    %cst_330 = arith.constant dense<0.000000e+00> : vector<8x256xf32>
    %320 = tpu.matmul %317, %319, %cst_330 {dimension_numbers = #tpu.dot_dimension_numbers<[1], [0], [0], [1], [0, 0, 1, 1], [], []>} : vector<8x128xbf16>, vector<128x256xbf16>, vector<8x256xf32> -> vector<8x256xf32>
    %c18_331 = arith.constant 18 : index
    %c0_332 = arith.constant 0 : index
    %321 = vector.load %arg11[%c18_331, %c0_332] : memref<26x512xf32, #tpu.memory_space<vmem>>, vector<1x256xf32>
    %322 = vector.broadcast %321 : vector<1x256xf32> to vector<8x256xf32>
    %323 = arith.mulf %320, %322 : vector<8x256xf32>
    %c19 = arith.constant 19 : index
    %c0_333 = arith.constant 0 : index
    %324 = vector.load %arg11[%c19, %c0_333] : memref<26x512xf32, #tpu.memory_space<vmem>>, vector<1x256xf32>
    %325 = vector.broadcast %324 : vector<1x256xf32> to vector<8x256xf32>
    %326 = arith.addf %323, %325 : vector<8x256xf32>
    %327 = arith.truncf %316 : vector<4x128xf32> to vector<4x128xbf16>
    %c0_334 = arith.constant 0 : index
    %c0_335 = arith.constant 0 : index
    %328 = vector.load %arg13[%c0_334, %c0_335] : memref<128x256xbf16, #tpu.memory_space<vmem>>, vector<128x256xbf16>
    %cst_336 = arith.constant dense<0.000000e+00> : vector<4x256xf32>
    %329 = tpu.matmul %327, %328, %cst_336 {dimension_numbers = #tpu.dot_dimension_numbers<[1], [0], [0], [1], [0, 0, 1, 1], [], []>} : vector<4x128xbf16>, vector<128x256xbf16>, vector<4x256xf32> -> vector<4x256xf32>
    %c0_337 = arith.constant 0 : index
    %c0_338 = arith.constant 0 : index
    %330 = vector.load %arg12[%c0_337, %c0_338] : memref<8x4xbf16, #tpu.memory_space<vmem>>, vector<8x4xbf16>
    %331 = arith.truncf %329 : vector<4x256xf32> to vector<4x256xbf16>
    %cst_339 = arith.constant dense<0.000000e+00> : vector<8x256xf32>
    %332 = tpu.matmul %330, %331, %cst_339 {dimension_numbers = #tpu.dot_dimension_numbers<[1], [0], [0], [1], [0, 0, 1, 1], [], []>} : vector<8x4xbf16>, vector<4x256xbf16>, vector<8x256xf32> -> vector<8x256xf32>
    %333 = arith.addf %332, %326 : vector<8x256xf32>
    %334 = arith.truncf %66 : vector<16x128xf32> to vector<16x128xbf16>
    %c0_340 = arith.constant 0 : index
    %c0_341 = arith.constant 0 : index
    %c0_342 = arith.constant 0 : index
    %c0_343 = arith.constant 0 : index
    %335 = vector.load %arg9[%c0_340, %c0_341, %c0_342, %c0_343] : memref<1x1x128x512xbf16, #tpu.memory_space<vmem>>, vector<1x1x128x512xbf16>
    %336 = vector.shape_cast %335 : vector<1x1x128x512xbf16> to vector<128x512xbf16>
    %cst_344 = arith.constant dense<0.000000e+00> : vector<16x512xf32>
    %337 = tpu.matmul %334, %336, %cst_344 {dimension_numbers = #tpu.dot_dimension_numbers<[1], [0], [0], [1], [0, 0, 1, 1], [], []>} : vector<16x128xbf16>, vector<128x512xbf16>, vector<16x512xf32> -> vector<16x512xf32>
    %c20 = arith.constant 20 : index
    %c0_345 = arith.constant 0 : index
    %338 = vector.load %arg11[%c20, %c0_345] : memref<26x512xf32, #tpu.memory_space<vmem>>, vector<1x512xf32>
    %339 = vector.broadcast %338 : vector<1x512xf32> to vector<16x512xf32>
    %340 = arith.mulf %337, %339 : vector<16x512xf32>
    %c21 = arith.constant 21 : index
    %c0_346 = arith.constant 0 : index
    %341 = vector.load %arg11[%c21, %c0_346] : memref<26x512xf32, #tpu.memory_space<vmem>>, vector<1x512xf32>
    %342 = vector.broadcast %341 : vector<1x512xf32> to vector<16x512xf32>
    %343 = arith.addf %340, %342 : vector<16x512xf32>
    %344 = arith.truncf %333 : vector<8x256xf32> to vector<8x256xbf16>
    %c0_347 = arith.constant 0 : index
    %c0_348 = arith.constant 0 : index
    %345 = vector.load %arg15[%c0_347, %c0_348] : memref<256x512xbf16, #tpu.memory_space<vmem>>, vector<256x512xbf16>
    %cst_349 = arith.constant dense<0.000000e+00> : vector<8x512xf32>
    %346 = tpu.matmul %344, %345, %cst_349 {dimension_numbers = #tpu.dot_dimension_numbers<[1], [0], [0], [1], [0, 0, 1, 1], [], []>} : vector<8x256xbf16>, vector<256x512xbf16>, vector<8x512xf32> -> vector<8x512xf32>
    %c0_350 = arith.constant 0 : index
    %c0_351 = arith.constant 0 : index
    %347 = vector.load %arg14[%c0_350, %c0_351] : memref<16x8xbf16, #tpu.memory_space<vmem>>, vector<16x8xbf16>
    %348 = arith.truncf %346 : vector<8x512xf32> to vector<8x512xbf16>
    %cst_352 = arith.constant dense<0.000000e+00> : vector<16x512xf32>
    %349 = tpu.matmul %347, %348, %cst_352 {dimension_numbers = #tpu.dot_dimension_numbers<[1], [0], [0], [1], [0, 0, 1, 1], [], []>} : vector<16x8xbf16>, vector<8x512xbf16>, vector<16x512xf32> -> vector<16x512xf32>
    %350 = arith.addf %349, %343 : vector<16x512xf32>
    %cst_353 = arith.constant 0.000000e+00 : f32
    %351 = vector.broadcast %cst_353 : f32 to vector<1x256xf32>
    %c0_354 = arith.constant 0 : index
    %c0_355 = arith.constant 0 : index
    %352 = vector.load %arg27[%c0_354, %c0_355] : memref<10x256xf32, #tpu.memory_space<vmem>>, vector<1x256xf32>
    tpu.vector_store %arg27[%c0_354, %c0_355], %351 {strides = array<i32>} : memref<10x256xf32, #tpu.memory_space<vmem>>, vector<1x256xf32>,
    %c9_356 = arith.constant 9 : index
    %c0_357 = arith.constant 0 : index
    %353 = vector.load %arg27[%c9_356, %c0_357] : memref<10x256xf32, #tpu.memory_space<vmem>>, vector<1x256xf32>
    tpu.vector_store %arg27[%c9_356, %c0_357], %351 {strides = array<i32>} : memref<10x256xf32, #tpu.memory_space<vmem>>, vector<1x256xf32>,
    %c1_358 = arith.constant 1 : index
    %c0_359 = arith.constant 0 : index
    %354 = vector.load %arg27[%c1_358, %c0_359] : memref<10x256xf32, #tpu.memory_space<vmem>>, vector<8x256xf32>
    tpu.vector_store %arg27[%c1_358, %c0_359], %333 {strides = array<i32>} : memref<10x256xf32, #tpu.memory_space<vmem>>, vector<8x256xf32>,
    %cst_360 = arith.constant 0.000000e+00 : f32
    %355 = vector.broadcast %cst_360 : f32 to vector<1x512xf32>
    %c0_361 = arith.constant 0 : index
    %c0_362 = arith.constant 0 : index
    %356 = vector.load %arg28[%c0_361, %c0_362] : memref<18x512xf32, #tpu.memory_space<vmem>>, vector<1x512xf32>
    tpu.vector_store %arg28[%c0_361, %c0_362], %355 {strides = array<i32>} : memref<18x512xf32, #tpu.memory_space<vmem>>, vector<1x512xf32>,
    %c17_363 = arith.constant 17 : index
    %c0_364 = arith.constant 0 : index
    %357 = vector.load %arg28[%c17_363, %c0_364] : memref<18x512xf32, #tpu.memory_space<vmem>>, vector<1x512xf32>
    tpu.vector_store %arg28[%c17_363, %c0_364], %355 {strides = array<i32>} : memref<18x512xf32, #tpu.memory_space<vmem>>, vector<1x512xf32>,
    %c1_365 = arith.constant 1 : index
    %c0_366 = arith.constant 0 : index
    %358 = vector.load %arg28[%c1_365, %c0_366] : memref<18x512xf32, #tpu.memory_space<vmem>>, vector<16x512xf32>
    tpu.vector_store %arg28[%c1_365, %c0_366], %350 {strides = array<i32>} : memref<18x512xf32, #tpu.memory_space<vmem>>, vector<16x512xf32>,
    %c0_367 = arith.constant 0 : index
    %c0_368 = arith.constant 0 : index
    %c0_369 = arith.constant 0 : index
    %359 = vector.load %arg18[%c0_367, %c0_368, %c0_369] : memref<1x4x128xf32, #tpu.memory_space<vmem>>, vector<1x4x128xf32>
    %360 = vector.shape_cast %359 : vector<1x4x128xf32> to vector<4x128xf32>
    %361 = vector.shape_cast %316 : vector<4x128xf32> to vector<1x4x128xf32>
    tpu.vector_store %arg18[%c0_367, %c0_368, %c0_369], %361 {strides = array<i32>} : memref<1x4x128xf32, #tpu.memory_space<vmem>>, vector<1x4x128xf32>,
    %c0_370 = arith.constant 0 : index
    %c0_371 = arith.constant 0 : index
    %362 = vector.load %arg27[%c0_370, %c0_371] : memref<10x256xf32, #tpu.memory_space<vmem>>, vector<8x256xf32>
    %363 = arith.truncf %362 : vector<8x256xf32> to vector<8x256xbf16>
    %c0_372 = arith.constant 0 : index
    %c0_373 = arith.constant 0 : index
    %c0_374 = arith.constant 0 : index
    %c0_375 = arith.constant 0 : index
    %364 = vector.load %arg10[%c0_372, %c0_373, %c0_374, %c0_375] : memref<1x3x256x128xbf16, #tpu.memory_space<vmem>>, vector<1x1x256x128xbf16>
    %365 = vector.shape_cast %364 : vector<1x1x256x128xbf16> to vector<256x128xbf16>
    %cst_376 = arith.constant dense<0.000000e+00> : vector<8x128xf32>
    %366 = tpu.matmul %363, %365, %cst_376 {dimension_numbers = #tpu.dot_dimension_numbers<[1], [0], [0], [1], [0, 0, 1, 1], [], []>} : vector<8x256xbf16>, vector<256x128xbf16>, vector<8x128xf32> -> vector<8x128xf32>
    %c1_377 = arith.constant 1 : index
    %c0_378 = arith.constant 0 : index
    %367 = vector.load %arg27[%c1_377, %c0_378] : memref<10x256xf32, #tpu.memory_space<vmem>>, vector<8x256xf32>
    %368 = arith.truncf %367 : vector<8x256xf32> to vector<8x256xbf16>
    %c0_379 = arith.constant 0 : index
    %c1_380 = arith.constant 1 : index
    %c0_381 = arith.constant 0 : index
    %c0_382 = arith.constant 0 : index
    %369 = vector.load %arg10[%c0_379, %c1_380, %c0_381, %c0_382] : memref<1x3x256x128xbf16, #tpu.memory_space<vmem>>, vector<1x1x256x128xbf16>
    %370 = vector.shape_cast %369 : vector<1x1x256x128xbf16> to vector<256x128xbf16>
    %cst_383 = arith.constant dense<0.000000e+00> : vector<8x128xf32>
    %371 = tpu.matmul %368, %370, %cst_383 {dimension_numbers = #tpu.dot_dimension_numbers<[1], [0], [0], [1], [0, 0, 1, 1], [], []>} : vector<8x256xbf16>, vector<256x128xbf16>, vector<8x128xf32> -> vector<8x128xf32>
    %372 = arith.addf %366, %371 : vector<8x128xf32>
    %c2_384 = arith.constant 2 : index
    %c0_385 = arith.constant 0 : index
    %373 = vector.load %arg27[%c2_384, %c0_385] : memref<10x256xf32, #tpu.memory_space<vmem>>, vector<8x256xf32>
    %374 = arith.truncf %373 : vector<8x256xf32> to vector<8x256xbf16>
    %c0_386 = arith.constant 0 : index
    %c2_387 = arith.constant 2 : index
    %c0_388 = arith.constant 0 : index
    %c0_389 = arith.constant 0 : index
    %375 = vector.load %arg10[%c0_386, %c2_387, %c0_388, %c0_389] : memref<1x3x256x128xbf16, #tpu.memory_space<vmem>>, vector<1x1x256x128xbf16>
    %376 = vector.shape_cast %375 : vector<1x1x256x128xbf16> to vector<256x128xbf16>
    %cst_390 = arith.constant dense<0.000000e+00> : vector<8x128xf32>
    %377 = tpu.matmul %374, %376, %cst_390 {dimension_numbers = #tpu.dot_dimension_numbers<[1], [0], [0], [1], [0, 0, 1, 1], [], []>} : vector<8x256xbf16>, vector<256x128xbf16>, vector<8x128xf32> -> vector<8x128xf32>
    %378 = arith.addf %372, %377 : vector<8x128xf32>
    %c22 = arith.constant 22 : index
    %c0_391 = arith.constant 0 : index
    %379 = vector.load %arg11[%c22, %c0_391] : memref<26x512xf32, #tpu.memory_space<vmem>>, vector<1x128xf32>
    %380 = vector.broadcast %379 : vector<1x128xf32> to vector<8x128xf32>
    %381 = arith.mulf %378, %380 : vector<8x128xf32>
    %c23 = arith.constant 23 : index
    %c0_392 = arith.constant 0 : index
    %382 = vector.load %arg11[%c23, %c0_392] : memref<26x512xf32, #tpu.memory_space<vmem>>, vector<1x128xf32>
    %383 = vector.broadcast %382 : vector<1x128xf32> to vector<8x128xf32>
    %384 = arith.addf %381, %383 : vector<8x128xf32>
    %c0_393 = arith.constant 0 : index
    %c0_394 = arith.constant 0 : index
    %c0_395 = arith.constant 0 : index
    %385 = vector.load %arg17[%c0_393, %c0_394, %c0_395] : memref<1x8x128xf32, #tpu.memory_space<vmem>>, vector<1x8x128xf32>
    %386 = vector.shape_cast %385 : vector<1x8x128xf32> to vector<8x128xf32>
    %387 = vector.shape_cast %384 : vector<8x128xf32> to vector<1x8x128xf32>
    tpu.vector_store %arg17[%c0_393, %c0_394, %c0_395], %387 {strides = array<i32>} : memref<1x8x128xf32, #tpu.memory_space<vmem>>, vector<1x8x128xf32>,
    %c0_396 = arith.constant 0 : index
    %c0_397 = arith.constant 0 : index
    %388 = vector.load %arg28[%c0_396, %c0_397] : memref<18x512xf32, #tpu.memory_space<vmem>>, vector<16x512xf32>
    %389 = arith.truncf %388 : vector<16x512xf32> to vector<16x512xbf16>
    %c1_398 = arith.constant 1 : index
    %c0_399 = arith.constant 0 : index
    %c0_400 = arith.constant 0 : index
    %c0_401 = arith.constant 0 : index
    %390 = vector.load %arg2[%c1_398, %c0_399, %c0_400, %c0_401] : memref<2x3x512x128xbf16, #tpu.memory_space<vmem>>, vector<1x1x512x128xbf16>
    %391 = vector.shape_cast %390 : vector<1x1x512x128xbf16> to vector<512x128xbf16>
    %cst_402 = arith.constant dense<0.000000e+00> : vector<16x128xf32>
    %392 = tpu.matmul %389, %391, %cst_402 {dimension_numbers = #tpu.dot_dimension_numbers<[1], [0], [0], [1], [0, 0, 1, 1], [], []>} : vector<16x512xbf16>, vector<512x128xbf16>, vector<16x128xf32> -> vector<16x128xf32>
    %c1_403 = arith.constant 1 : index
    %c0_404 = arith.constant 0 : index
    %393 = vector.load %arg28[%c1_403, %c0_404] : memref<18x512xf32, #tpu.memory_space<vmem>>, vector<16x512xf32>
    %394 = arith.truncf %393 : vector<16x512xf32> to vector<16x512xbf16>
    %c1_405 = arith.constant 1 : index
    %c1_406 = arith.constant 1 : index
    %c0_407 = arith.constant 0 : index
    %c0_408 = arith.constant 0 : index
    %395 = vector.load %arg2[%c1_405, %c1_406, %c0_407, %c0_408] : memref<2x3x512x128xbf16, #tpu.memory_space<vmem>>, vector<1x1x512x128xbf16>
    %396 = vector.shape_cast %395 : vector<1x1x512x128xbf16> to vector<512x128xbf16>
    %cst_409 = arith.constant dense<0.000000e+00> : vector<16x128xf32>
    %397 = tpu.matmul %394, %396, %cst_409 {dimension_numbers = #tpu.dot_dimension_numbers<[1], [0], [0], [1], [0, 0, 1, 1], [], []>} : vector<16x512xbf16>, vector<512x128xbf16>, vector<16x128xf32> -> vector<16x128xf32>
    %398 = arith.addf %392, %397 : vector<16x128xf32>
    %c2_410 = arith.constant 2 : index
    %c0_411 = arith.constant 0 : index
    %399 = vector.load %arg28[%c2_410, %c0_411] : memref<18x512xf32, #tpu.memory_space<vmem>>, vector<16x512xf32>
    %400 = arith.truncf %399 : vector<16x512xf32> to vector<16x512xbf16>
    %c1_412 = arith.constant 1 : index
    %c2_413 = arith.constant 2 : index
    %c0_414 = arith.constant 0 : index
    %c0_415 = arith.constant 0 : index
    %401 = vector.load %arg2[%c1_412, %c2_413, %c0_414, %c0_415] : memref<2x3x512x128xbf16, #tpu.memory_space<vmem>>, vector<1x1x512x128xbf16>
    %402 = vector.shape_cast %401 : vector<1x1x512x128xbf16> to vector<512x128xbf16>
    %cst_416 = arith.constant dense<0.000000e+00> : vector<16x128xf32>
    %403 = tpu.matmul %400, %402, %cst_416 {dimension_numbers = #tpu.dot_dimension_numbers<[1], [0], [0], [1], [0, 0, 1, 1], [], []>} : vector<16x512xbf16>, vector<512x128xbf16>, vector<16x128xf32> -> vector<16x128xf32>
    %404 = arith.addf %398, %403 : vector<16x128xf32>
    %c24 = arith.constant 24 : index
    %c0_417 = arith.constant 0 : index
    %405 = vector.load %arg11[%c24, %c0_417] : memref<26x512xf32, #tpu.memory_space<vmem>>, vector<1x128xf32>
    %406 = vector.broadcast %405 : vector<1x128xf32> to vector<16x128xf32>
    %407 = arith.mulf %404, %406 : vector<16x128xf32>
    %c25 = arith.constant 25 : index
    %c0_418 = arith.constant 0 : index
    %408 = vector.load %arg11[%c25, %c0_418] : memref<26x512xf32, #tpu.memory_space<vmem>>, vector<1x128xf32>
    %409 = vector.broadcast %408 : vector<1x128xf32> to vector<16x128xf32>
    %410 = arith.addf %407, %409 : vector<16x128xf32>
    %c0_419 = arith.constant 0 : index
    %c0_420 = arith.constant 0 : index
    %c0_421 = arith.constant 0 : index
    %411 = vector.load %arg16[%c0_419, %c0_420, %c0_421] : memref<1x16x128xf32, #tpu.memory_space<vmem>>, vector<1x16x128xf32>
    %412 = vector.shape_cast %411 : vector<1x16x128xf32> to vector<16x128xf32>
    %413 = vector.shape_cast %410 : vector<16x128xf32> to vector<1x16x128xf32>
    tpu.vector_store %arg16[%c0_419, %c0_420, %c0_421], %413 {strides = array<i32>} : memref<1x16x128xf32, #tpu.memory_space<vmem>>, vector<1x16x128xf32>,
    return
  }
  func.func @transform_0(%arg0: i32) -> (i32, i32, i32) {
    %c0_i32 = arith.constant 0 : i32
    %c0_i32_0 = arith.constant 0 : i32
    %c0_i32_1 = arith.constant 0 : i32
    return %arg0, %c0_i32, %c0_i32_0 : i32, i32, i32
  }
  func.func @transform_1(%arg0: i32) -> (i32, i32, i32, i32) {
    %c0_i32 = arith.constant 0 : i32
    %c0_i32_0 = arith.constant 0 : i32
    %c0_i32_1 = arith.constant 0 : i32
    %c0_i32_2 = arith.constant 0 : i32
    %c0_i32_3 = arith.constant 0 : i32
    return %c0_i32, %c0_i32_0, %c0_i32_1, %c0_i32_2 : i32, i32, i32, i32
  }
  func.func @transform_2(%arg0: i32) -> (i32, i32, i32, i32) {
    %c0_i32 = arith.constant 0 : i32
    %c0_i32_0 = arith.constant 0 : i32
    %c0_i32_1 = arith.constant 0 : i32
    %c0_i32_2 = arith.constant 0 : i32
    %c0_i32_3 = arith.constant 0 : i32
    return %c0_i32, %c0_i32_0, %c0_i32_1, %c0_i32_2 : i32, i32, i32, i32
  }
  func.func @transform_3(%arg0: i32) -> (i32, i32, i32, i32) {
    %c0_i32 = arith.constant 0 : i32
    %c0_i32_0 = arith.constant 0 : i32
    %c0_i32_1 = arith.constant 0 : i32
    %c0_i32_2 = arith.constant 0 : i32
    %c0_i32_3 = arith.constant 0 : i32
    return %c0_i32, %c0_i32_0, %c0_i32_1, %c0_i32_2 : i32, i32, i32, i32
  }
  func.func @transform_4(%arg0: i32) -> (i32, i32, i32, i32) {
    %c0_i32 = arith.constant 0 : i32
    %c0_i32_0 = arith.constant 0 : i32
    %c0_i32_1 = arith.constant 0 : i32
    %c0_i32_2 = arith.constant 0 : i32
    %c0_i32_3 = arith.constant 0 : i32
    return %c0_i32, %c0_i32_0, %c0_i32_1, %c0_i32_2 : i32, i32, i32, i32
  }
  func.func @transform_5(%arg0: i32) -> (i32, i32, i32, i32) {
    %c0_i32 = arith.constant 0 : i32
    %c0_i32_0 = arith.constant 0 : i32
    %c0_i32_1 = arith.constant 0 : i32
    %c0_i32_2 = arith.constant 0 : i32
    %c0_i32_3 = arith.constant 0 : i32
    return %c0_i32, %c0_i32_0, %c0_i32_1, %c0_i32_2 : i32, i32, i32, i32
  }
  func.func @transform_6(%arg0: i32) -> (i32, i32, i32, i32) {
    %c0_i32 = arith.constant 0 : i32
    %c0_i32_0 = arith.constant 0 : i32
    %c0_i32_1 = arith.constant 0 : i32
    %c0_i32_2 = arith.constant 0 : i32
    %c0_i32_3 = arith.constant 0 : i32
    return %c0_i32, %c0_i32_0, %c0_i32_1, %c0_i32_2 : i32, i32, i32, i32
  }
  func.func @transform_7(%arg0: i32) -> (i32, i32, i32, i32) {
    %c0_i32 = arith.constant 0 : i32
    %c0_i32_0 = arith.constant 0 : i32
    %c0_i32_1 = arith.constant 0 : i32
    %c0_i32_2 = arith.constant 0 : i32
    %c0_i32_3 = arith.constant 0 : i32
    return %c0_i32, %c0_i32_0, %c0_i32_1, %c0_i32_2 : i32, i32, i32, i32
  }
  func.func @transform_8(%arg0: i32) -> (i32, i32, i32, i32) {
    %c0_i32 = arith.constant 0 : i32
    %c0_i32_0 = arith.constant 0 : i32
    %c0_i32_1 = arith.constant 0 : i32
    %c0_i32_2 = arith.constant 0 : i32
    %c0_i32_3 = arith.constant 0 : i32
    return %c0_i32, %c0_i32_0, %c0_i32_1, %c0_i32_2 : i32, i32, i32, i32
  }
  func.func @transform_9(%arg0: i32) -> (i32, i32, i32, i32) {
    %c0_i32 = arith.constant 0 : i32
    %c0_i32_0 = arith.constant 0 : i32
    %c0_i32_1 = arith.constant 0 : i32
    %c0_i32_2 = arith.constant 0 : i32
    %c0_i32_3 = arith.constant 0 : i32
    return %c0_i32, %c0_i32_0, %c0_i32_1, %c0_i32_2 : i32, i32, i32, i32
  }
  func.func @transform_10(%arg0: i32) -> (i32, i32) {
    %c0_i32 = arith.constant 0 : i32
    %c0_i32_0 = arith.constant 0 : i32
    %c0_i32_1 = arith.constant 0 : i32
    return %c0_i32, %c0_i32_0 : i32, i32
  }
  func.func @transform_11(%arg0: i32) -> (i32, i32) {
    %c0_i32 = arith.constant 0 : i32
    %c0_i32_0 = arith.constant 0 : i32
    %c0_i32_1 = arith.constant 0 : i32
    return %c0_i32, %c0_i32_0 : i32, i32
  }
  func.func @transform_12(%arg0: i32) -> (i32, i32) {
    %c0_i32 = arith.constant 0 : i32
    %c0_i32_0 = arith.constant 0 : i32
    %c0_i32_1 = arith.constant 0 : i32
    return %c0_i32, %c0_i32_0 : i32, i32
  }
  func.func @transform_13(%arg0: i32) -> (i32, i32) {
    %c0_i32 = arith.constant 0 : i32
    %c0_i32_0 = arith.constant 0 : i32
    %c0_i32_1 = arith.constant 0 : i32
    return %c0_i32, %c0_i32_0 : i32, i32
  }
  func.func @transform_14(%arg0: i32) -> (i32, i32) {
    %c0_i32 = arith.constant 0 : i32
    %c0_i32_0 = arith.constant 0 : i32
    %c0_i32_1 = arith.constant 0 : i32
    return %c0_i32, %c0_i32_0 : i32, i32
  }
  func.func @transform_15(%arg0: i32) -> (i32, i32, i32) {
    %c0_i32 = arith.constant 0 : i32
    %c0_i32_0 = arith.constant 0 : i32
    %c0_i32_1 = arith.constant 0 : i32
    return %arg0, %c0_i32, %c0_i32_0 : i32, i32, i32
  }
  func.func @transform_16(%arg0: i32) -> (i32, i32, i32) {
    %c0_i32 = arith.constant 0 : i32
    %c0_i32_0 = arith.constant 0 : i32
    %c0_i32_1 = arith.constant 0 : i32
    return %arg0, %c0_i32, %c0_i32_0 : i32, i32, i32
  }
  func.func @transform_17(%arg0: i32) -> (i32, i32, i32) {
    %c0_i32 = arith.constant 0 : i32
    %c0_i32_0 = arith.constant 0 : i32
    %c0_i32_1 = arith.constant 0 : i32
    return %arg0, %c0_i32, %c0_i32_0 : i32, i32, i32
  }
}

</mosaic_0001>

<bundles_post_ra>
// kernel: _lambda_.1
= control target key start
LH: loop header
LB: loop body
LE: loop exit
PB: predicated region body
PF: predicated region fallthrough
CT: control target
= control target key end

     0   :  { %s12917_s0 = inlined_call_operand.vmem [shape: bf16[2,16,512], index: 0, kind: input, shape index: {}]   ;;  %s12918_s1 = inlined_call_operand.hbm [shape: bf16[2,3,512,128], index: 1, kind: input, shape index: {}]   ;;  %s12919_s2 = inlined_call_operand.vmem [shape: bf16[5,3,128,128], index: 2, kind: input, shape index: {}]   ;;  %s12920_s3 = inlined_call_operand.hbm [shape: bf16[2,5,128,128], index: 3, kind: input, shape index: {}]   ;;  %s12921_s4 = inlined_call_operand.vmem [shape: bf16[1,5,8,20], index: 4, kind: input, shape index: {}]   ;;  %s12922_s5 = inlined_call_operand.hbm [shape: bf16[1,5,4,12], index: 5, kind: input, shape index: {}]   ;;  %s12923_s6 = inlined_call_operand.hbm [shape: bf16[1,1,128,128], index: 6, kind: input, shape index: {}]   ;;  %s12924_s7 = inlined_call_operand.vmem [shape: bf16[1,1,128,256], index: 7, kind: input, shape index: {}]   ;;  %s12925_s8 = inlined_call_operand.hbm [shape: bf16[1,1,128,512], index: 8, kind: input, shape index: {}]   ;;  %s12926_s9 = inlined_call_operand.hbm [shape: bf16[1,3,256,128], index: 9, kind: input, shape index: {}]   ;;  %s12927_s10 = inlined_call_operand.hbm [shape: f32[26,512], index: 10, kind: input, shape index: {}]   ;;  %s12928_s11 = inlined_call_operand.hbm [shape: bf16[8,4], index: 11, kind: input, shape index: {}]   ;;  %s12929_s12 = inlined_call_operand.hbm [shape: bf16[128,256], index: 12, kind: input, shape index: {}]   ;;  %s12930_s13 = inlined_call_operand.hbm [shape: bf16[16,8], index: 13, kind: input, shape index: {}]   ;;  %s12931_s14 = inlined_call_operand.hbm [shape: bf16[256,512], index: 14, kind: input, shape index: {}]   ;;  %s12932_s15 = inlined_call_operand.vmem [shape: f32[2,16,128], index: 15, kind: output, shape index: {0}]   ;;  %s12933_s16 = inlined_call_operand.vmem [shape: f32[2,8,128], index: 16, kind: output, shape index: {1}]   ;;  %s12934_s17 = inlined_call_operand.vmem [shape: f32[2,4,128], index: 17, kind: output, shape index: {2}]  }
   0x1   :  { %12938 = sst [smem:[#allocation35_spill]] %s12917_s0 }
   0x2   :  { %12939 = sst [smem:[#allocation36_spill]] %s12918_s1 }
   0x3   :  { %12940 = sst [smem:[#allocation37_spill]] %s12920_s3 }
   0x4   :  { %23 = vsyncpa [#allocation13], 0 }
   0x5   :  { %24 = vsyncpa [#allocation15], 0 }
   0x6   :  { %25 = vsyncpa [#allocation18], 0 }
   0x7   :  { %26 = vsyncpa [#allocation21], 0 }
   0x8   :  { %27 = vsyncpa [#allocation24], 0 }
   0x9   :  { %28 = vsyncpa [#allocation27], 0  ;;  %s11791_s24 = smov 0  }
   0xa LB: > { %s11797_s25 = sadd.s32 4294967295, %s11676_s24   ;;  %p8553_p0 = scmp.ge.s32.totalorder %s11676_s24, 1  ;;  %s11676_s24 = sphi %s11791_s24, %s34_s24  }
   0xb   : > { %p437_p1 = scmp.lt.s32.totalorder %s11676_s24, 3  ;;  %p10666_p2 = scmp.eq.s32.totalorder %s11797_s25, 0 }
   0xc   : > { %s11678_s27 = smov [#allocation14]   ;;  %s11679_s29 = smov [#allocation17]  }
   0xd   : > { %p11802_p3 = pnand %p8553_p0, %p437_p1  ;;  %s465_s28 = sshll.u32 %s11678_s27, 4  ;;  %s466_s28 = int_to_ptr.vmem [resolvable:$true] %s465_s28 }
   0xe   : > { %s494_s0 = sshll.u32 %s11679_s29, 4  ;;  %s11680_s18 = smov [#allocation20]   ;;  %s11808_s0 = int_to_ptr.vmem [resolvable:$true] %s494_s0 }
   0xf   : > { %p10632_p4 = pneg %p11802_p3  ;;  %s523_s19 = sshll.u32 %s11680_s18, 4  ;;  %s11816_s19 = int_to_ptr.vmem [resolvable:$true] %s523_s19 }
  0x10   : > { %s11681_s1 = smov [#allocation23]   ;;  %s11371_s22 = scalar_lea.vmem %s466_s28, 10240 }
  0x11   : > { %p11812_p5 = pnand %p10666_p2, %p10632_p4  ;;  %s11818_s20 = sshll.u32 %s11681_s1, 4  ;;  %s551_s20 = int_to_ptr.vmem [resolvable:$true] %s11818_s20 }
  0x12   : > { %p11372_p7 = scmp.ne.s32.totalorder %s466_s28, %s11371_s22  ;;  %p11379_p10 = scmp.lt.s32.totalorder %s466_s28, %s466_s28 }
  0x13   : > { %p11822_p6 = pneg %p11812_p5  ;;  %p11380_p11 = scmp.lt.s32.totalorder %s11371_s22, %s11371_s22 }
  0x15   : > { %p11374_p8 = pnand %p11372_p7, %p11822_p6  ;;  %p11381_p12 = por %p11380_p11, %p11379_p10 }
  0x17   : > { %p11375_p9 = pneg %p11374_p8 }
  0x19   : > { %p11382_p13 = pnand %p11381_p12, %p11375_p9 }
  0x1b   : > { %11385 = shalt.err (!%p11382_p13)
}
  0x1c   : > { %s12935_s23 = smov 64   ;;  %s11683_s27 = smov 4  }
  0x1d   : > { %s12944_s3 = sld [smem:[#allocation37_spill]]  ;;  %s11397_s1 = scalar_lea.vmem %s11808_s0, 1024 }
  0x1e   : > { %p11398_p0 = scmp.ne.s32.totalorder %s11808_s0, %s11397_s1  ;;  %p11405_p7 = scmp.lt.s32.totalorder %s11808_s0, %s11808_s0 }
  0x1f   : > { %p11406_p8 = scmp.lt.s32.totalorder %s11397_s1, %s11397_s1 }
  0x20   : > { %p11400_p1 = pnand %p11398_p0, %p11822_p6 }
  0x21   : > { %p11407_p9 = por %p11406_p8, %p11405_p7 }
  0x22   : > { %p11401_p4 = pneg %p11400_p1 }
  0x23   : > { %10638 = dma.hbm_to_vmem [thread:$0]  (!%p11812_p5), %s12944_s3, 10240, %s466_s28, [#allocation15], %s12935_s23, %s12935_s23, %s11683_s27  }
  0x24   : > { %p11408_p10 = pnand %p11407_p9, %p11401_p4 }
  0x26   : > { %11411 = shalt.err (!%p11408_p10)
}
  0x27   : > { %10644 = dma.hbm_to_vmem [thread:$0]  (!%p11812_p5), %s12923_s6, 1024, %s11808_s0, [#allocation18], %s12935_s23, %s12935_s23, %s11683_s27  }
  0x28   : > { %s11423_s28 = scalar_lea.vmem %s11816_s19, 6144  ;;  %p11431_p0 = scmp.lt.s32.totalorder %s11816_s19, %s11816_s19 }
  0x29   : > { %p11424_p11 = scmp.ne.s32.totalorder %s11816_s19, %s11423_s28  ;;  %p11432_p1 = scmp.lt.s32.totalorder %s11423_s28, %s11423_s28 }
  0x2b   : > { %p11426_p12 = pnand %p11424_p11, %p11822_p6  ;;  %p11433_p4 = por %p11432_p1, %p11431_p0 }
  0x2d   : > { %p11427_p13 = pneg %p11426_p12 }
  0x2f   : > { %p11434_p7 = pnand %p11433_p4, %p11427_p13 }
  0x31   : > { %11437 = shalt.err (!%p11434_p7)
}
  0x32   : > { %10650 = dma.hbm_to_vmem [thread:$0]  (!%p11812_p5), %s12926_s9, 6144, %s11816_s19, [#allocation21], %s12935_s23, %s12935_s23, %s11683_s27  }
  0x33   : > { %s11449_s0 = scalar_lea.vmem %s551_s20, 64  ;;  %p11457_p11 = scmp.lt.s32.totalorder %s551_s20, %s551_s20 }
  0x34   : > { %p11450_p8 = scmp.ne.s32.totalorder %s551_s20, %s11449_s0  ;;  %p11458_p12 = scmp.lt.s32.totalorder %s11449_s0, %s11449_s0 }
  0x36   : > { %p11452_p9 = pnand %p11450_p8, %p11822_p6  ;;  %p11459_p13 = por %p11458_p12, %p11457_p11 }
  0x38   : > { %p11453_p10 = pneg %p11452_p9 }
  0x3a   : > { %p11460_p0 = pnand %p11459_p13, %p11453_p10 }
  0x3c   : > { %11463 = shalt.err (!%p11460_p0)
}
  0x3d   : > { %10656 = dma.hbm_to_vmem [thread:$0]  (!%p11812_p5), %s12928_s11, 64, %s551_s20, [#allocation24]  }
  0x3e   : > { %s11684_s28 = smov [#allocation26]   ;;  %s11685_s18 = smov [#allocation12]  }
  0x3f   : > { %s573_s19 = sshll.u32 %s11684_s28, 4  ;;  %s449_s1 = sshll.u32 %s11685_s18, 4  ;;  %s574_s19 = int_to_ptr.vmem [resolvable:$true] %s573_s19  ;;  %s450_s1 = int_to_ptr.vmem [resolvable:$true] %s449_s1 }
  0x40   : > { %s11475_s23 = scalar_lea.vmem %s574_s19, 128  ;;  %p11483_p8 = scmp.lt.s32.totalorder %s574_s19, %s574_s19 }
  0x41   : > { %p11476_p1 = scmp.ne.s32.totalorder %s574_s19, %s11475_s23  ;;  %p11484_p9 = scmp.lt.s32.totalorder %s11475_s23, %s11475_s23 }
  0x43   : > { %p11478_p4 = pnand %p11476_p1, %p11822_p6  ;;  %p11485_p10 = por %p11484_p9, %p11483_p8 }
  0x45   : > { %p11479_p7 = pneg %p11478_p4 }
  0x47   : > { %p11486_p11 = pnand %p11485_p10, %p11479_p7 }
  0x49   : > { %11489 = shalt.err (!%p11486_p11)
}
  0x4a   : > { %s12945_s0 = smov 64   ;;  %s11501_s29 = scalar_lea.vmem %s450_s1, 24576 }
  0x4b   : > { %10662 = dma.hbm_to_vmem [thread:$0]  (!%p11812_p5), %s12930_s13, 128, %s574_s19, [#allocation27], %s12945_s0, %s12945_s0, %s11683_s27  }
  0x4c   : > { %p11502_p12 = scmp.ne.s32.totalorder %s450_s1, %s11501_s29  ;;  %p11509_p1 = scmp.lt.s32.totalorder %s450_s1, %s450_s1 }
  0x4d   : > { %p11510_p4 = scmp.lt.s32.totalorder %s11501_s29, %s11501_s29 }
  0x4e   : > { %p11504_p13 = pnand %p11502_p12, %p11822_p6 }
  0x4f   : > { %p11511_p7 = por %p11510_p4, %p11509_p1 }
  0x50   : > { %p11505_p0 = pneg %p11504_p13 }
  0x52   : > { %p11512_p8 = pnand %p11511_p7, %p11505_p0 }
  0x54   : > { %11515 = shalt.err (!%p11512_p8)
}
  0x55   : > { %s12946_s18 = sld [smem:[#allocation36_spill]]  ;;  %s11686_s19 = smov [#allocation16]  }
  0x56   : > { %s481_s20 = sshll.u32 %s11686_s19, 4  ;;  %s482_s20 = int_to_ptr.vmem [resolvable:$true] %s481_s20 }
  0x57   : > { %s11527_s22 = scalar_lea.vmem %s482_s20, 160  ;;  %p11535_p12 = scmp.lt.s32.totalorder %s482_s20, %s482_s20 }
  0x58   : > { %p11528_p9 = scmp.ne.s32.totalorder %s482_s20, %s11527_s22  ;;  %p11536_p13 = scmp.lt.s32.totalorder %s11527_s22, %s11527_s22 }
  0x5a   : > { %p11530_p10 = pnand %p11528_p9, %p11822_p6  ;;  %p11537_p0 = por %p11536_p13, %p11535_p12 }
  0x5b   : > { %10635 = dma.hbm_to_vmem [thread:$0]  (!%p11812_p5), %s12946_s18, 24576, %s450_s1, [#allocation13], %s12945_s0, %s12945_s0, %s11683_s27  }
  0x5c   : > { %p11531_p11 = pneg %p11530_p10 }
  0x5e   : > { %p11538_p1 = pnand %p11537_p0, %p11531_p11 }
  0x60   : > { %11541 = shalt.err (!%p11538_p1)
}
  0x61   : > { %s11687_s29 = smov 32   ;;  %s11688_s3 = smov 2  }
  0x62   : > { %10641 = dma.hbm_to_vmem [thread:$0]  (!%p11812_p5), %s12922_s5, 160, %s482_s20, [#allocation15], %s11687_s29, %s11687_s29, %s11688_s3  }
  0x63   : > { %s11689_s0 = smov [#allocation19]  }
  0x64   : > { %s510_s23 = sshll.u32 %s11689_s0, 4  ;;  %s511_s23 = int_to_ptr.vmem [resolvable:$true] %s510_s23 }
  0x65   : > { %s11553_s28 = scalar_lea.vmem %s511_s23, 4096  ;;  %p11561_p9 = scmp.lt.s32.totalorder %s511_s23, %s511_s23 }
  0x66   : > { %p11554_p4 = scmp.ne.s32.totalorder %s511_s23, %s11553_s28  ;;  %p11562_p10 = scmp.lt.s32.totalorder %s11553_s28, %s11553_s28 }
  0x68   : > { %p11556_p7 = pnand %p11554_p4, %p11822_p6  ;;  %p11563_p11 = por %p11562_p10, %p11561_p9 }
  0x6a   : > { %p11557_p8 = pneg %p11556_p7 }
  0x6c   : > { %p11564_p12 = pnand %p11563_p11, %p11557_p8 }
  0x6e   : > { %11567 = shalt.err (!%p11564_p12)
}
  0x6f   : > { %s12937_s18 = smov 256   ;;  %s11691_s19 = smov 16  }
  0x70   : > { %10647 = dma.hbm_to_vmem [thread:$0]  (!%p11812_p5), %s12925_s8, 4096, %s511_s23, [#allocation18], %s12937_s18, %s12937_s18, %s11691_s19  }
  0x71   : > { %s11692_s22 = smov [#allocation22]  }
  0x72   : > { %s536_s27 = sshll.u32 %s11692_s22, 4  ;;  %s537_s27 = int_to_ptr.vmem [resolvable:$true] %s536_s27 }
  0x73   : > { %s11579_s1 = scalar_lea.vmem %s537_s27, 2048  ;;  %p11587_p4 = scmp.lt.s32.totalorder %s537_s27, %s537_s27 }
  0x74   : > { %p11580_p13 = scmp.ne.s32.totalorder %s537_s27, %s11579_s1  ;;  %p11588_p7 = scmp.lt.s32.totalorder %s11579_s1, %s11579_s1 }
  0x76   : > { %p11582_p0 = pnand %p11580_p13, %p11822_p6  ;;  %p11589_p8 = por %p11588_p7, %p11587_p4 }
  0x78   : > { %p11583_p1 = pneg %p11582_p0 }
  0x7a   : > { %p11590_p9 = pnand %p11589_p8, %p11583_p1 }
  0x7c   : > { %11593 = shalt.err (!%p11590_p9)
}
  0x7d   : > { %s11693_s0 = smov 512   ;;  %s11694_s23 = smov [#allocation25]  }
  0x7e   : > { %10653 = dma.hbm_to_vmem [thread:$0]  (!%p11812_p5), %s12927_s10, 2048, %s537_s27, [#allocation21], %s11693_s0, %s11693_s0, %s11687_s29  }
  0x7f   : > { %s560_s20 = sshll.u32 %s11694_s23, 4  ;;  %s561_s20 = int_to_ptr.vmem [resolvable:$true] %s560_s20 }
  0x80   : > { %s11605_s22 = scalar_lea.vmem %s561_s20, 2048  ;;  %p11613_p13 = scmp.lt.s32.totalorder %s561_s20, %s561_s20 }
  0x81   : > { %p11606_p10 = scmp.ne.s32.totalorder %s561_s20, %s11605_s22  ;;  %p11614_p0 = scmp.lt.s32.totalorder %s11605_s22, %s11605_s22 }
  0x83   : > { %p11608_p11 = pnand %p11606_p10, %p11822_p6  ;;  %p11615_p1 = por %p11614_p0, %p11613_p13 }
  0x85   : > { %p11609_p12 = pneg %p11608_p11 }
  0x87   : > { %p11616_p4 = pnand %p11615_p1, %p11609_p12 }
  0x89   : > { %11619 = shalt.err (!%p11616_p4)
}
  0x8a   : > { %s11695_s1 = smov 128   ;;  %s11696_s18 = smov 8  }
  0x8b   : > { %10659 = dma.hbm_to_vmem [thread:$0]  (!%p11812_p5), %s12929_s12, 2048, %s561_s20, [#allocation24], %s11695_s1, %s11695_s1, %s11696_s18  }
  0x8c   : > { %s11697_s27 = smov [#allocation28]  }
  0x8d   : > { %s586_s0 = sshll.u32 %s11697_s27, 4  ;;  %s587_s0 = int_to_ptr.vmem [resolvable:$true] %s586_s0 }
  0x8e   : > { %s11631_s3 = scalar_lea.vmem %s587_s0, 8192  ;;  %p11639_p10 = scmp.lt.s32.totalorder %s587_s0, %s587_s0 }
  0x8f   : > { %p11632_p7 = scmp.ne.s32.totalorder %s587_s0, %s11631_s3  ;;  %p11640_p11 = scmp.lt.s32.totalorder %s11631_s3, %s11631_s3 }
  0x91   : > { %p11634_p8 = pnand %p11632_p7, %p11822_p6  ;;  %p11641_p12 = por %p11640_p11, %p11639_p10 }
  0x93   : > { %p11635_p9 = pneg %p11634_p8 }
  0x95   : > { %p11642_p13 = pnand %p11641_p12, %p11635_p9 }
  0x97   : > { %11645 = shalt.err (!%p11642_p13)
}
  0x98   : > { %s12947_s23 = smov 256   ;;  %610 = sbr.rel (%p11802_p3) target bundleno = 4631 (0x1217), region = 80 }
  0x99   : > { %10665 = dma.hbm_to_vmem [thread:$0]  (!%p11812_p5), %s12931_s14, 8192, %s587_s0, [#allocation27], %s12947_s23, %s12947_s23, %s11691_s19  }
  0x9d   : > { %11651 = dma.done.wait (%p10666_p2), [#allocation13], 24576  }
  0x9e   : > { %11653 = vsyncadd (%p10666_p2), [#allocation13], 4294942720 }
  0x9f   : > { %11655 = dma.done.wait (%p10666_p2), [#allocation15], 10400  }
  0xa0   : > { %11657 = vsyncadd (%p10666_p2), [#allocation15], 4294956896 }
  0xa1   : > { %11659 = dma.done.wait (%p10666_p2), [#allocation18], 5120  }
  0xa2   : > { %11661 = vsyncadd (%p10666_p2), [#allocation18], 4294962176 }
  0xa3   : > { %11663 = dma.done.wait (%p10666_p2), [#allocation21], 8192  }
  0xa4   : > { %11665 = vsyncadd (%p10666_p2), [#allocation21], 4294959104 }
  0xa5   : > { %11667 = dma.done.wait (%p10666_p2), [#allocation24], 2112  }
  0xa6   : > { %11669 = vsyncadd (%p10666_p2), [#allocation24], 4294965184 }
  0xa7   : > { %11671 = dma.done.wait (%p10666_p2), [#allocation27], 8320  }
  0xa8   : > { %11673 = vsyncadd (%p10666_p2), [#allocation27], 4294958976  ;;  %v733_v0 = vlaneseq  ;;  %v11698_v2 = vmov 0.0   ;;  %v10719_v3 = vld [vmem:[#allocation12 + $0x178] sm:$0xff]   ;;  %v10723_v7 = vld [vmem:[#allocation12 + $0x170] sm:$0xff]   ;;  %p710_p2 = scmp.lt.s32.totalorder %s11797_s25, 1 }
  0xa9   : > { %1947 = vst [vmem:[#allocation3] sm:$0x1] %v11698_v2  ;;  %1948 = vst [vmem:[#allocation3 + $0x11] sm:$0x1] %v11698_v2  ;;  %v10720_v4 = vld [vmem:[#allocation12 + $0x1f8] sm:$0xff]   ;;  %9409 = vmatprep.subr.bf16.mxu0 %v10719_v3  ;;  %v10724_v8 = vld [vmem:[#allocation12 + $0x1f0] sm:$0xff]  }
  0xaa   : > { %vm11965_vm0 = vcmp.lt.s32.totalorder %v733_v0, 512  ;;  %2291 = vst [vmem:[#allocation4] sm:$0x3] %v11698_v2  ;;  %2292 = vst [vmem:[#allocation4 + $0x12] sm:$0x3] %v11698_v2  ;;  %v10721_v5 = vld [vmem:[#allocation12 + $0x138] sm:$0xff]   ;;  %9431 = vmatprep.subr.bf16.mxu1 %v10720_v4 }
  0xab   : > { %3068 = vst [vmem:[#allocation5] sm:$0x1] %v11698_v2  ;;  %3069 = vst [vmem:[#allocation5 + $0x9] sm:$0x1] %v11698_v2  ;;  %v10722_v6 = vld [vmem:[#allocation12 + $0x1b8] sm:$0xff]   ;;  %9410 = vmatpush3.bf16.msra.mxu0 %v10721_v5  ;;  %v10725_v9 = vld [vmem:[#allocation12 + $0x130] sm:$0xff]  }
  0xac   : > { %3400 = vst [vmem:[#allocation6] sm:$0x1] %v11698_v2  ;;  %3401 = vst [vmem:[#allocation6 + $0x9] sm:$0x1] %v11698_v2  ;;  %9432 = vmatpush3.bf16.msra.mxu1 %v10722_v6  ;;  %9411 = vmatprep.subr.bf16.mxu0 %v10723_v7  ;;  %v10726_v10 = vld [vmem:[#allocation12 + $0x1b0] sm:$0xff]   ;;  %v10727_v11 = vld [vmem:[#allocation12 + $0x168] sm:$0xff]  }
  0xad   : > { %3732 = vst [vmem:[#allocation7] sm:$0x3] %v11698_v2  ;;  %3733 = vst [vmem:[#allocation7 + $0xa] sm:$0x3] %v11698_v2  ;;  %9433 = vmatprep.subr.bf16.mxu1 %v10724_v8  ;;  %v10728_v12 = vld [vmem:[#allocation12 + $0x1e8] sm:$0xff]   ;;  %v10731_v15 = vld [vmem:[#allocation12 + $0x160] sm:$0xff]  }
  0xae   : > { %4507 = vst [vmem:[#allocation8] sm:$0x1] %v11698_v2  ;;  %4508 = vst [vmem:[#allocation8 + $0x5] sm:$0x1] %v11698_v2  ;;  %v10729_v13 = vld [vmem:[#allocation12 + $0x128] sm:$0xff]   ;;  %v10732_v16 = vld [vmem:[#allocation12 + $0x1e0] sm:$0xff]  }
  0xaf   : > { %4839 = vst [vmem:[#allocation9] sm:$0x1] %v11698_v2  ;;  %4840 = vst [vmem:[#allocation9 + $0x5] sm:$0x1] %v11698_v2  ;;  %9412 = vmatpush3.bf16.msra.mxu0 %v10725_v9  ;;  %v10730_v14 = vld [vmem:[#allocation12 + $0x1a8] sm:$0xff]   ;;  %v10733_v17 = vld [vmem:[#allocation12 + $0x120] sm:$0xff]  }
  0xb0   : > { %737 = vst.msk [vmem:[#allocation2] ss:$8 sm:$0xf] %vm11965_vm0, %v11698_v2  ;;  %740 = vst.msk [vmem:[#allocation2 + $0x41] ss:$8 sm:$0xf] %vm11965_vm0, %v11698_v2  ;;  %9434 = vmatpush3.bf16.msra.mxu1 %v10726_v10  ;;  %9413 = vmatprep.subr.bf16.mxu0 %v10727_v11 }
  0xb1   : > { %6580 = vst.msk [vmem:[#allocation11] ss:$8 sm:$0xf] %vm11965_vm0, %v11698_v2  ;;  %6583 = vst.msk [vmem:[#allocation11 + $0x41] ss:$8 sm:$0xf] %vm11965_vm0, %v11698_v2  ;;  %9435 = vmatprep.subr.bf16.mxu1 %v10728_v12 }
  0xb2   : > { %v10734_v18 = vld [vmem:[#allocation12 + $0x1a0] sm:$0xff]   ;;  %v10735_v19 = vld [vmem:[#allocation12 + $0x158] sm:$0xff]   ;;  %v10739_v23 = vld [vmem:[#allocation12 + $0x150] sm:$0xff]   ;;  %s12952_s25 = smov (!%p710_p2, %s11797_s25), 1  ;;  %s12950_s19 = sld [smem:[#allocation35_spill]]  ;;  %vm758_vm1 = vcmask 1040384  }
  0xb3   : > { %9414 = vmatpush3.bf16.msra.mxu0 %v10729_v13  ;;  %v10736_v20 = vld [vmem:[#allocation12 + $0x1d8] sm:$0xff]   ;;  %v10740_v24 = vld [vmem:[#allocation12 + $0x1d0] sm:$0xff]   ;;  %v10743_v27 = vld [vmem:[#allocation12 + $0x148] sm:$0xff]   ;;  %s9407_s26 = sshll.u32 %s12952_s25, 5  ;;  %vm952_vm2 = vsmask.f32 7424 }
  0xb4   : > { %9436 = vmatpush3.bf16.msra.mxu1 %v10730_v14  ;;  %9415 = vmatprep.subr.bf16.mxu0 %v10731_v15  ;;  %v10737_v21 = vld [vmem:[#allocation12 + $0x118] sm:$0xff]   ;;  %v10741_v25 = vld [vmem:[#allocation12 + $0x110] sm:$0xff]   ;;  %v10744_v28 = vld [vmem:[#allocation12 + $0x1c8] sm:$0xff]   ;;  %vm1642_vm3 = vcmask 1046528   ;;  %vm11699_vm4 = vmmov 0   ;;  %vm2305_vm9 = vcmask 1041408  }
  0xb5   : > { %9437 = vmatprep.subr.bf16.mxu1 %v10732_v16  ;;  %v10738_v22 = vld [vmem:[#allocation12 + $0x198] sm:$0xff]   ;;  %v10742_v26 = vld [vmem:[#allocation12 + $0x190] sm:$0xff]   ;;  %v10745_v29 = vld [vmem:[#allocation12 + $0x108] sm:$0xff]   ;;  %vm2301_vm10 = vcmask 162816   ;;  %vm3743_vm14 = vcmask 1045504   ;;  %vm3739_vm15 = vcmask 97280  }
  0xb6   : > { %v10746_v30 = vld [vmem:[#allocation12 + $0x188] sm:$0xff]   ;;  %v10747_v31 = vld [vmem:[#allocation12 + $0x140] sm:$0xff]   ;;  %v10751_v47 = vld [vmem:[#allocation12 + $0x78] sm:$0xff]   ;;  %s8583_s29 = sshll.u32 %s12952_s25, 2  ;;  %s8582_s23 = sshll.u32 %s12952_s25, 3 }
  0xb7   : > { %9416 = vmatpush3.bf16.msra.mxu0 %v10733_v17  ;;  %v10748_v32 = vld [vmem:[#allocation12 + $0x1c0] sm:$0xff]   ;;  %v10752_v52 = vld [vmem:[#allocation12 + $0xf8] sm:$0xff]   ;;  %s727_s3 = scalar_lea.vmem %s12934_s17, %s8583_s29  ;;  %s9408_s30 = sshll.u32 %s12952_s25, 4 }
  0xb8   : > { %9438 = vmatpush3.bf16.msra.mxu1 %v10734_v18  ;;  %9417 = vmatprep.subr.bf16.mxu0 %v10735_v19  ;;  %s714_s20 = scalar_lea.vmem %s12950_s19, %s9407_s26  ;;  %v10749_v33 = vld [vmem:[#allocation12 + $0x100] sm:$0xff]   ;;  %s723_s26 = scalar_lea.vmem %s12933_s16, %s8582_s23 }
  0xb9   : > { %9439 = vmatprep.subr.bf16.mxu1 %v10736_v20  ;;  %v10750_v34 = vld [vmem:[#allocation12 + $0x180] sm:$0xff]   ;;  %v729_v35 = vld [vmem:[%s714_s20] sm:$0xff]  ;;  %v730_v37 = vld [vmem:[%s714_s20 + $0x8] sm:$0xff] }
  0xba   : > { %v731_v36 = vld [vmem:[%s714_s20 + $0x10] sm:$0xff]  ;;  %v743_v38 = vunpack.c.h.bf16 %v729_v35  ;;  %v732_v40 = vld [vmem:[%s714_s20 + $0x18] sm:$0xff]  ;;  %v745_v41 = vunpack.c.h.bf16 %v730_v37  ;;  %v742_v42 = vunpack.c.l.bf16 %v729_v35  ;;  %v744_v45 = vunpack.c.l.bf16 %v730_v37  ;;  %s719_s20 = scalar_lea.vmem %s12932_s15, %s9408_s30 }
  0xbb   : > { %9418 = vmatpush3.bf16.msra.mxu0 %v10737_v21  ;;  %v747_v39 = vunpack.c.h.bf16 %v731_v36  ;;  %v749_v43 = vunpack.c.h.bf16 %v732_v40  ;;  %v746_v44 = vunpack.c.l.bf16 %v731_v36  ;;  %v748_v46 = vunpack.c.l.bf16 %v732_v40  ;;  %v10753_v36 = vld [vmem:[#allocation12 + $0x38] sm:$0xff]   ;;  %v10755_v40 = vld [vmem:[#allocation12 + $0x70] sm:$0xff]  }
  0xbc   : > { %9440 = vmatpush3.bf16.msra.mxu1 %v10738_v22  ;;  %9419 = vmatprep.subr.bf16.mxu0 %v10739_v23  ;;  %v760_v48 = vrot.slane %v743_v38, 7  ;;  %v762_v50 = vrot.slane %v745_v41, 7  ;;  %v759_v51 = vrot.slane %v742_v42, 7  ;;  %v761_v55 = vrot.slane %v744_v45, 7 }
  0xbd   : > { %9441 = vmatprep.subr.bf16.mxu1 %v10740_v24  ;;  %v765_v49 = vrot.slane %v747_v39, 7  ;;  %v769_v53 = vrot.slane %v749_v43, 7  ;;  %v763_v54 = vrot.slane %v746_v44, 7  ;;  %v767_v56 = vrot.slane %v748_v46, 7  ;;  %v10754_v39 = vld [vmem:[#allocation12 + $0xb8] sm:$0xff]   ;;  %v10756_v44 = vld [vmem:[#allocation12 + $0xf0] sm:$0xff]  }
  0xbe   : > { %784 = vst [vmem:[#allocation2 + $0x8] sm:$0xfe] %v760_v48  ;;  %786 = vst [vmem:[#allocation2 + $0x18] sm:$0xfe] %v762_v50  ;;  %v10757_v46 = vld [vmem:[#allocation12 + $0x30] sm:$0xff]  }
  0xbf   : > { %9420 = vmatpush3.bf16.msra.mxu0 %v10741_v25  ;;  %v12004_v57 = vsel %vm758_vm1, %v760_v48, %v765_v49  ;;  %792 = vst [vmem:[#allocation2 + $0x48] sm:$0x1] %v765_v49  ;;  %783 = vst [vmem:[#allocation2] sm:$0xfe] %v759_v51  ;;  %v12007_v58 = vsel %vm758_vm1, %v762_v50, %v769_v53  ;;  %v12010_v59 = vsel %vm758_vm1, %v759_v51, %v763_v54  ;;  %v10759_v48 = vld [vmem:[#allocation12 + $0x68] sm:$0xff]   ;;  %v10758_v49 = vld [vmem:[#allocation12 + $0xb0] sm:$0xff]  }
  0xc0   : > { %9442 = vmatpush3.bf16.msra.mxu1 %v10742_v26  ;;  %9421 = vmatprep.subr.bf16.mxu0 %v10743_v27  ;;  %794 = vst [vmem:[#allocation2 + $0x58] sm:$0x1] %v769_v53  ;;  %791 = vst [vmem:[#allocation2 + $0x40] sm:$0x1] %v763_v54  ;;  %v12013_v60 = vsel %vm758_vm1, %v761_v55, %v767_v56  ;;  %v10760_v50 = vld [vmem:[#allocation12 + $0xe8] sm:$0xff]   ;;  %v10764_v54 = vld [vmem:[#allocation12 + $0xe0] sm:$0xff]  }
  0xc1   : > { %9443 = vmatprep.subr.bf16.mxu1 %v10744_v28  ;;  %785 = vst [vmem:[#allocation2 + $0x10] sm:$0xfe] %v761_v55  ;;  %793 = vst [vmem:[#allocation2 + $0x50] sm:$0x1] %v767_v56  ;;  %v10761_v51 = vld [vmem:[#allocation12 + $0x28] sm:$0xff]   ;;  %v10765_v55 = vld [vmem:[#allocation12 + $0x20] sm:$0xff]  }
  0xc2   : > { %v10762_v53 = vld [vmem:[#allocation12 + $0xa8] sm:$0xff]   ;;  %v10767_v56 = vld [vmem:[#allocation12 + $0x58] sm:$0xff]  }
  0xc3   : > { %9422 = vmatpush3.bf16.msra.mxu0 %v10745_v29 }
  0xc4   : > { %9444 = vmatpush3.bf16.msra.mxu1 %v10746_v30  ;;  %9423 = vmatprep.subr.bf16.mxu0 %v10747_v31 }
  0xc5   : > { %9445 = vmatprep.subr.bf16.mxu1 %v10748_v32  ;;  %v872_v61 = vld [vmem:[#allocation2 + $0x8] sm:$0xfe]  ;;  %v874_v63 = vld [vmem:[#allocation2 + $0x18] sm:$0xfe] }
  0xc6   : > { %v876_v62 = vld [vmem:[#allocation2 + $0x48] sm:$0x1]  ;;  %v880_v1 = vpack.c.bf16 %v12004_v57, %v872_v61  ;;  %v882_v5 = vpack.c.bf16 %v12007_v58, %v874_v63  ;;  %v871_v6 = vld [vmem:[#allocation2] sm:$0xfe]  ;;  %v10766_v61 = vld [vmem:[#allocation12 + $0xa0] sm:$0xff]  }
  0xc7   : > { %9424 = vmatpush3.bf16.msra.mxu0 %v10749_v33  ;;  %v884_v3 = vpack.c.bf16 %v876_v62, %v876_v62  ;;  %v878_v4 = vld [vmem:[#allocation2 + $0x58] sm:$0x1]  ;;  %v875_v7 = vld [vmem:[#allocation2 + $0x40] sm:$0x1]  ;;  %v879_v9 = vpack.c.bf16 %v12010_v59, %v871_v6  ;;  %v10768_v62 = vld [vmem:[#allocation12 + $0xd8] sm:$0xff]  }
  0xc8   : > { %9446 = vmatpush3.bf16.msra.mxu1 %v10750_v34  ;;  %9453 = vmatprep.subr.bf16.mxu0 %v10751_v47  ;;  %v886_v8 = vpack.c.bf16 %v878_v4, %v878_v4  ;;  %v883_v10 = vpack.c.bf16 %v875_v7, %v875_v7  ;;  %v873_v11 = vld [vmem:[#allocation2 + $0x10] sm:$0xfe]  ;;  %v877_v12 = vld [vmem:[#allocation2 + $0x50] sm:$0x1]  ;;  %v966_v13 = vshrl.u32 %v880_v1, 16  ;;  %v968_v14 = vshll.u32 %v880_v1, 16 }
  0xc9   : > { %9475 = vmatprep.subr.bf16.mxu1 %v10752_v52  ;;  %v973_v15 = vshll.u32 %v884_v3, 16  ;;  %v990_v16 = vshrl.u32 %v882_v5, 16  ;;  %v992_v17 = vshll.u32 %v882_v5, 16  ;;  %v954_v19 = vshrl.u32 %v879_v9, 16  ;;  %v10763_v52 = vld [vmem:[#allocation12 + $0x60] sm:$0xff]   ;;  %v10769_v63 = vld [vmem:[#allocation12 + $0x18] sm:$0xff]  }
  0xca   : > { %v997_v18 = vshll.u32 %v886_v8, 16  ;;  %v956_v20 = vshll.u32 %v879_v9, 16  ;;  %v970_v21 = vrot.slane %v968_v14, 1  ;;  %v961_v23 = vshll.u32 %v883_v10, 16  ;;  %v10771_v1 = vld [vmem:[#allocation12 + $0x50] sm:$0xff]   ;;  %v10770_v3 = vld [vmem:[#allocation12 + $0x98] sm:$0xff]  }
  0xcb   : > { %v975_v22 = vrot.slane %v973_v15, 1  ;;  %v881_v24 = vpack.c.bf16 %v12013_v60, %v873_v11  ;;  %v994_v25 = vrot.slane %v992_v17, 1  ;;  %v885_v28 = vpack.c.bf16 %v877_v12, %v877_v12  ;;  %v796_v4 = vld [vmem:[#allocation2 + $0x8] sm:$0xff]  ;;  %v798_v5 = vld [vmem:[#allocation2 + $0x18] sm:$0xff]  ;;  %v10772_v6 = vld [vmem:[#allocation12 + $0xd0] sm:$0xff]  }
  0xcc   : > { %v999_v26 = vrot.slane %v997_v18, 1  ;;  %v958_v27 = vrot.slane %v956_v20, 1  ;;  %v971_v29 = vor.u32 %v970_v21, %v966_v13  ;;  %v963_v30 = vrot.slane %v961_v23, 1  ;;  %v10773_v7 = vld [vmem:[#allocation12 + $0x10] sm:$0xff]   ;;  %v10775_v10 = vld [vmem:[#allocation12 + $0x48] sm:$0xff]   ;;  %v10779_v15 = vld [vmem:[#allocation12 + $0x40] sm:$0xff]  }
  0xcd   : > { %v978_v31 = vshrl.u32 %v881_v24, 16  ;;  %v980_v32 = vshll.u32 %v881_v24, 16  ;;  %v995_v33 = vor.u32 %v994_v25, %v990_v16  ;;  %v985_v35 = vshll.u32 %v885_v28, 16  ;;  %v10774_v11 = vld [vmem:[#allocation12 + $0x90] sm:$0xff]   ;;  %v10776_v12 = vld [vmem:[#allocation12 + $0xc8] sm:$0xff]   ;;  %v10780_v16 = vld [vmem:[#allocation12 + $0xc0] sm:$0xff]  }
  0xce   : > { %v959_v34 = vor.u32 %v958_v27, %v954_v19  ;;  %v976_v37 = vsel %vm952_vm2, %v971_v29, %v975_v22  ;;  %v804_v8 = vpack.c.bf16 %v12004_v57, %v796_v4  ;;  %v806_v9 = vpack.c.bf16 %v12007_v58, %v798_v5  ;;  %v10777_v13 = vld [vmem:[#allocation12 + $0x8] sm:$0xff]   ;;  %v10781_v17 = vld [vmem:[#allocation12] sm:$0xff]   ;;  %v795_v18 = vld [vmem:[#allocation2] sm:$0xff] }
  0xcf   : > { %v982_v38 = vrot.slane %v980_v32, 1  ;;  %1229 = vmatprep.mubr.bf16.mxu0 %v976_v37  ;;  %v1000_v41 = vsel %vm952_vm2, %v995_v33, %v999_v26  ;;  %v987_v43 = vrot.slane %v985_v35, 1  ;;  %v10778_v14 = vld [vmem:[#allocation12 + $0x88] sm:$0xff]   ;;  %v10782_v19 = vld [vmem:[#allocation12 + $0x80] sm:$0xff]   ;;  %v10783_v20 = vld [vmem:[#allocation12 + $0x278] sm:$0xff]   ;;  %v803_v22 = vpack.c.bf16 %v12010_v59, %v795_v18 }
  0xd0   : > { %v964_v42 = vsel %vm952_vm2, %v959_v34, %v963_v30  ;;  %1270 = vmatprep.mubr.bf16.mxu1 %v1000_v41  ;;  %v797_v21 = vld [vmem:[#allocation2 + $0x10] sm:$0xff]  ;;  %v10784_v23 = vld [vmem:[#allocation12 + $0x2f8] sm:$0xff]   ;;  %v10787_v25 = vld [vmem:[#allocation12 + $0x270] sm:$0xff]  }
  0xd1   : > { %1230 = vmatmul.mubr.bf16.vlgmr.msra.gmra.mxu0 %v964_v42  ;;  %v983_v45 = vor.u32 %v982_v38, %v978_v31  ;;  %v10785_v24 = vld [vmem:[#allocation12 + $0x238] sm:$0xff]   ;;  %v805_v26 = vpack.c.bf16 %v12013_v60, %v797_v21  ;;  %v10788_v28 = vld [vmem:[#allocation12 + $0x2f0] sm:$0xff]   ;;  %v10791_v30 = vld [vmem:[#allocation12 + $0x268] sm:$0xff]  }
  0xd2   : > { %9454 = vmatpush3.bf16.msra.mxu0 %v10753_v36  ;;  %1503 = vmatprep.mubr.bf16.mxu0 %v804_v8  ;;  %v10786_v27 = vld [vmem:[#allocation12 + $0x2b8] sm:$0xff]   ;;  %v10789_v29 = vld [vmem:[#allocation12 + $0x230] sm:$0xff]   ;;  %v10792_v32 = vld [vmem:[#allocation12 + $0x2e8] sm:$0xff]  }
  0xd3   : > { %v988_v47 = vsel %vm952_vm2, %v983_v45, %v987_v43  ;;  %9455 = vmatprep.subr.bf16.mxu0 %v10755_v40  ;;  %v10790_v31 = vld [vmem:[#allocation12 + $0x2b0] sm:$0xff]   ;;  %v10793_v33 = vld [vmem:[#allocation12 + $0x228] sm:$0xff]   ;;  %v10795_v34 = vld [vmem:[#allocation12 + $0x260] sm:$0xff]  }
  0xd4   : > { %1271 = vmatmul.mubr.bf16.vlgmr.msra.gmra.mxu1 %v988_v47  ;;  %v10794_v35 = vld [vmem:[#allocation12 + $0x2a8] sm:$0xff]   ;;  %v10796_v36 = vld [vmem:[#allocation12 + $0x2e0] sm:$0xff]   ;;  %v10799_v38 = vld [vmem:[#allocation12 + $0x258] sm:$0xff]  }
  0xd5   : > { %9476 = vmatpush3.bf16.msra.mxu1 %v10754_v39  ;;  %1544 = vmatprep.mubr.bf16.mxu1 %v806_v9  ;;  %v10797_v37 = vld [vmem:[#allocation12 + $0x220] sm:$0xff]   ;;  %v10800_v40 = vld [vmem:[#allocation12 + $0x2d8] sm:$0xff]   ;;  %v10803_v43 = vld [vmem:[#allocation12 + $0x250] sm:$0xff]  }
  0xd6   : > { %9477 = vmatprep.subr.bf16.mxu1 %v10756_v44  ;;  %9456 = vmatpush3.bf16.msra.mxu0 %v10757_v46  ;;  %v10798_v39 = vld [vmem:[#allocation12 + $0x2a0] sm:$0xff]   ;;  %v10801_v41 = vld [vmem:[#allocation12 + $0x218] sm:$0xff]   ;;  %v10804_v44 = vld [vmem:[#allocation12 + $0x2d0] sm:$0xff]  }
  0xd7   : > { %9457 = vmatprep.subr.bf16.mxu0 %v10759_v48  ;;  %v10802_v42 = vld [vmem:[#allocation12 + $0x298] sm:$0xff]   ;;  %v10805_v45 = vld [vmem:[#allocation12 + $0x210] sm:$0xff]   ;;  %v10807_v46 = vld [vmem:[#allocation12 + $0x248] sm:$0xff]  }
  0xd8   : > { %v1554_v47 = vld [vmem:[#allocation2 + $0x8] sm:$0xfc]  ;;  %v10806_v48 = vld [vmem:[#allocation12 + $0x290] sm:$0xff]   ;;  %v10815_v21 = vld [vmem:[%s12919_s2 + $0x78] sm:$0xff]  }
  0xd9   : > { %9478 = vmatpush3.bf16.msra.mxu1 %v10758_v49  ;;  %v1558_v49 = vld [vmem:[#allocation2 + $0x48] sm:$0x3] }
  0xda   : > { %9479 = vmatprep.subr.bf16.mxu1 %v10760_v50  ;;  %9458 = vmatpush3.bf16.msra.mxu0 %v10761_v51  ;;  %v1562_v50 = vpack.c.bf16 %v12004_v57, %v1554_v47  ;;  %v1556_v51 = vld [vmem:[#allocation2 + $0x18] sm:$0xfc] }
  0xdb   : > { %9459 = vmatprep.subr.bf16.mxu0 %v10763_v52  ;;  %v1560_v52 = vld [vmem:[#allocation2 + $0x58] sm:$0x3] }
  0xdc   : > { %v1646_v4 = vrot.slane %v1562_v50, 1 }
  0xdd   : > { %9480 = vmatpush3.bf16.msra.mxu1 %v10762_v53  ;;  %v10808_v53 = vld [vmem:[#allocation12 + $0x2c8] sm:$0xff]  }
  0xde   : > { %9481 = vmatprep.subr.bf16.mxu1 %v10764_v54  ;;  %9460 = vmatpush3.bf16.msra.mxu0 %v10765_v55  ;;  %v10809_v54 = vld [vmem:[#allocation12 + $0x208] sm:$0xff]   ;;  %v1566_v55 = vpack.c.bf16 %v1558_v49, %v1558_v49 }
  0xdf   : > { %9461 = vmatprep.subr.bf16.mxu0 %v10767_v56  ;;  %v1564_v56 = vpack.c.bf16 %v12007_v58, %v1556_v51  ;;  %v10810_v58 = vld [vmem:[#allocation12 + $0x288] sm:$0xff]  }
  0xe0   : > { %v1647_v8 = vrot.slane %v1566_v55, 1 }
  0xe1   : > { %9482 = vmatpush3.bf16.msra.mxu1 %v10766_v61  ;;  %v1568_v61 = vpack.c.bf16 %v1560_v52, %v1560_v52  ;;  %v1652_v9 = vrot.slane %v1564_v56, 1 }
  0xe2   : > { %9483 = vmatprep.subr.bf16.mxu1 %v10768_v62  ;;  %9462 = vmatpush3.bf16.msra.mxu0 %v10769_v63  ;;  %v1553_v62 = vld [vmem:[#allocation2] sm:$0xfc]  ;;  %v1557_v63 = vld [vmem:[#allocation2 + $0x40] sm:$0x3] }
  0xe3   : > { %9463 = vmatprep.subr.bf16.mxu0 %v10771_v1  ;;  %v1555_v1 = vld [vmem:[#allocation2 + $0x10] sm:$0xfc]  ;;  %v1561_v5 = vpack.c.bf16 %v12010_v59, %v1553_v62 }
  0xe4   : > { %v1563_v57 = vpack.c.bf16 %v12013_v60, %v1555_v1  ;;  %v10814_v60 = vld [vmem:[#allocation12 + $0x280] sm:$0xff]  }
  0xe5   : > { %9484 = vmatpush3.bf16.msra.mxu1 %v10770_v3  ;;  %v10811_v3 = vld [vmem:[#allocation12 + $0x240] sm:$0xff]  }
  0xe6   : > { %9485 = vmatprep.subr.bf16.mxu1 %v10772_v6  ;;  %9464 = vmatpush3.bf16.msra.mxu0 %v10773_v7  ;;  %v1565_v6 = vpack.c.bf16 %v1557_v63, %v1557_v63  ;;  %v1559_v7 = vld [vmem:[#allocation2 + $0x50] sm:$0x3] }
  0xe7   : > { %9465 = vmatprep.subr.bf16.mxu0 %v10775_v10  ;;  %v1653_v10 = vrot.slane %v1568_v61, 1 }
  0xe9   : > { %9486 = vmatpush3.bf16.msra.mxu1 %v10774_v11  ;;  %v1567_v11 = vpack.c.bf16 %v1559_v7, %v1559_v7  ;;  %v1654_v59 = vsel %vm1642_vm3, %v1652_v9, %v1653_v10 }
  0xea   : > { %9487 = vmatprep.subr.bf16.mxu1 %v10776_v12  ;;  %9466 = vmatpush3.bf16.msra.mxu0 %v10777_v13  ;;  %v1643_v12 = vrot.slane %v1561_v5, 1  ;;  %v1644_v13 = vrot.slane %v1565_v6, 1 }
  0xeb   : > { %9467 = vmatprep.subr.bf16.mxu0 %v10779_v15  ;;  %v10812_v15 = vld [vmem:[#allocation12 + $0x2c0] sm:$0xff]   ;;  %v1650_v18 = vrot.slane %v1567_v11, 1 }
  0xed   : > { %9488 = vmatpush3.bf16.msra.mxu1 %v10778_v14  ;;  %v1649_v14 = vrot.slane %v1563_v57, 1 }
  0xee   : > { %9489 = vmatprep.subr.bf16.mxu1 %v10780_v16  ;;  %9468 = vmatpush3.bf16.msra.mxu0 %v10781_v17  ;;  %v10813_v16 = vld [vmem:[#allocation12 + $0x200] sm:$0xff]   ;;  %v1648_v17 = vsel %vm1642_vm3, %v1646_v4, %v1647_v8 }
  0xef   : > { %9497 = vmatprep.subr.bf16.mxu0 %v10783_v20  ;;  %v1651_v20 = vsel %vm1642_vm3, %v1649_v14, %v1650_v18 }
  0xf1   : > { %9490 = vmatpush3.bf16.msra.mxu1 %v10782_v19  ;;  %1504 = vmatmul.mubr.bf16.vlgmr.msra.gmra.mxu0 %v803_v22  ;;  %v1645_v19 = vsel %vm1642_vm3, %v1643_v12, %v1644_v13  ;;  %v10816_v22 = vld [vmem:[%s12919_s2 + $0x38] sm:$0xff]  }
  0xf2   : > { %9519 = vmatprep.subr.bf16.mxu1 %v10784_v23  ;;  %9498 = vmatpush3.bf16.msra.mxu0 %v10785_v24  ;;  %v10817_v23 = vld [vmem:[%s12919_s2 + $0x70] sm:$0xff]   ;;  %v10819_v24 = vld [vmem:[%s12919_s2 + $0x68] sm:$0xff]  }
  0xf3   : > { %9499 = vmatprep.subr.bf16.mxu0 %v10787_v25  ;;  %1883 = vmatprep.mubr.bf16.mxu0 %v1648_v17  ;;  %v10821_v25 = vld [vmem:[%s12919_s2 + $0x60] sm:$0xff]   ;;  %v1938_v17 = vld [vmem:[#allocation22 + $0x1] ss:$0 sm:$0xff] }
  0xf4   : > { %1545 = vmatmul.mubr.bf16.vlgmr.msra.gmra.mxu1 %v805_v26  ;;  %v10818_v26 = vld [vmem:[%s12919_s2 + $0x30] sm:$0xff]  }
  0xf5   : > { %9520 = vmatpush3.bf16.msra.mxu1 %v10786_v27  ;;  %1924 = vmatprep.mubr.bf16.mxu1 %v1654_v59  ;;  %v10823_v27 = vld [vmem:[%s12919_s2 + $0x58] sm:$0xff]  }
  0xf6   : > { %9521 = vmatprep.subr.bf16.mxu1 %v10788_v28  ;;  %9500 = vmatpush3.bf16.msra.mxu0 %v10789_v29  ;;  %v10820_v28 = vld [vmem:[%s12919_s2 + $0x28] sm:$0xff]   ;;  %v10825_v29 = vld [vmem:[%s12919_s2 + $0x50] sm:$0xff]  }
  0xf7   : > { %9501 = vmatprep.subr.bf16.mxu0 %v10791_v30  ;;  %v10822_v30 = vld [vmem:[%s12919_s2 + $0x20] sm:$0xff]  }
  0xf9   : > { %9522 = vmatpush3.bf16.msra.mxu1 %v10790_v31  ;;  %v10827_v31 = vld [vmem:[%s12919_s2 + $0x48] sm:$0xff]  }
  0xfa   : > { %9523 = vmatprep.subr.bf16.mxu1 %v10792_v32  ;;  %9502 = vmatpush3.bf16.msra.mxu0 %v10793_v33  ;;  %v10824_v32 = vld [vmem:[%s12919_s2 + $0x18] sm:$0xff]   ;;  %v10829_v33 = vld [vmem:[%s12919_s2 + $0x40] sm:$0xff]  }
  0xfb   : > { %9503 = vmatprep.subr.bf16.mxu0 %v10795_v34  ;;  %v10826_v34 = vld [vmem:[%s12919_s2 + $0x10] sm:$0xff]  }
  0xfd   : > { %9524 = vmatpush3.bf16.msra.mxu1 %v10794_v35  ;;  %v10828_v35 = vld [vmem:[%s12919_s2 + $0x8] sm:$0xff]  }
  0xfe   : > { %9525 = vmatprep.subr.bf16.mxu1 %v10796_v36  ;;  %9504 = vmatpush3.bf16.msra.mxu0 %v10797_v37  ;;  %v10830_v36 = vld [vmem:[%s12919_s2] sm:$0xff]  }
  0xff   : > { %9505 = vmatprep.subr.bf16.mxu0 %v10799_v38 }
 0x101   : > { %9526 = vmatpush3.bf16.msra.mxu1 %v10798_v39 }
 0x102   : > { %9527 = vmatprep.subr.bf16.mxu1 %v10800_v40  ;;  %9506 = vmatpush3.bf16.msra.mxu0 %v10801_v41 }
 0x103   : > { %9507 = vmatprep.subr.bf16.mxu0 %v10803_v43 }
 0x105   : > { %9528 = vmatpush3.bf16.msra.mxu1 %v10802_v42 }
 0x106   : > { %9529 = vmatprep.subr.bf16.mxu1 %v10804_v44  ;;  %9508 = vmatpush3.bf16.msra.mxu0 %v10805_v45 }
 0x107   : > { %9509 = vmatprep.subr.bf16.mxu0 %v10807_v46 }
 0x109   : > { %9530 = vmatpush3.bf16.msra.mxu1 %v10806_v48 }
 0x10a   : > { %9531 = vmatprep.subr.bf16.mxu1 %v10808_v53  ;;  %9510 = vmatpush3.bf16.msra.mxu0 %v10809_v54 }
 0x10b   : > { %9511 = vmatprep.subr.bf16.mxu0 %v10811_v3 }
 0x10d   : > { %9532 = vmatpush3.bf16.msra.mxu1 %v10810_v58  ;;  %v1935_v58 = vld [vmem:[#allocation22] ss:$0 sm:$0xff] }
 0x10e   : > { %9533 = vmatprep.subr.bf16.mxu1 %v10812_v15  ;;  %9512 = vmatpush3.bf16.msra.mxu0 %v10813_v16 }
 0x10f   : > { %9998 = vmatprep.subr.bf16.mxu0 %v11698_v2 }
 0x111   : > { %9534 = vmatpush3.bf16.msra.mxu1 %v10814_v60  ;;  %1884 = vmatmul.mubr.bf16.vlgmr.msra.gmra.mxu0 %v1645_v19 }
 0x112   : > { %10018 = vmatprep.subr.bf16.mxu1 %v11698_v2  ;;  %9999 = vmatpush3.bf16.msra.mxu0 %v10815_v21 }
 0x113   : > { %10000 = vmatprep.subr.bf16.mxu0 %v11698_v2  ;;  %10014 = vmatprep.mubr.msk.bf16.mxu0 %vm11699_vm4, %v11698_v2 }
 0x114   : > { %1925 = vmatmul.mubr.bf16.vlgmr.msra.gmra.mxu1 %v1651_v20 }
 0x115   : > { %10019 = vmatpush3.bf16.msra.mxu1 %v10816_v22  ;;  %10034 = vmatprep.mubr.msk.bf16.mxu1 %vm11699_vm4, %v11698_v2 }
 0x116   : > { %10020 = vmatprep.subr.bf16.mxu1 %v11698_v2  ;;  %10001 = vmatpush3.bf16.msra.mxu0 %v10817_v23 }
 0x117   : > { %10002 = vmatprep.subr.bf16.mxu0 %v11698_v2 }
 0x119   : > { %10021 = vmatpush3.bf16.msra.mxu1 %v10818_v26 }
 0x11a   : > { %10003 = vmatpush3.bf16.msra.mxu0 %v10819_v24  ;;  %10022 = vmatprep.subr.bf16.mxu1 %v11698_v2 }
 0x11b   : > { %10004 = vmatprep.subr.bf16.mxu0 %v11698_v2 }
 0x11d   : > { %10023 = vmatpush3.bf16.msra.mxu1 %v10820_v28 }
 0x11e   : > { %10005 = vmatpush3.bf16.msra.mxu0 %v10821_v25  ;;  %10024 = vmatprep.subr.bf16.mxu1 %v11698_v2 }
 0x11f   : > { %10006 = vmatprep.subr.bf16.mxu0 %v11698_v2 }
 0x121   : > { %10025 = vmatpush3.bf16.msra.mxu1 %v10822_v30  ;;  %v10831_v30 = vld [vmem:[%s12919_s2 + $0xb8] sm:$0xff]  }
 0x122   : > { %10007 = vmatpush3.bf16.msra.mxu0 %v10823_v27  ;;  %10026 = vmatprep.subr.bf16.mxu1 %v11698_v2 }
 0x123   : > { %10008 = vmatprep.subr.bf16.mxu0 %v11698_v2 }
 0x125   : > { %10027 = vmatpush3.bf16.msra.mxu1 %v10824_v32 }
 0x126   : > { %10009 = vmatpush3.bf16.msra.mxu0 %v10825_v29  ;;  %10028 = vmatprep.subr.bf16.mxu1 %v11698_v2 }
 0x127   : > { %10010 = vmatprep.subr.bf16.mxu0 %v11698_v2 }
 0x129   : > { %10029 = vmatpush3.bf16.msra.mxu1 %v10826_v34 }
 0x12a   : > { %10011 = vmatpush3.bf16.msra.mxu0 %v10827_v31  ;;  %10030 = vmatprep.subr.bf16.mxu1 %v11698_v2 }
 0x12b   : > { %10012 = vmatprep.subr.bf16.mxu0 %v11698_v2 }
 0x12d   : > { %10031 = vmatpush3.bf16.msra.mxu1 %v10828_v35 }
 0x12e   : > { %10013 = vmatpush3.bf16.msra.mxu0 %v10829_v33  ;;  %10032 = vmatprep.subr.bf16.mxu1 %v11698_v2  ;;  %v10832_v33 = vld [vmem:[%s12919_s2 + $0xb0] sm:$0xff]  }
 0x12f   : > { %10038 = vmatprep.subr.bf16.mxu0 %v11698_v2 }
 0x131   : > { %10033 = vmatpush3.bf16.msra.mxu1 %v10830_v36  ;;  %v10833_v36 = vld [vmem:[%s12919_s2 + $0xa8] sm:$0xff]  }
 0x132   : > { %10066 = vmatprep.subr.bf16.mxu1 %v11698_v2 }
 0x191   : > { %v9425_v37 = vpop.f32.mrf.mxu0 }
 0x193   : > { %v9426_v39 = vpop.f32.mrf.mxu0 }
 0x194   : > { %v9447_v38 = vpop.f32.mrf.mxu1  ;;  %v9427_v51 = vadd.f32 %v9426_v39, %v9425_v37  ;;  %v10835_v39 = vld [vmem:[%s12919_s2 + $0x98] sm:$0xff]  }
 0x195   : > { %v9428_v41 = vpop.f32.mrf.mxu0 }
 0x196   : > { %v9448_v40 = vpop.f32.mrf.mxu1 }
 0x197   : > { %v9429_v43 = vpop.f32.mrf.mxu0  ;;  %v9449_v52 = vadd.f32 %v9448_v40, %v9447_v38  ;;  %v10834_v38 = vld [vmem:[%s12919_s2 + $0xa0] sm:$0xff]   ;;  %v10836_v40 = vld [vmem:[%s12919_s2 + $0x90] sm:$0xff]  }
 0x198   : > { %v9450_v42 = vpop.f32.mrf.mxu1  ;;  %v9430_v62 = vadd.f32 %v9429_v43, %v9428_v41  ;;  %v10837_v41 = vld [vmem:[%s12919_s2 + $0x88] sm:$0xff]  }
 0x199   : > { %v1273_v61 = vadd.f32 %v9449_v52, %v9427_v51 }
 0x19a   : > { %v9451_v45 = vpop.f32.mrf.mxu1 }
 0x19b   : > { %v9452_v63 = vadd.f32 %v9451_v45, %v9450_v42  ;;  %v10838_v42 = vld [vmem:[%s12919_s2 + $0x80] sm:$0xff]  }
 0x19d   : > { %v1276_v8 = vadd.f32 %v9452_v63, %v9430_v62  ;;  %v2282_v62 = vld [vmem:[#allocation22 + $0x3] ss:$0 sm:$0xff] }
 0x1b1   : > { %v9469_v44 = vpop.f32.mrf.mxu0 }
 0x1b3   : > { %v9470_v47 = vpop.f32.mrf.mxu0 }
 0x1b4   : > { %v9491_v46 = vpop.f32.mrf.mxu1  ;;  %v9471_v54 = vadd.f32 %v9470_v47, %v9469_v44 }
 0x1b5   : > { %v9472_v49 = vpop.f32.mrf.mxu0 }
 0x1b6   : > { %v9492_v48 = vpop.f32.mrf.mxu1  ;;  %v1506_v4 = vadd.f32 %v9471_v54, %v1273_v61 }
 0x1b7   : > { %v9473_v53 = vpop.f32.mrf.mxu0  ;;  %v9493_v9 = vadd.f32 %v9492_v48, %v9491_v46 }
 0x1b8   : > { %v9494_v50 = vpop.f32.mrf.mxu1  ;;  %v9474_v5 = vadd.f32 %v9473_v53, %v9472_v49 }
 0x1b9   : > { %v1547_v13 = vadd.f32 %v9493_v9, %v1506_v4 }
 0x1ba   : > { %v9495_v56 = vpop.f32.mrf.mxu1  ;;  %v1509_v14 = vadd.f32 %v9474_v5, %v1276_v8 }
 0x1bb   : > { %v9496_v18 = vadd.f32 %v9495_v56, %v9494_v50  ;;  %v2279_v56 = vld [vmem:[#allocation22 + $0x2] ss:$0 sm:$0xff] }
 0x1bd   : > { %v1550_v20 = vadd.f32 %v9496_v18, %v1509_v14  ;;  %v2300_v18 = vld [vmem:[%s12921_s4] sm:$0xf] }
 0x1d1   : > { %v9513_v55 = vpop.f32.mrf.mxu0 }
 0x1d3   : > { %v9514_v1 = vpop.f32.mrf.mxu0 }
 0x1d4   : > { %v9535_v3 = vpop.f32.mrf.mxu1  ;;  %v9515_v6 = vadd.f32 %v9514_v1, %v9513_v55 }
 0x1d5   : > { %v9516_v7 = vpop.f32.mrf.mxu0 }
 0x1d6   : > { %v9536_v57 = vpop.f32.mrf.mxu1 }
 0x1d7   : > { %v9537_v10 = vadd.f32 %v9536_v57, %v9535_v3  ;;  %v9517_v11 = vpop.f32.mrf.mxu0 }
 0x1d8   : > { %v9538_v12 = vpop.f32.mrf.mxu1  ;;  %v9518_v16 = vadd.f32 %v9517_v11, %v9516_v7 }
 0x1d9   : > { %v1927_v15 = vadd.f32 %v9537_v10, %v9515_v6 }
 0x1da   : > { %v9539_v59 = vpop.f32.mrf.mxu1 }
 0x1db   : > { %v1933_v60 = vadd.f32 %v1927_v15, %v1547_v13  ;;  %v9540_v19 = vadd.f32 %v9539_v59, %v9538_v12 }
 0x1dd   : > { %v1936_v21 = vmul.f32 %v1935_v58, %v1933_v60  ;;  %v1930_v22 = vadd.f32 %v9540_v19, %v9518_v16  ;;  %v8737_v60 = vld [vmem:[%s12921_s4 + $0x4] sm:$0xf]  ;;  %v10839_v19 = vld [vmem:[#allocation14 + $0x78] sm:$0xff]  }
 0x1df   : > { %v1939_v23 = vadd.f32 %v1938_v17, %v1936_v21  ;;  %v1934_v24 = vadd.f32 %v1930_v22, %v1550_v20  ;;  %v10840_v20 = vld [vmem:[#allocation14 + $0x38] sm:$0xff]   ;;  %v10841_v21 = vld [vmem:[#allocation14 + $0x70] sm:$0xff]  }
 0x1e0   : > { %v10842_v22 = vld [vmem:[#allocation14 + $0x30] sm:$0xff]  }
 0x1e1   : > { %vm1941_vm5 = vcmp.ge.f32.partialorder %v1939_v23, 0.0  ;;  %v1943_v25 = vmul.f32 0.01, %v1939_v23  ;;  %v1937_v26 = vmul.f32 %v1935_v58, %v1934_v24  ;;  %v10844_v24 = vld [vmem:[#allocation14 + $0x28] sm:$0xff]  }
 0x1e3   : > { %v1945_v27 = vsel %vm1941_vm5, %v1939_v23, %v1943_v25  ;;  %v1940_v28 = vadd.f32 %v1938_v17, %v1937_v26  ;;  %v10843_v23 = vld [vmem:[#allocation14 + $0x68] sm:$0xff]   ;;  %v10845_v25 = vld [vmem:[#allocation14 + $0x60] sm:$0xff]  }
 0x1e4   : > { %1949 = vst [vmem:[#allocation3 + $0x1] sm:$0xff] %v1945_v27  ;;  %v10846_v26 = vld [vmem:[#allocation14 + $0x20] sm:$0xff]  }
 0x1e5   : > { %vm1942_vm6 = vcmp.ge.f32.partialorder %v1940_v28, 0.0  ;;  %v1944_v29 = vmul.f32 0.01, %v1940_v28 }
 0x1e7   : > { %v1946_v31 = vsel %vm1942_vm6, %v1940_v28, %v1944_v29  ;;  %v10848_v28 = vld [vmem:[#allocation14 + $0x18] sm:$0xff]   ;;  %v10849_v29 = vld [vmem:[#allocation14 + $0x50] sm:$0xff]   ;;  %vm5589_vm6 = vcmask 31744  }
 0x1e8   : > { %1950 = vst [vmem:[#allocation3 + $0x9] sm:$0xff] %v1946_v31  ;;  %v1972_v32 = vpack.c.bf16 %v1946_v31, %v1945_v27  ;;  %v10847_v27 = vld [vmem:[#allocation14 + $0x58] sm:$0xff]   ;;  %v10851_v31 = vld [vmem:[#allocation14 + $0x48] sm:$0xff]  }
 0x1ea   : > { %10015 = vmatmul.mubr.bf16.vlgmr.msra.gmra.mxu0 %v1972_v32  ;;  %v10852_v32 = vld [vmem:[#allocation14 + $0x8] sm:$0xff]  }
 0x1eb   : > { %10039 = vmatpush3.bf16.msra.mxu0 %v10831_v30  ;;  %10054 = vmatprep.mubr.msk.bf16.mxu0 %vm11699_vm4, %v11698_v2  ;;  %v1951_v34 = vld [vmem:[#allocation3] sm:$0xff] }
 0x1ec   : > { %10040 = vmatprep.subr.bf16.mxu0 %v11698_v2  ;;  %v10850_v30 = vld [vmem:[#allocation14 + $0x10] sm:$0xff]  }
 0x1ef   : > { %v1952_v35 = vld [vmem:[#allocation3 + $0x8] sm:$0xff]  ;;  %10041 = vmatpush3.bf16.msra.mxu0 %v10832_v33  ;;  %v10853_v33 = vld [vmem:[#allocation14 + $0x40] sm:$0xff]  }
 0x1f0   : > { %v1953_v37 = vpack.c.bf16 %v1952_v35, %v1951_v34  ;;  %10042 = vmatprep.subr.bf16.mxu0 %v11698_v2  ;;  %v2168_v43 = vld [vmem:[#allocation3 + $0x2] sm:$0xff]  ;;  %v2169_v44 = vld [vmem:[#allocation3 + $0xa] sm:$0xff] }
 0x1f1   : > { %v2170_v45 = vpack.c.bf16 %v2169_v44, %v2168_v43  ;;  %v10854_v34 = vld [vmem:[#allocation14] sm:$0xff]  }
 0x1f2   : > { %10035 = vmatmul.mubr.bf16.vlgmr.msra.gmra.mxu1 %v1953_v37 }
 0x1f3   : > { %10043 = vmatpush3.bf16.msra.mxu0 %v10833_v36  ;;  %10070 = vmatprep.mubr.msk.bf16.mxu1 %vm11699_vm4, %v11698_v2 }
 0x1f4   : > { %10044 = vmatprep.subr.bf16.mxu0 %v11698_v2 }
 0x1f7   : > { %10045 = vmatpush3.bf16.msra.mxu0 %v10834_v38 }
 0x1f8   : > { %10046 = vmatprep.subr.bf16.mxu0 %v11698_v2 }
 0x1fb   : > { %10047 = vmatpush3.bf16.msra.mxu0 %v10835_v39 }
 0x1fc   : > { %10048 = vmatprep.subr.bf16.mxu0 %v11698_v2 }
 0x1ff   : > { %10049 = vmatpush3.bf16.msra.mxu0 %v10836_v40 }
 0x200   : > { %10050 = vmatprep.subr.bf16.mxu0 %v11698_v2 }
 0x203   : > { %10051 = vmatpush3.bf16.msra.mxu0 %v10837_v41 }
 0x204   : > { %10052 = vmatprep.subr.bf16.mxu0 %v11698_v2 }
 0x207   : > { %10053 = vmatpush3.bf16.msra.mxu0 %v10838_v42 }
 0x208   : > { %10058 = vmatprep.subr.bf16.mxu0 %v11698_v2 }
 0x20a   : > { %10055 = vmatmul.mubr.bf16.vlgmr.msra.gmra.mxu0 %v2170_v45  ;;  %v8755_v45 = vld [vmem:[%s12921_s4 + $0x8] sm:$0xf] }
 0x20b   : > { %10062 = vmatprep.mubr.msk.bf16.mxu0 %vm11699_vm4, %v11698_v2 }
 0x2aa   : > { %v2072_v46 = vpop.f32.mrf.mxu0 }
 0x2ac   : > { %v10016_v47 = vpop.f32.mrf.mxu0 }
 0x2ad   : > { %v10855_v47 = vld [vmem:[#allocation14 + $0xb8] sm:$0xff]  }
 0x2ae   : > { %v2075_v48 = vpop.f32.mrf.mxu0 }
 0x2b0   : > { %v10017_v49 = vpop.f32.mrf.mxu0 }
 0x2b1   : > { %v10857_v49 = vld [vmem:[#allocation14 + $0xb0] sm:$0xff]  }
 0x2b2   : > { %v2161_v50 = vpop.f32.mrf.mxu1 }
 0x2b3   : > { %v2162_v54 = vadd.f32 %v2161_v50, %v2072_v46  ;;  %v8765_v46 = vld [vmem:[%s12921_s4 + $0xc] sm:$0xf]  ;;  %v10858_v50 = vld [vmem:[#allocation14 + $0xf0] sm:$0xff]  }
 0x2b4   : > { %v10036_v51 = vpop.f32.mrf.mxu1 }
 0x2b5   : > { %v10859_v51 = vld [vmem:[#allocation14 + $0xa8] sm:$0xff]  }
 0x2b6   : > { %v2164_v52 = vpop.f32.mrf.mxu1 }
 0x2b7   : > { %v2165_v1 = vadd.f32 %v2164_v52, %v2075_v48  ;;  %v10856_v48 = vld [vmem:[#allocation14 + $0xf8] sm:$0xff]   ;;  %v10860_v52 = vld [vmem:[#allocation14 + $0xe8] sm:$0xff]  }
 0x2b8   : > { %v10037_v53 = vpop.f32.mrf.mxu1 }
 0x2b9   : > { %v10861_v53 = vld [vmem:[#allocation14 + $0xa0] sm:$0xff]  }
 0x2ca   : > { %v2270_v55 = vpop.f32.mrf.mxu0 }
 0x2cb   : > { %v2277_v61 = vadd.f32 %v2270_v55, %v2162_v54  ;;  %v10862_v54 = vld [vmem:[#allocation14 + $0xe0] sm:$0xff]   ;;  %v10863_v55 = vld [vmem:[#allocation14 + $0x98] sm:$0xff]  }
 0x2cc   : > { %v10056_v63 = vpop.f32.mrf.mxu0 }
 0x2cd   : > { %v2280_v3 = vmul.f32 %v2279_v56, %v2277_v61  ;;  %v10865_v61 = vld [vmem:[#allocation14 + $0x90] sm:$0xff]   ;;  %v10867_v63 = vld [vmem:[#allocation14 + $0x88] sm:$0xff]  }
 0x2ce   : > { %v2273_v4 = vpop.f32.mrf.mxu0 }
 0x2cf   : > { %v2283_v5 = vadd.f32 %v2282_v62, %v2280_v3  ;;  %v2278_v6 = vadd.f32 %v2273_v4, %v2165_v1  ;;  %v10868_v1 = vld [vmem:[#allocation14 + $0xc8] sm:$0xff]   ;;  %v10869_v3 = vld [vmem:[#allocation14 + $0x80] sm:$0xff]  }
 0x2d0   : > { %v10057_v7 = vpop.f32.mrf.mxu0  ;;  %v10870_v4 = vld [vmem:[#allocation14 + $0xc0] sm:$0xff]  }
 0x2d1   : > { %vm2285_vm7 = vcmp.ge.f32.partialorder %v2283_v5, 0.0  ;;  %v2287_v57 = vmul.f32 0.01, %v2283_v5  ;;  %v2281_v8 = vmul.f32 %v2279_v56, %v2278_v6  ;;  %v10864_v56 = vld [vmem:[#allocation14 + $0xd8] sm:$0xff]  }
 0x2d3   : > { %v2289_v9 = vsel %vm2285_vm7, %v2283_v5, %v2287_v57  ;;  %v2284_v10 = vadd.f32 %v2282_v62, %v2281_v8  ;;  %v10866_v62 = vld [vmem:[#allocation14 + $0xd0] sm:$0xff]   ;;  %vm6563_vm7 = vcmp.lt.s32.totalorder %v733_v0, 256 }
 0x2d4   : > { %2293 = vst [vmem:[#allocation4 + $0x2] sm:$0xff] %v2289_v9  ;;  %6565 = vst.msk [vmem:[#allocation10] ss:$8 sm:$0x3] %vm6563_vm7, %v11698_v2 }
 0x2d5   : > { %vm2286_vm8 = vcmp.ge.f32.partialorder %v2284_v10, 0.0  ;;  %v2288_v11 = vmul.f32 0.01, %v2284_v10  ;;  %6568 = vst.msk [vmem:[#allocation10 + $0x11] ss:$8 sm:$0x3] %vm6563_vm7, %v11698_v2 }
 0x2d7   : > { %v2290_v58 = vsel %vm2286_vm8, %v2284_v10, %v2288_v11  ;;  %vm6464_vm8 = vcmask 1043456  }
 0x2d8   : > { %2294 = vst [vmem:[#allocation4 + $0xa] sm:$0xff] %v2290_v58  ;;  %v12143_v12 = vpack.c.bf16 %v2290_v58, %v2289_v9 }
 0x2db   : > { %v2295_v17 = vld [vmem:[#allocation4] sm:$0xff] }
 0x2df   : > { %v2297_v13 = vld [vmem:[#allocation4 + $0x10] sm:$0xf]  ;;  %v2296_v16 = vld [vmem:[#allocation4 + $0x8] sm:$0xff] }
 0x2e0   : > { %v2299_v14 = vpack.c.bf16 %v2297_v13, %v2297_v13  ;;  %v12152_v59 = vpack.c.bf16 %v2296_v16, %v2295_v17 }
 0x2e2   : > { %v12146_v15 = vsel %vm2305_vm9, %v2299_v14, 0 }
 0x2e3   : > { %10059 = vmatpush3.bf16.msra.mxu0 %v12146_v15  ;;  %10067 = vmatpush3.bf16.msra.mxu1 %v12146_v15 }
 0x2e4   : > { %10060 = vmatprep.subr.bf16.mxu0 %v11698_v2  ;;  %10068 = vmatprep.subr.bf16.mxu1 %v11698_v2 }
 0x2e7   : > { %10061 = vmatpush3.bf16.msra.mxu0 %v12152_v59  ;;  %10069 = vmatpush3.bf16.msra.mxu1 %v12152_v59 }
 0x2e8   : > { %10074 = vmatprep.subr.bf16.mxu1 %v11698_v2  ;;  %10094 = vmatprep.subr.bf16.mxu0 %v11698_v2 }
 0x2ea   : > { %10063 = vmatmul.mubr.msk.bf16.vlgmr.msra.gmra.mxu0 %vm2301_vm10, %v2300_v18  ;;  %10071 = vmatmul.mubr.msk.bf16.vlgmr.msra.gmra.mxu1 %vm2301_vm10, %v8737_v60 }
 0x2eb   : > { %10075 = vmatpush3.bf16.msra.mxu1 %v10839_v19  ;;  %10095 = vmatpush3.bf16.msra.mxu0 %v10840_v20 }
 0x2ec   : > { %10076 = vmatprep.subr.bf16.mxu1 %v11698_v2  ;;  %10096 = vmatprep.subr.bf16.mxu0 %v11698_v2 }
 0x2ed   : > { %10090 = vmatprep.mubr.msk.bf16.mxu1 %vm11699_vm4, %v11698_v2  ;;  %10110 = vmatprep.mubr.msk.bf16.mxu0 %vm11699_vm4, %v11698_v2 }
 0x2ef   : > { %10077 = vmatpush3.bf16.msra.mxu1 %v10841_v21  ;;  %10097 = vmatpush3.bf16.msra.mxu0 %v10842_v22 }
 0x2f0   : > { %10078 = vmatprep.subr.bf16.mxu1 %v11698_v2  ;;  %10098 = vmatprep.subr.bf16.mxu0 %v11698_v2 }
 0x2f3   : > { %10079 = vmatpush3.bf16.msra.mxu1 %v10843_v23  ;;  %10099 = vmatpush3.bf16.msra.mxu0 %v10844_v24  ;;  %v8775_v23 = vld [vmem:[%s12921_s4 + $0x10] sm:$0xf]  ;;  %v10871_v24 = vld [vmem:[#allocation14 + $0x138] sm:$0xff]  }
 0x2f4   : > { %10080 = vmatprep.subr.bf16.mxu1 %v11698_v2  ;;  %10100 = vmatprep.subr.bf16.mxu0 %v11698_v2 }
 0x2f7   : > { %10081 = vmatpush3.bf16.msra.mxu1 %v10845_v25  ;;  %10101 = vmatpush3.bf16.msra.mxu0 %v10846_v26  ;;  %v10873_v25 = vld [vmem:[#allocation14 + $0x128] sm:$0xff]   ;;  %v10875_v26 = vld [vmem:[#allocation14 + $0x118] sm:$0xff]  }
 0x2f8   : > { %10082 = vmatprep.subr.bf16.mxu1 %v11698_v2  ;;  %10102 = vmatprep.subr.bf16.mxu0 %v11698_v2 }
 0x2fb   : > { %10083 = vmatpush3.bf16.msra.mxu1 %v10847_v27  ;;  %10103 = vmatpush3.bf16.msra.mxu0 %v10848_v28  ;;  %v10876_v27 = vld [vmem:[#allocation14 + $0x110] sm:$0xff]   ;;  %v10877_v28 = vld [vmem:[#allocation14 + $0x108] sm:$0xff]  }
 0x2fc   : > { %10084 = vmatprep.subr.bf16.mxu1 %v11698_v2  ;;  %10104 = vmatprep.subr.bf16.mxu0 %v11698_v2 }
 0x2ff   : > { %10085 = vmatpush3.bf16.msra.mxu1 %v10849_v29  ;;  %10105 = vmatpush3.bf16.msra.mxu0 %v10850_v30  ;;  %v10878_v29 = vld [vmem:[#allocation14 + $0x100] sm:$0xff]   ;;  %v10879_v30 = vld [vmem:[%s12919_s2 + $0x138] sm:$0xff]  }
 0x300   : > { %10086 = vmatprep.subr.bf16.mxu1 %v11698_v2  ;;  %10106 = vmatprep.subr.bf16.mxu0 %v11698_v2 }
 0x303   : > { %10087 = vmatpush3.bf16.msra.mxu1 %v10851_v31  ;;  %10107 = vmatpush3.bf16.msra.mxu0 %v10852_v32  ;;  %v10881_v31 = vld [vmem:[%s12919_s2 + $0x130] sm:$0xff]   ;;  %v10883_v32 = vld [vmem:[%s12919_s2 + $0x128] sm:$0xff]  }
 0x304   : > { %10088 = vmatprep.subr.bf16.mxu1 %v11698_v2  ;;  %10108 = vmatprep.subr.bf16.mxu0 %v11698_v2 }
 0x307   : > { %10089 = vmatpush3.bf16.msra.mxu1 %v10853_v33  ;;  %10109 = vmatpush3.bf16.msra.mxu0 %v10854_v34 }
 0x308   : > { %10114 = vmatprep.subr.bf16.mxu1 %v11698_v2  ;;  %10142 = vmatprep.subr.bf16.mxu0 %v11698_v2 }
 0x3aa   : > { %v2343_v35 = vpop.f32.mrf.mxu0  ;;  %v2405_v36 = vpop.f32.mrf.mxu1 }
 0x3ab   : > { %v2349_v37 = vpack.c.bf16 %v2343_v35, %v2343_v35  ;;  %v2411_v38 = vpack.c.bf16 %v2405_v36, %v2405_v36 }
 0x3ac   : > { %v10072_v39 = vpop.f32.mrf.mxu1  ;;  %v10064_v40 = vpop.f32.mrf.mxu0 }
 0x3ad   : > { %10091 = vmatmul.mubr.bf16.vlgmr.msra.gmra.mxu1 %v2411_v38  ;;  %10111 = vmatmul.mubr.bf16.vlgmr.msra.gmra.mxu0 %v2349_v37 }
 0x3ae   : > { %10115 = vmatpush3.bf16.msra.mxu1 %v12146_v15  ;;  %10143 = vmatpush3.bf16.msra.mxu0 %v12146_v15  ;;  %v2408_v41 = vpop.f32.mrf.mxu1  ;;  %v2346_v42 = vpop.f32.mrf.mxu0 }
 0x3af   : > { %10116 = vmatprep.subr.bf16.mxu1 %v11698_v2  ;;  %10144 = vmatprep.subr.bf16.mxu0 %v11698_v2 }
 0x3b0   : > { %v10073_v43 = vpop.f32.mrf.mxu1  ;;  %10118 = vmatprep.mubr.msk.bf16.mxu1 %vm11699_vm4, %v11698_v2  ;;  %10146 = vmatprep.mubr.msk.bf16.mxu0 %vm11699_vm4, %v11698_v2  ;;  %v10065_v44 = vpop.f32.mrf.mxu0 }
 0x3b1   : > { %v10880_v44 = vld [vmem:[%s12919_s2 + $0xf8] sm:$0xff]  }
 0x3b2   : > { %10117 = vmatpush3.bf16.msra.mxu1 %v12152_v59  ;;  %10145 = vmatpush3.bf16.msra.mxu0 %v12152_v59 }
 0x3b3   : > { %10122 = vmatprep.subr.bf16.mxu1 %v11698_v2  ;;  %10150 = vmatprep.subr.bf16.mxu0 %v11698_v2 }
 0x3b5   : > { %10119 = vmatmul.mubr.msk.bf16.vlgmr.msra.gmra.mxu1 %vm2301_vm10, %v8755_v45  ;;  %10147 = vmatmul.mubr.msk.bf16.vlgmr.msra.gmra.mxu0 %vm2301_vm10, %v8765_v46 }
 0x3b6   : > { %10123 = vmatpush3.bf16.msra.mxu1 %v10855_v47  ;;  %10151 = vmatpush3.bf16.msra.mxu0 %v10856_v48  ;;  %v10882_v48 = vld [vmem:[%s12919_s2 + $0xf0] sm:$0xff]  }
 0x3b7   : > { %10124 = vmatprep.subr.bf16.mxu1 %v11698_v2  ;;  %10152 = vmatprep.subr.bf16.mxu0 %v11698_v2 }
 0x3b8   : > { %10138 = vmatprep.mubr.msk.bf16.mxu1 %vm11699_vm4, %v11698_v2  ;;  %10166 = vmatprep.mubr.msk.bf16.mxu0 %vm11699_vm4, %v11698_v2 }
 0x3ba   : > { %10125 = vmatpush3.bf16.msra.mxu1 %v10857_v49  ;;  %10153 = vmatpush3.bf16.msra.mxu0 %v10858_v50  ;;  %v10884_v50 = vld [vmem:[%s12919_s2 + $0xe8] sm:$0xff]  }
 0x3bb   : > { %10126 = vmatprep.subr.bf16.mxu1 %v11698_v2  ;;  %10154 = vmatprep.subr.bf16.mxu0 %v11698_v2 }
 0x3be   : > { %10127 = vmatpush3.bf16.msra.mxu1 %v10859_v51  ;;  %10155 = vmatpush3.bf16.msra.mxu0 %v10860_v52  ;;  %v10885_v51 = vld [vmem:[%s12919_s2 + $0x120] sm:$0xff]   ;;  %v10887_v52 = vld [vmem:[%s12919_s2 + $0x118] sm:$0xff]  }
 0x3bf   : > { %10128 = vmatprep.subr.bf16.mxu1 %v11698_v2  ;;  %10156 = vmatprep.subr.bf16.mxu0 %v11698_v2 }
 0x3c2   : > { %10129 = vmatpush3.bf16.msra.mxu1 %v10861_v53  ;;  %10157 = vmatpush3.bf16.msra.mxu0 %v10862_v54  ;;  %v10889_v53 = vld [vmem:[%s12919_s2 + $0x110] sm:$0xff]   ;;  %v10886_v54 = vld [vmem:[%s12919_s2 + $0xe0] sm:$0xff]  }
 0x3c3   : > { %10130 = vmatprep.subr.bf16.mxu1 %v11698_v2  ;;  %10158 = vmatprep.subr.bf16.mxu0 %v11698_v2 }
 0x3c6   : > { %10131 = vmatpush3.bf16.msra.mxu1 %v10863_v55  ;;  %10159 = vmatpush3.bf16.msra.mxu0 %v10864_v56  ;;  %v10891_v55 = vld [vmem:[%s12919_s2 + $0x108] sm:$0xff]   ;;  %v10888_v56 = vld [vmem:[%s12919_s2 + $0xd8] sm:$0xff]  }
 0x3c7   : > { %10132 = vmatprep.subr.bf16.mxu1 %v11698_v2  ;;  %10160 = vmatprep.subr.bf16.mxu0 %v11698_v2 }
 0x3ca   : > { %10133 = vmatpush3.bf16.msra.mxu1 %v10865_v61  ;;  %10161 = vmatpush3.bf16.msra.mxu0 %v10866_v62  ;;  %v10893_v61 = vld [vmem:[%s12919_s2 + $0x100] sm:$0xff]   ;;  %v10890_v62 = vld [vmem:[%s12919_s2 + $0xd0] sm:$0xff]  }
 0x3cb   : > { %10134 = vmatprep.subr.bf16.mxu1 %v11698_v2  ;;  %10162 = vmatprep.subr.bf16.mxu0 %v11698_v2 }
 0x3ce   : > { %10135 = vmatpush3.bf16.msra.mxu1 %v10867_v63  ;;  %10163 = vmatpush3.bf16.msra.mxu0 %v10868_v1  ;;  %v10892_v63 = vld [vmem:[%s12919_s2 + $0xc8] sm:$0xff]   ;;  %v10894_v1 = vld [vmem:[%s12919_s2 + $0xc0] sm:$0xff]  }
 0x3cf   : > { %10136 = vmatprep.subr.bf16.mxu1 %v11698_v2  ;;  %10164 = vmatprep.subr.bf16.mxu0 %v11698_v2 }
 0x3d2   : > { %10137 = vmatpush3.bf16.msra.mxu1 %v10869_v3  ;;  %10165 = vmatpush3.bf16.msra.mxu0 %v10870_v4  ;;  %v3061_v4 = vld [vmem:[#allocation22 + $0x4] ss:$0 sm:$0xff] }
 0x3d3   : > { %10170 = vmatprep.subr.bf16.mxu1 %v11698_v2  ;;  %10198 = vmatprep.subr.bf16.mxu0 %v11698_v2 }
 0x46d   : > { %v2511_v5 = vpop.f32.mrf.mxu1  ;;  %v2599_v6 = vpop.f32.mrf.mxu0 }
 0x46e   : > { %v12226_v7 = vadd.f32 %v2599_v6, %v2511_v5  ;;  %v3063_v6 = vld [vmem:[#allocation22 + $0x5] ss:$0 sm:$0xff] }
 0x46f   : > { %v10092_v57 = vpop.f32.mrf.mxu1  ;;  %v10112_v8 = vpop.f32.mrf.mxu0 }
 0x471   : > { %v2514_v9 = vpop.f32.mrf.mxu1  ;;  %v2602_v10 = vpop.f32.mrf.mxu0 }
 0x473   : > { %v10093_v11 = vpop.f32.mrf.mxu1  ;;  %v10113_v58 = vpop.f32.mrf.mxu0 }
 0x475   : > { %v2644_v13 = vpop.f32.mrf.mxu1  ;;  %v2796_v14 = vpop.f32.mrf.mxu0 }
 0x476   : > { %v2650_v16 = vpack.c.bf16 %v2644_v13, %v2644_v13  ;;  %v2802_v17 = vpack.c.bf16 %v2796_v14, %v2796_v14  ;;  %v10895_v13 = vld [vmem:[%s12919_s2 + $0x178] sm:$0xff]  }
 0x477   : > { %v10120_v18 = vpop.f32.mrf.mxu1  ;;  %v10148_v60 = vpop.f32.mrf.mxu0 }
 0x478   : > { %10139 = vmatmul.mubr.bf16.vlgmr.msra.gmra.mxu1 %v2650_v16  ;;  %10167 = vmatmul.mubr.bf16.vlgmr.msra.gmra.mxu0 %v2802_v17  ;;  %v10896_v16 = vld [vmem:[%s12919_s2 + $0x170] sm:$0xff]   ;;  %v10897_v18 = vld [vmem:[%s12919_s2 + $0x168] sm:$0xff]  }
 0x479   : > { %10171 = vmatpush3.bf16.msra.mxu1 %v12146_v15  ;;  %v2647_v19 = vpop.f32.mrf.mxu1  ;;  %10174 = vmatprep.mubr.msk.bf16.mxu1 %vm11699_vm4, %v11698_v2  ;;  %v2799_v20 = vpop.f32.mrf.mxu0  ;;  %v10872_v15 = vld [vmem:[#allocation14 + $0x130] sm:$0xff]  }
 0x47a   : > { %10172 = vmatprep.subr.bf16.mxu1 %v11698_v2  ;;  %10214 = vmatprep.mubr.msk.bf16.mxu0 %vm11699_vm4, %v11698_v2  ;;  %v10898_v19 = vld [vmem:[%s12919_s2 + $0x160] sm:$0xff]   ;;  %v10899_v20 = vld [vmem:[%s12919_s2 + $0x158] sm:$0xff]  }
 0x47b   : > { %v10121_v21 = vpop.f32.mrf.mxu1  ;;  %v10149_v22 = vpop.f32.mrf.mxu0  ;;  %10199 = vmatpush3.bf16.msra.mxu0 %v10879_v30  ;;  %v10909_v30 = vld [vmem:[%s12919_s2 + $0x1e0] sm:$0xff]  }
 0x47c   : > { %10200 = vmatprep.subr.bf16.mxu0 %v11698_v2  ;;  %v10900_v21 = vld [vmem:[%s12919_s2 + $0x150] sm:$0xff]   ;;  %v10901_v22 = vld [vmem:[%s12919_s2 + $0x148] sm:$0xff]  }
 0x47d   : > { %10173 = vmatpush3.bf16.msra.mxu1 %v12152_v59  ;;  %v10874_v59 = vld [vmem:[#allocation14 + $0x120] sm:$0xff]  }
 0x47e   : > { %10178 = vmatprep.subr.bf16.mxu1 %v11698_v2 }
 0x47f   : > { %10201 = vmatpush3.bf16.msra.mxu0 %v10881_v31  ;;  %v10911_v31 = vld [vmem:[%s12919_s2 + $0x1d8] sm:$0xff]  }
 0x480   : > { %10175 = vmatmul.mubr.msk.bf16.vlgmr.msra.gmra.mxu1 %vm2301_vm10, %v8775_v23  ;;  %10202 = vmatprep.subr.bf16.mxu0 %v11698_v2  ;;  %v10902_v23 = vld [vmem:[%s12919_s2 + $0x140] sm:$0xff]  }
 0x481   : > { %10179 = vmatpush3.bf16.msra.mxu1 %v10871_v24  ;;  %10194 = vmatprep.mubr.msk.bf16.mxu1 %vm11699_vm4, %v11698_v2 }
 0x482   : > { %10180 = vmatprep.subr.bf16.mxu1 %v11698_v2 }
 0x483   : > { %10203 = vmatpush3.bf16.msra.mxu0 %v10883_v32  ;;  %v10913_v32 = vld [vmem:[%s12919_s2 + $0x1d0] sm:$0xff]  }
 0x484   : > { %10204 = vmatprep.subr.bf16.mxu0 %v11698_v2 }
 0x485   : > { %10181 = vmatpush3.bf16.msra.mxu1 %v10872_v15 }
 0x486   : > { %10182 = vmatprep.subr.bf16.mxu1 %v11698_v2 }
 0x487   : > { %10205 = vmatpush3.bf16.msra.mxu0 %v10885_v51 }
 0x488   : > { %10206 = vmatprep.subr.bf16.mxu0 %v11698_v2 }
 0x489   : > { %10183 = vmatpush3.bf16.msra.mxu1 %v10873_v25  ;;  %v10903_v25 = vld [vmem:[%s12919_s2 + $0x1f8] sm:$0xff]  }
 0x48a   : > { %10184 = vmatprep.subr.bf16.mxu1 %v11698_v2 }
 0x48b   : > { %10207 = vmatpush3.bf16.msra.mxu0 %v10887_v52  ;;  %v3395_v52 = vld [vmem:[#allocation22 + $0x7] ss:$0 sm:$0xff] }
 0x48c   : > { %10208 = vmatprep.subr.bf16.mxu0 %v11698_v2 }
 0x48d   : > { %10185 = vmatpush3.bf16.msra.mxu1 %v10874_v59  ;;  %v10904_v59 = vld [vmem:[%s12919_s2 + $0x1b8] sm:$0xff]  }
 0x48e   : > { %10186 = vmatprep.subr.bf16.mxu1 %v11698_v2 }
 0x48f   : > { %10209 = vmatpush3.bf16.msra.mxu0 %v10889_v53 }
 0x490   : > { %10210 = vmatprep.subr.bf16.mxu0 %v11698_v2 }
 0x491   : > { %10187 = vmatpush3.bf16.msra.mxu1 %v10875_v26  ;;  %v10905_v26 = vld [vmem:[%s12919_s2 + $0x1f0] sm:$0xff]  }
 0x492   : > { %10188 = vmatprep.subr.bf16.mxu1 %v11698_v2 }
 0x493   : > { %10211 = vmatpush3.bf16.msra.mxu0 %v10891_v55 }
 0x494   : > { %10212 = vmatprep.subr.bf16.mxu0 %v11698_v2 }
 0x495   : > { %10189 = vmatpush3.bf16.msra.mxu1 %v10876_v27  ;;  %v10906_v27 = vld [vmem:[%s12919_s2 + $0x1b0] sm:$0xff]  }
 0x496   : > { %10190 = vmatprep.subr.bf16.mxu1 %v11698_v2 }
 0x497   : > { %10213 = vmatpush3.bf16.msra.mxu0 %v10893_v61 }
 0x498   : > { %10238 = vmatprep.subr.bf16.mxu0 %v11698_v2 }
 0x499   : > { %10191 = vmatpush3.bf16.msra.mxu1 %v10877_v28  ;;  %v10907_v28 = vld [vmem:[%s12919_s2 + $0x1e8] sm:$0xff]  }
 0x49a   : > { %10192 = vmatprep.subr.bf16.mxu1 %v11698_v2 }
 0x49d   : > { %10193 = vmatpush3.bf16.msra.mxu1 %v10878_v29  ;;  %v10908_v29 = vld [vmem:[%s12919_s2 + $0x1a8] sm:$0xff]  }
 0x49e   : > { %10218 = vmatprep.subr.bf16.mxu1 %v11698_v2 }
 0x538   : > { %v2750_v33 = vpop.f32.mrf.mxu1  ;;  %v2902_v34 = vpop.f32.mrf.mxu0 }
 0x539   : > { %v2756_v35 = vadd.f32 %v2750_v33, %v12226_v7  ;;  %v10910_v33 = vld [vmem:[%s12919_s2 + $0x1a0] sm:$0xff]  }
 0x53a   : > { %v10140_v36 = vpop.f32.mrf.mxu1  ;;  %v10168_v37 = vpop.f32.mrf.mxu0 }
 0x53b   : > { %v2908_v38 = vadd.f32 %v2902_v34, %v2756_v35  ;;  %v10915_v34 = vld [vmem:[%s12919_s2 + $0x1c8] sm:$0xff]   ;;  %v10912_v35 = vld [vmem:[%s12919_s2 + $0x198] sm:$0xff]   ;;  %v10917_v36 = vld [vmem:[%s12919_s2 + $0x1c0] sm:$0xff]  }
 0x53c   : > { %v2753_v39 = vpop.f32.mrf.mxu1  ;;  %v2905_v40 = vpop.f32.mrf.mxu0  ;;  %v10914_v37 = vld [vmem:[%s12919_s2 + $0x190] sm:$0xff]  }
 0x53d   : > { %v10918_v39 = vld [vmem:[%s12919_s2 + $0x180] sm:$0xff]  }
 0x53e   : > { %v10141_v41 = vpop.f32.mrf.mxu1  ;;  %v10169_v42 = vpop.f32.mrf.mxu0 }
 0x540   : > { %v2948_v43 = vpop.f32.mrf.mxu1 }
 0x541   : > { %v2954_v45 = vpack.c.bf16 %v2948_v43, %v2948_v43 }
 0x542   : > { %v10176_v46 = vpop.f32.mrf.mxu1 }
 0x543   : > { %10195 = vmatmul.mubr.bf16.vlgmr.msra.gmra.mxu1 %v2954_v45 }
 0x544   : > { %v2951_v47 = vpop.f32.mrf.mxu1  ;;  %10219 = vmatpush3.bf16.msra.mxu1 %v10880_v44  ;;  %10234 = vmatprep.mubr.msk.bf16.mxu1 %vm11699_vm4, %v11698_v2 }
 0x545   : > { %10220 = vmatprep.subr.bf16.mxu1 %v11698_v2 }
 0x546   : > { %v10177_v49 = vpop.f32.mrf.mxu1 }
 0x548   : > { %10221 = vmatpush3.bf16.msra.mxu1 %v10882_v48 }
 0x549   : > { %10222 = vmatprep.subr.bf16.mxu1 %v11698_v2 }
 0x54c   : > { %10223 = vmatpush3.bf16.msra.mxu1 %v10884_v50  ;;  %v3393_v50 = vld [vmem:[#allocation22 + $0x6] ss:$0 sm:$0xff] }
 0x54d   : > { %10224 = vmatprep.subr.bf16.mxu1 %v11698_v2 }
 0x550   : > { %10225 = vmatpush3.bf16.msra.mxu1 %v10886_v54 }
 0x551   : > { %10226 = vmatprep.subr.bf16.mxu1 %v11698_v2 }
 0x554   : > { %10227 = vmatpush3.bf16.msra.mxu1 %v10888_v56 }
 0x555   : > { %10228 = vmatprep.subr.bf16.mxu1 %v11698_v2 }
 0x558   : > { %10229 = vmatpush3.bf16.msra.mxu1 %v10890_v62 }
 0x559   : > { %10230 = vmatprep.subr.bf16.mxu1 %v11698_v2 }
 0x55c   : > { %10231 = vmatpush3.bf16.msra.mxu1 %v10892_v63 }
 0x55d   : > { %10232 = vmatprep.subr.bf16.mxu1 %v11698_v2 }
 0x560   : > { %10233 = vmatpush3.bf16.msra.mxu1 %v10894_v1  ;;  %v10919_v1 = vld [vmem:[%s12919_s2 + $0x238] sm:$0xff]  }
 0x561   : > { %10258 = vmatprep.subr.bf16.mxu1 %v11698_v2 }
 0x603   : > { %v3054_v3 = vpop.f32.mrf.mxu1 }
 0x604   : > { %v3060_v5 = vadd.f32 %v3054_v3, %v2908_v38  ;;  %v10916_v38 = vld [vmem:[%s12919_s2 + $0x188] sm:$0xff]  }
 0x605   : > { %v10196_v7 = vpop.f32.mrf.mxu1 }
 0x606   : > { %v3062_v57 = vmul.f32 %v3061_v4, %v3060_v5  ;;  %v10920_v4 = vld [vmem:[%s12919_s2 + $0x230] sm:$0xff]  }
 0x607   : > { %v3057_v8 = vpop.f32.mrf.mxu1 }
 0x608   : > { %v3064_v9 = vadd.f32 %v3063_v6, %v3062_v57  ;;  %v10921_v6 = vld [vmem:[%s12919_s2 + $0x228] sm:$0xff]   ;;  %v10922_v57 = vld [vmem:[%s12919_s2 + $0x220] sm:$0xff]   ;;  %v10923_v8 = vld [vmem:[%s12919_s2 + $0x218] sm:$0xff]  }
 0x609   : > { %v10197_v10 = vpop.f32.mrf.mxu1 }
 0x60a   : > { %vm3065_vm11 = vcmp.ge.f32.partialorder %v3064_v9, 0.0  ;;  %v3066_v11 = vmul.f32 0.01, %v3064_v9  ;;  %v10925_v10 = vld [vmem:[%s12919_s2 + $0x208] sm:$0xff]  }
 0x60c   : > { %v3067_v58 = vsel %vm3065_vm11, %v3064_v9, %v3066_v11  ;;  %v10924_v9 = vld [vmem:[%s12919_s2 + $0x210] sm:$0xff]   ;;  %v10926_v11 = vld [vmem:[%s12919_s2 + $0x200] sm:$0xff]  }
 0x60d   : > { %3070 = vst [vmem:[#allocation5 + $0x1] sm:$0xff] %v3067_v58  ;;  %v3091_v14 = vpack.c.bf16 %v3067_v58, %v3067_v58 }
 0x60f   : > { %10215 = vmatmul.mubr.bf16.vlgmr.msra.gmra.mxu0 %v3091_v14  ;;  %v10927_v14 = vld [vmem:[#allocation14 + $0x178] sm:$0xff]  }
 0x610   : > { %10239 = vmatpush3.bf16.msra.mxu0 %v10895_v13  ;;  %10254 = vmatprep.mubr.msk.bf16.mxu0 %vm11699_vm4, %v11698_v2 }
 0x611   : > { %10240 = vmatprep.subr.bf16.mxu0 %v11698_v2 }
 0x614   : > { %v3071_v17 = vld [vmem:[#allocation5] sm:$0xff]  ;;  %10241 = vmatpush3.bf16.msra.mxu0 %v10896_v16  ;;  %v10928_v16 = vld [vmem:[#allocation14 + $0x170] sm:$0xff]  }
 0x615   : > { %v3072_v60 = vpack.c.bf16 %v3071_v17, %v3071_v17  ;;  %10242 = vmatprep.subr.bf16.mxu0 %v11698_v2  ;;  %v3285_v24 = vld [vmem:[#allocation5 + $0x2] sm:$0xff] }
 0x616   : > { %v3286_v15 = vpack.c.bf16 %v3285_v24, %v3285_v24  ;;  %v10930_v17 = vld [vmem:[#allocation14 + $0x168] sm:$0xff]  }
 0x617   : > { %10235 = vmatmul.mubr.bf16.vlgmr.msra.gmra.mxu1 %v3072_v60  ;;  %v10934_v60 = vld [vmem:[#allocation14 + $0x158] sm:$0xff]  }
 0x618   : > { %10243 = vmatpush3.bf16.msra.mxu0 %v10897_v18  ;;  %10274 = vmatprep.mubr.msk.bf16.mxu1 %vm11699_vm4, %v11698_v2  ;;  %v10932_v18 = vld [vmem:[#allocation14 + $0x160] sm:$0xff]  }
 0x619   : > { %10244 = vmatprep.subr.bf16.mxu0 %v11698_v2  ;;  %10259 = vmatpush3.bf16.msra.mxu1 %v10903_v25 }
 0x61a   : > { %10260 = vmatprep.subr.bf16.mxu1 %v11698_v2 }
 0x61c   : > { %10245 = vmatpush3.bf16.msra.mxu0 %v10898_v19  ;;  %v10936_v19 = vld [vmem:[#allocation14 + $0x150] sm:$0xff]  }
 0x61d   : > { %10246 = vmatprep.subr.bf16.mxu0 %v11698_v2  ;;  %10261 = vmatpush3.bf16.msra.mxu1 %v10905_v26 }
 0x61e   : > { %10262 = vmatprep.subr.bf16.mxu1 %v11698_v2 }
 0x620   : > { %10247 = vmatpush3.bf16.msra.mxu0 %v10899_v20  ;;  %v10938_v20 = vld [vmem:[#allocation14 + $0x148] sm:$0xff]  }
 0x621   : > { %10248 = vmatprep.subr.bf16.mxu0 %v11698_v2  ;;  %10263 = vmatpush3.bf16.msra.mxu1 %v10907_v28 }
 0x622   : > { %10264 = vmatprep.subr.bf16.mxu1 %v11698_v2 }
 0x624   : > { %10249 = vmatpush3.bf16.msra.mxu0 %v10900_v21  ;;  %v10940_v21 = vld [vmem:[#allocation14 + $0x140] sm:$0xff]  }
 0x625   : > { %10250 = vmatprep.subr.bf16.mxu0 %v11698_v2  ;;  %10265 = vmatpush3.bf16.msra.mxu1 %v10909_v30  ;;  %v3725_v30 = vld [vmem:[#allocation22 + $0x20] ss:$0 sm:$0xff] }
 0x626   : > { %10266 = vmatprep.subr.bf16.mxu1 %v11698_v2 }
 0x628   : > { %10251 = vmatpush3.bf16.msra.mxu0 %v10901_v22 }
 0x629   : > { %10252 = vmatprep.subr.bf16.mxu0 %v11698_v2  ;;  %10267 = vmatpush3.bf16.msra.mxu1 %v10911_v31 }
 0x62a   : > { %10268 = vmatprep.subr.bf16.mxu1 %v11698_v2 }
 0x62c   : > { %10253 = vmatpush3.bf16.msra.mxu0 %v10902_v23 }
 0x62d   : > { %10278 = vmatprep.subr.bf16.mxu0 %v11698_v2  ;;  %10269 = vmatpush3.bf16.msra.mxu1 %v10913_v32  ;;  %v3727_v32 = vld [vmem:[#allocation22 + $0x21] ss:$0 sm:$0xff] }
 0x62e   : > { %10270 = vmatprep.subr.bf16.mxu1 %v11698_v2 }
 0x62f   : > { %10255 = vmatmul.mubr.bf16.vlgmr.msra.gmra.mxu0 %v3286_v15 }
 0x630   : > { %10294 = vmatprep.mubr.msk.bf16.mxu0 %vm11699_vm4, %v11698_v2  ;;  %10279 = vmatpush3.bf16.msra.mxu0 %v10904_v59 }
 0x631   : > { %10280 = vmatprep.subr.bf16.mxu0 %v11698_v2  ;;  %10271 = vmatpush3.bf16.msra.mxu1 %v10915_v34 }
 0x632   : > { %10272 = vmatprep.subr.bf16.mxu1 %v11698_v2 }
 0x634   : > { %10281 = vmatpush3.bf16.msra.mxu0 %v10906_v27 }
 0x635   : > { %10282 = vmatprep.subr.bf16.mxu0 %v11698_v2  ;;  %10273 = vmatpush3.bf16.msra.mxu1 %v10917_v36 }
 0x636   : > { %10298 = vmatprep.subr.bf16.mxu1 %v11698_v2 }
 0x638   : > { %10283 = vmatpush3.bf16.msra.mxu0 %v10908_v29 }
 0x639   : > { %10284 = vmatprep.subr.bf16.mxu0 %v11698_v2 }
 0x63c   : > { %10285 = vmatpush3.bf16.msra.mxu0 %v10910_v33 }
 0x63d   : > { %10286 = vmatprep.subr.bf16.mxu0 %v11698_v2 }
 0x640   : > { %10287 = vmatpush3.bf16.msra.mxu0 %v10912_v35 }
 0x641   : > { %10288 = vmatprep.subr.bf16.mxu0 %v11698_v2 }
 0x644   : > { %10289 = vmatpush3.bf16.msra.mxu0 %v10914_v37 }
 0x645   : > { %10290 = vmatprep.subr.bf16.mxu0 %v11698_v2 }
 0x648   : > { %10291 = vmatpush3.bf16.msra.mxu0 %v10916_v38 }
 0x649   : > { %10292 = vmatprep.subr.bf16.mxu0 %v11698_v2 }
 0x64c   : > { %10293 = vmatpush3.bf16.msra.mxu0 %v10918_v39 }
 0x64d   : > { %10318 = vmatprep.subr.bf16.mxu0 %v11698_v2 }
 0x6cf   : > { %v3191_v40 = vpop.f32.mrf.mxu0 }
 0x6d1   : > { %v10216_v41 = vpop.f32.mrf.mxu0 }
 0x6d3   : > { %v3194_v42 = vpop.f32.mrf.mxu0 }
 0x6d5   : > { %v10217_v43 = vpop.f32.mrf.mxu0 }
 0x6d7   : > { %v3279_v44 = vpop.f32.mrf.mxu1 }
 0x6d8   : > { %v3280_v48 = vadd.f32 %v3279_v44, %v3191_v40  ;;  %v3738_v44 = vld [vmem:[#allocation16] sm:$0x3] }
 0x6d9   : > { %v10236_v45 = vpop.f32.mrf.mxu1 }
 0x6da   : > { %v3806_v45 = vld [vmem:[#allocation16 + $0x2] sm:$0x3] }
 0x6db   : > { %v3282_v46 = vpop.f32.mrf.mxu1 }
 0x6dc   : > { %v10929_v46 = vld [vmem:[#allocation14 + $0x1b8] sm:$0xff]  }
 0x6dd   : > { %v10237_v47 = vpop.f32.mrf.mxu1 }
 0x6de   : > { %v10931_v47 = vld [vmem:[#allocation14 + $0x1b0] sm:$0xff]  }
 0x6ef   : > { %v3386_v49 = vpop.f32.mrf.mxu0 }
 0x6f0   : > { %v3392_v51 = vadd.f32 %v3386_v49, %v3280_v48  ;;  %v10933_v48 = vld [vmem:[#allocation14 + $0x1a8] sm:$0xff]   ;;  %v10935_v49 = vld [vmem:[#allocation14 + $0x1a0] sm:$0xff]  }
 0x6f1   : > { %v10256_v53 = vpop.f32.mrf.mxu0 }
 0x6f2   : > { %v3394_v54 = vmul.f32 %v3393_v50, %v3392_v51  ;;  %v10937_v50 = vld [vmem:[#allocation14 + $0x198] sm:$0xff]   ;;  %v10939_v51 = vld [vmem:[#allocation14 + $0x190] sm:$0xff]   ;;  %v10942_v53 = vld [vmem:[#allocation14 + $0x180] sm:$0xff]  }
 0x6f3   : > { %v3389_v55 = vpop.f32.mrf.mxu0 }
 0x6f4   : > { %v3396_v56 = vadd.f32 %v3395_v52, %v3394_v54  ;;  %v10941_v52 = vld [vmem:[#allocation14 + $0x188] sm:$0xff]  }
 0x6f5   : > { %v10257_v61 = vpop.f32.mrf.mxu0 }
 0x6f6   : > { %vm3397_vm12 = vcmp.ge.f32.partialorder %v3396_v56, 0.0  ;;  %v3398_v62 = vmul.f32 0.01, %v3396_v56 }
 0x6f8   : > { %v3399_v63 = vsel %vm3397_vm12, %v3396_v56, %v3398_v62 }
 0x6f9   : > { %3402 = vst [vmem:[#allocation6 + $0x1] sm:$0xff] %v3399_v63  ;;  %v3423_v3 = vpack.c.bf16 %v3399_v63, %v3399_v63 }
 0x6fb   : > { %10275 = vmatmul.mubr.bf16.vlgmr.msra.gmra.mxu1 %v3423_v3 }
 0x6fc   : > { %10299 = vmatpush3.bf16.msra.mxu1 %v10919_v1  ;;  %10314 = vmatprep.mubr.msk.bf16.mxu1 %vm11699_vm4, %v11698_v2  ;;  %v4197_v1 = vld [vmem:[#allocation16 + $0x6] sm:$0x3] }
 0x6fd   : > { %10300 = vmatprep.subr.bf16.mxu1 %v11698_v2 }
 0x700   : > { %v3403_v5 = vld [vmem:[#allocation6] sm:$0xff]  ;;  %10301 = vmatpush3.bf16.msra.mxu1 %v10920_v4  ;;  %v10944_v4 = vld [vmem:[#allocation14 + $0x238] sm:$0xff]  }
 0x701   : > { %v3404_v7 = vpack.c.bf16 %v3403_v5, %v3403_v5  ;;  %10302 = vmatprep.subr.bf16.mxu1 %v11698_v2  ;;  %v3617_v58 = vld [vmem:[#allocation6 + $0x2] sm:$0xff] }
 0x702   : > { %v3618_v13 = vpack.c.bf16 %v3617_v58, %v3617_v58  ;;  %v10947_v58 = vld [vmem:[#allocation14 + $0x1e8] sm:$0xff]  }
 0x703   : > { %10295 = vmatmul.mubr.bf16.vlgmr.msra.gmra.mxu0 %v3404_v7  ;;  %v10946_v7 = vld [vmem:[#allocation14 + $0x230] sm:$0xff]  }
 0x704   : > { %10303 = vmatpush3.bf16.msra.mxu1 %v10921_v6  ;;  %10320 = vmatprep.mubr.msk.bf16.mxu0 %vm11699_vm4, %v11698_v2 }
 0x705   : > { %10304 = vmatprep.subr.bf16.mxu1 %v11698_v2 }
 0x708   : > { %10305 = vmatpush3.bf16.msra.mxu1 %v10922_v57 }
 0x709   : > { %10306 = vmatprep.subr.bf16.mxu1 %v11698_v2 }
 0x70c   : > { %10307 = vmatpush3.bf16.msra.mxu1 %v10923_v8  ;;  %v4045_v8 = vld [vmem:[#allocation16 + $0x4] sm:$0x3] }
 0x70d   : > { %10308 = vmatprep.subr.bf16.mxu1 %v11698_v2 }
 0x710   : > { %10309 = vmatpush3.bf16.msra.mxu1 %v10924_v9  ;;  %v10943_v9 = vld [vmem:[#allocation14 + $0x1f8] sm:$0xff]  }
 0x711   : > { %10310 = vmatprep.subr.bf16.mxu1 %v11698_v2 }
 0x714   : > { %10311 = vmatpush3.bf16.msra.mxu1 %v10925_v10  ;;  %v10948_v10 = vld [vmem:[#allocation14 + $0x228] sm:$0xff]  }
 0x715   : > { %10312 = vmatprep.subr.bf16.mxu1 %v11698_v2 }
 0x718   : > { %10313 = vmatpush3.bf16.msra.mxu1 %v10926_v11  ;;  %v10945_v11 = vld [vmem:[#allocation14 + $0x1f0] sm:$0xff]  }
 0x719   : > { %10350 = vmatprep.subr.bf16.mxu1 %v11698_v2 }
 0x71b   : > { %10315 = vmatmul.mubr.bf16.vlgmr.msra.gmra.mxu1 %v3618_v13  ;;  %v10949_v13 = vld [vmem:[#allocation14 + $0x1e0] sm:$0xff]  }
 0x71c   : > { %10366 = vmatprep.mubr.msk.bf16.mxu1 %vm11699_vm4, %v11698_v2  ;;  %10351 = vmatpush3.bf16.msra.mxu1 %v10927_v14  ;;  %v10950_v14 = vld [vmem:[#allocation14 + $0x220] sm:$0xff]  }
 0x71d   : > { %10352 = vmatprep.subr.bf16.mxu1 %v11698_v2 }
 0x720   : > { %10353 = vmatpush3.bf16.msra.mxu1 %v10928_v16  ;;  %v10951_v16 = vld [vmem:[#allocation14 + $0x1d8] sm:$0xff]  }
 0x721   : > { %10354 = vmatprep.subr.bf16.mxu1 %v11698_v2 }
 0x724   : > { %10355 = vmatpush3.bf16.msra.mxu1 %v10930_v17  ;;  %v10952_v17 = vld [vmem:[#allocation14 + $0x218] sm:$0xff]  }
 0x725   : > { %10356 = vmatprep.subr.bf16.mxu1 %v11698_v2 }
 0x728   : > { %10357 = vmatpush3.bf16.msra.mxu1 %v10932_v18  ;;  %v10953_v18 = vld [vmem:[#allocation14 + $0x1d0] sm:$0xff]  }
 0x729   : > { %10358 = vmatprep.subr.bf16.mxu1 %v11698_v2 }
 0x72c   : > { %10359 = vmatpush3.bf16.msra.mxu1 %v10934_v60  ;;  %v10954_v60 = vld [vmem:[#allocation14 + $0x210] sm:$0xff]  }
 0x72d   : > { %10360 = vmatprep.subr.bf16.mxu1 %v11698_v2 }
 0x730   : > { %10361 = vmatpush3.bf16.msra.mxu1 %v10936_v19  ;;  %v10955_v19 = vld [vmem:[#allocation14 + $0x1c8] sm:$0xff]  }
 0x731   : > { %10362 = vmatprep.subr.bf16.mxu1 %v11698_v2 }
 0x734   : > { %10363 = vmatpush3.bf16.msra.mxu1 %v10938_v20  ;;  %v10956_v20 = vld [vmem:[#allocation14 + $0x208] sm:$0xff]  }
 0x735   : > { %10364 = vmatprep.subr.bf16.mxu1 %v11698_v2 }
 0x738   : > { %10365 = vmatpush3.bf16.msra.mxu1 %v10940_v21  ;;  %v10957_v21 = vld [vmem:[#allocation14 + $0x1c0] sm:$0xff]  }
 0x739   : > { %10396 = vmatprep.subr.bf16.mxu1 %v11698_v2 }
 0x7bb   : > { %v3523_v22 = vpop.f32.mrf.mxu1 }
 0x7bd   : > { %v10276_v23 = vpop.f32.mrf.mxu1 }
 0x7bf   : > { %v3526_v24 = vpop.f32.mrf.mxu1 }
 0x7c1   : > { %v10277_v15 = vpop.f32.mrf.mxu1 }
 0x7c3   : > { %v3611_v25 = vpop.f32.mrf.mxu0 }
 0x7c4   : > { %v3612_v28 = vadd.f32 %v3611_v25, %v3523_v22  ;;  %v10958_v22 = vld [vmem:[#allocation14 + $0x200] sm:$0xff]  }
 0x7c5   : > { %v10296_v59 = vpop.f32.mrf.mxu0 }
 0x7c7   : > { %v3614_v26 = vpop.f32.mrf.mxu0 }
 0x7c9   : > { %v10297_v27 = vpop.f32.mrf.mxu0 }
 0x7db   : > { %v3718_v29 = vpop.f32.mrf.mxu1 }
 0x7dc   : > { %v3724_v31 = vadd.f32 %v3718_v29, %v3612_v28 }
 0x7dd   : > { %v10316_v33 = vpop.f32.mrf.mxu1 }
 0x7de   : > { %v3726_v34 = vmul.f32 %v3725_v30, %v3724_v31 }
 0x7df   : > { %v3721_v35 = vpop.f32.mrf.mxu1 }
 0x7e0   : > { %v3728_v36 = vadd.f32 %v3727_v32, %v3726_v34 }
 0x7e1   : > { %v10317_v37 = vpop.f32.mrf.mxu1 }
 0x7e2   : > { %vm3729_vm13 = vcmp.ge.f32.partialorder %v3728_v36, 0.0  ;;  %v3730_v38 = vmul.f32 0.01, %v3728_v36 }
 0x7e4   : > { %v12465_v39 = vsel %vm3729_vm13, %v3728_v36, %v3730_v38 }
 0x7e5   : > { %3734 = vst [vmem:[#allocation7 + $0x2] sm:$0xff] %v12465_v39 }
 0x7ec   : > { %v3735_v40 = vld [vmem:[#allocation7] sm:$0xff]  ;;  %v3736_v41 = vld [vmem:[#allocation7 + $0x8] sm:$0xf] }
 0x7ed   : > { %v3737_v42 = vpack.c.bf16 %v3736_v41, %v3735_v40  ;;  %v4349_v41 = vld [vmem:[#allocation16 + $0x8] sm:$0x3] }
 0x7ef   : > { %v12468_v43 = vsel %vm3743_vm14, %v3737_v42, 0  ;;  %v10959_v42 = vld [vmem:[#allocation14 + $0x278] sm:$0xff]  }
 0x7f0   : > { %10319 = vmatpush3.bf16.msra.mxu0 %v12468_v43 }
 0x7f1   : > { %10324 = vmatprep.subr.bf16.mxu0 %v11698_v2 }
 0x7f3   : > { %10321 = vmatmul.mubr.msk.bf16.vlgmr.msra.gmra.mxu0 %vm3739_vm15, %v3738_v44  ;;  %v10960_v44 = vld [vmem:[#allocation14 + $0x270] sm:$0xff]  }
 0x7f4   : > { %10325 = vmatpush3.bf16.msra.mxu0 %v12468_v43  ;;  %10326 = vmatprep.mubr.msk.bf16.mxu0 %vm11699_vm4, %v11698_v2 }
 0x7f5   : > { %10330 = vmatprep.subr.bf16.mxu0 %v11698_v2 }
 0x7fb   : > { %10327 = vmatmul.mubr.msk.bf16.vlgmr.msra.gmra.mxu0 %vm3739_vm15, %v3806_v45  ;;  %v10962_v45 = vld [vmem:[#allocation14 + $0x260] sm:$0xff]  }
 0x7fc   : > { %10331 = vmatpush3.bf16.msra.mxu0 %v10929_v46  ;;  %10346 = vmatprep.mubr.msk.bf16.mxu0 %vm11699_vm4, %v11698_v2  ;;  %v10963_v46 = vld [vmem:[#allocation14 + $0x258] sm:$0xff]  }
 0x7fd   : > { %10332 = vmatprep.subr.bf16.mxu0 %v11698_v2 }
 0x800   : > { %10333 = vmatpush3.bf16.msra.mxu0 %v10931_v47  ;;  %v10964_v47 = vld [vmem:[#allocation14 + $0x250] sm:$0xff]  }
 0x801   : > { %10334 = vmatprep.subr.bf16.mxu0 %v11698_v2 }
 0x804   : > { %10335 = vmatpush3.bf16.msra.mxu0 %v10933_v48  ;;  %v10965_v48 = vld [vmem:[#allocation14 + $0x248] sm:$0xff]  }
 0x805   : > { %10336 = vmatprep.subr.bf16.mxu0 %v11698_v2 }
 0x808   : > { %10337 = vmatpush3.bf16.msra.mxu0 %v10935_v49  ;;  %v10966_v49 = vld [vmem:[#allocation14 + $0x240] sm:$0xff]  }
 0x809   : > { %10338 = vmatprep.subr.bf16.mxu0 %v11698_v2 }
 0x80c   : > { %10339 = vmatpush3.bf16.msra.mxu0 %v10937_v50  ;;  %v10967_v50 = vld [vmem:[%s12919_s2 + $0x2b8] sm:$0xff]  }
 0x80d   : > { %10340 = vmatprep.subr.bf16.mxu0 %v11698_v2 }
 0x810   : > { %10341 = vmatpush3.bf16.msra.mxu0 %v10939_v51  ;;  %v10969_v51 = vld [vmem:[%s12919_s2 + $0x2b0] sm:$0xff]  }
 0x811   : > { %10342 = vmatprep.subr.bf16.mxu0 %v11698_v2 }
 0x814   : > { %10343 = vmatpush3.bf16.msra.mxu0 %v10941_v52  ;;  %v10971_v52 = vld [vmem:[%s12919_s2 + $0x2a8] sm:$0xff]  }
 0x815   : > { %10344 = vmatprep.subr.bf16.mxu0 %v11698_v2 }
 0x818   : > { %10345 = vmatpush3.bf16.msra.mxu0 %v10942_v53 }
 0x819   : > { %10370 = vmatprep.subr.bf16.mxu0 %v11698_v2 }
 0x8b3   : > { %v3781_v54 = vpop.f32.mrf.mxu0 }
 0x8b4   : > { %v3787_v55 = vpack.c.bf16 %v3781_v54, %v3781_v54 }
 0x8b5   : > { %v10322_v56 = vpop.f32.mrf.mxu0 }
 0x8b6   : > { %10367 = vmatmul.mubr.bf16.vlgmr.msra.gmra.mxu1 %v3787_v55 }
 0x8b7   : > { %10397 = vmatpush3.bf16.msra.mxu1 %v12468_v43  ;;  %v3784_v61 = vpop.f32.mrf.mxu0  ;;  %10398 = vmatprep.mubr.msk.bf16.mxu1 %vm11699_vm4, %v11698_v2 }
 0x8b8   : > { %10402 = vmatprep.subr.bf16.mxu1 %v11698_v2 }
 0x8b9   : > { %v10323_v62 = vpop.f32.mrf.mxu0 }
 0x8bb   : > { %v3844_v63 = vpop.f32.mrf.mxu0 }
 0x8bc   : > { %v3850_v3 = vpack.c.bf16 %v3844_v63, %v3844_v63 }
 0x8bd   : > { %v10328_v5 = vpop.f32.mrf.mxu0 }
 0x8be   : > { %10347 = vmatmul.mubr.bf16.vlgmr.msra.gmra.mxu0 %v3850_v3  ;;  %10399 = vmatmul.mubr.msk.bf16.vlgmr.msra.gmra.mxu1 %vm3739_vm15, %v4197_v1 }
 0x8bf   : > { %10371 = vmatpush3.bf16.msra.mxu0 %v12468_v43  ;;  %v3847_v6 = vpop.f32.mrf.mxu0  ;;  %10372 = vmatprep.mubr.msk.bf16.mxu0 %vm11699_vm4, %v11698_v2 }
 0x8c0   : > { %10376 = vmatprep.subr.bf16.mxu0 %v11698_v2  ;;  %10403 = vmatpush3.bf16.msra.mxu1 %v10944_v4  ;;  %v10968_v6 = vld [vmem:[%s12919_s2 + $0x278] sm:$0xff]  }
 0x8c1   : > { %v10329_v57 = vpop.f32.mrf.mxu0  ;;  %10404 = vmatprep.subr.bf16.mxu1 %v11698_v2  ;;  %10418 = vmatprep.mubr.msk.bf16.mxu1 %vm11699_vm4, %v11698_v2 }
 0x8c4   : > { %10405 = vmatpush3.bf16.msra.mxu1 %v10946_v7 }
 0x8c5   : > { %10406 = vmatprep.subr.bf16.mxu1 %v11698_v2 }
 0x8c6   : > { %10373 = vmatmul.mubr.msk.bf16.vlgmr.msra.gmra.mxu0 %vm3739_vm15, %v4045_v8 }
 0x8c7   : > { %10377 = vmatpush3.bf16.msra.mxu0 %v10943_v9  ;;  %10392 = vmatprep.mubr.msk.bf16.mxu0 %vm11699_vm4, %v11698_v2  ;;  %v10970_v9 = vld [vmem:[%s12919_s2 + $0x270] sm:$0xff]  }
 0x8c8   : > { %10378 = vmatprep.subr.bf16.mxu0 %v11698_v2  ;;  %10407 = vmatpush3.bf16.msra.mxu1 %v10948_v10 }
 0x8c9   : > { %10408 = vmatprep.subr.bf16.mxu1 %v11698_v2 }
 0x8cb   : > { %10379 = vmatpush3.bf16.msra.mxu0 %v10945_v11  ;;  %v10972_v11 = vld [vmem:[%s12919_s2 + $0x268] sm:$0xff]  }
 0x8cc   : > { %10380 = vmatprep.subr.bf16.mxu0 %v11698_v2  ;;  %10409 = vmatpush3.bf16.msra.mxu1 %v10950_v14  ;;  %v10975_v14 = vld [vmem:[%s12919_s2 + $0x298] sm:$0xff]  }
 0x8cd   : > { %10410 = vmatprep.subr.bf16.mxu1 %v11698_v2 }
 0x8cf   : > { %10381 = vmatpush3.bf16.msra.mxu0 %v10947_v58  ;;  %v10973_v58 = vld [vmem:[%s12919_s2 + $0x2a0] sm:$0xff]  }
 0x8d0   : > { %10382 = vmatprep.subr.bf16.mxu0 %v11698_v2  ;;  %10411 = vmatpush3.bf16.msra.mxu1 %v10952_v17  ;;  %v10977_v17 = vld [vmem:[%s12919_s2 + $0x290] sm:$0xff]  }
 0x8d1   : > { %10412 = vmatprep.subr.bf16.mxu1 %v11698_v2 }
 0x8d3   : > { %10383 = vmatpush3.bf16.msra.mxu0 %v10949_v13  ;;  %v10974_v13 = vld [vmem:[%s12919_s2 + $0x260] sm:$0xff]  }
 0x8d4   : > { %10384 = vmatprep.subr.bf16.mxu0 %v11698_v2  ;;  %10413 = vmatpush3.bf16.msra.mxu1 %v10954_v60  ;;  %v10979_v60 = vld [vmem:[%s12919_s2 + $0x288] sm:$0xff]  }
 0x8d5   : > { %10414 = vmatprep.subr.bf16.mxu1 %v11698_v2 }
 0x8d7   : > { %10385 = vmatpush3.bf16.msra.mxu0 %v10951_v16  ;;  %v10976_v16 = vld [vmem:[%s12919_s2 + $0x258] sm:$0xff]  }
 0x8d8   : > { %10386 = vmatprep.subr.bf16.mxu0 %v11698_v2  ;;  %10415 = vmatpush3.bf16.msra.mxu1 %v10956_v20  ;;  %v10981_v20 = vld [vmem:[%s12919_s2 + $0x280] sm:$0xff]  }
 0x8d9   : > { %10416 = vmatprep.subr.bf16.mxu1 %v11698_v2 }
 0x8db   : > { %10387 = vmatpush3.bf16.msra.mxu0 %v10953_v18  ;;  %v10978_v18 = vld [vmem:[%s12919_s2 + $0x250] sm:$0xff]  }
 0x8dc   : > { %10388 = vmatprep.subr.bf16.mxu0 %v11698_v2  ;;  %10417 = vmatpush3.bf16.msra.mxu1 %v10958_v22 }
 0x8dd   : > { %10448 = vmatprep.subr.bf16.mxu1 %v11698_v2 }
 0x8df   : > { %10389 = vmatpush3.bf16.msra.mxu0 %v10955_v19  ;;  %v10980_v19 = vld [vmem:[%s12919_s2 + $0x248] sm:$0xff]  }
 0x8e0   : > { %10390 = vmatprep.subr.bf16.mxu0 %v11698_v2 }
 0x8e3   : > { %10391 = vmatpush3.bf16.msra.mxu0 %v10957_v21  ;;  %v10982_v21 = vld [vmem:[%s12919_s2 + $0x240] sm:$0xff]  }
 0x8e4   : > { %10422 = vmatprep.subr.bf16.mxu0 %v11698_v2 }
 0x976   : > { %v4038_v23 = vpop.f32.mrf.mxu1 }
 0x978   : > { %v10368_v24 = vpop.f32.mrf.mxu1 }
 0x97a   : > { %v4041_v15 = vpop.f32.mrf.mxu1 }
 0x97b   : > { %v4502_v15 = vld [vmem:[#allocation22 + $0x23] ss:$0 sm:$0xff] }
 0x97c   : > { %v10369_v25 = vpop.f32.mrf.mxu1 }
 0x97e   : > { %v3950_v59 = vpop.f32.mrf.mxu0  ;;  %v4235_v26 = vpop.f32.mrf.mxu1 }
 0x97f   : > { %v4039_v27 = vadd.f32 %v4038_v23, %v3950_v59  ;;  %v4241_v28 = vpack.c.bf16 %v4235_v26, %v4235_v26  ;;  %v4500_v23 = vld [vmem:[#allocation22 + $0x22] ss:$0 sm:$0xff] }
 0x980   : > { %v10348_v29 = vpop.f32.mrf.mxu0  ;;  %v10400_v30 = vpop.f32.mrf.mxu1 }
 0x981   : > { %10419 = vmatmul.mubr.bf16.vlgmr.msra.gmra.mxu1 %v4241_v28 }
 0x982   : > { %v3953_v31 = vpop.f32.mrf.mxu0  ;;  %v4238_v32 = vpop.f32.mrf.mxu1  ;;  %10464 = vmatprep.mubr.msk.bf16.mxu1 %vm11699_vm4, %v11698_v2  ;;  %10449 = vmatpush3.bf16.msra.mxu1 %v10967_v50  ;;  %v10995_v50 = vld [vmem:[%s12919_s2 + $0x368] sm:$0xff]  }
 0x983   : > { %10450 = vmatprep.subr.bf16.mxu1 %v11698_v2 }
 0x984   : > { %v10349_v33 = vpop.f32.mrf.mxu0  ;;  %v10401_v34 = vpop.f32.mrf.mxu1 }
 0x985   : > { %v10983_v33 = vld [vmem:[%s12919_s2 + $0x2f8] sm:$0xff]  }
 0x986   : > { %v4083_v35 = vpop.f32.mrf.mxu0  ;;  %10451 = vmatpush3.bf16.msra.mxu1 %v10969_v51  ;;  %v10996_v51 = vld [vmem:[%s12919_s2 + $0x328] sm:$0xff]  }
 0x987   : > { %v4089_v36 = vpack.c.bf16 %v4083_v35, %v4083_v35  ;;  %10452 = vmatprep.subr.bf16.mxu1 %v11698_v2 }
 0x988   : > { %v10374_v37 = vpop.f32.mrf.mxu0 }
 0x989   : > { %10393 = vmatmul.mubr.bf16.vlgmr.msra.gmra.mxu0 %v4089_v36  ;;  %v10984_v36 = vld [vmem:[%s12919_s2 + $0x2f0] sm:$0xff]   ;;  %v10985_v37 = vld [vmem:[%s12919_s2 + $0x2e8] sm:$0xff]  }
 0x98a   : > { %10423 = vmatpush3.bf16.msra.mxu0 %v12468_v43  ;;  %v4086_v38 = vpop.f32.mrf.mxu0  ;;  %10424 = vmatprep.mubr.msk.bf16.mxu0 %vm11699_vm4, %v11698_v2  ;;  %v10961_v43 = vld [vmem:[#allocation14 + $0x268] sm:$0xff]  }
 0x98b   : > { %10428 = vmatprep.subr.bf16.mxu0 %v11698_v2  ;;  %10453 = vmatpush3.bf16.msra.mxu1 %v10971_v52  ;;  %v10986_v38 = vld [vmem:[%s12919_s2 + $0x2e0] sm:$0xff]  }
 0x98c   : > { %v10375_v40 = vpop.f32.mrf.mxu0  ;;  %10454 = vmatprep.subr.bf16.mxu1 %v11698_v2  ;;  %v10997_v52 = vld [vmem:[%s12919_s2 + $0x360] sm:$0xff]  }
 0x98d   : > { %v10987_v40 = vld [vmem:[%s12919_s2 + $0x2d8] sm:$0xff]  }
 0x98f   : > { %10455 = vmatpush3.bf16.msra.mxu1 %v10973_v58 }
 0x990   : > { %10456 = vmatprep.subr.bf16.mxu1 %v11698_v2 }
 0x991   : > { %10425 = vmatmul.mubr.msk.bf16.vlgmr.msra.gmra.mxu0 %vm3739_vm15, %v4349_v41  ;;  %v10988_v41 = vld [vmem:[%s12919_s2 + $0x2d0] sm:$0xff]  }
 0x992   : > { %10429 = vmatpush3.bf16.msra.mxu0 %v10959_v42  ;;  %10444 = vmatprep.mubr.msk.bf16.mxu0 %vm11699_vm4, %v11698_v2  ;;  %v10989_v42 = vld [vmem:[%s12919_s2 + $0x2c8] sm:$0xff]  }
 0x993   : > { %10430 = vmatprep.subr.bf16.mxu0 %v11698_v2  ;;  %10457 = vmatpush3.bf16.msra.mxu1 %v10975_v14 }
 0x994   : > { %10458 = vmatprep.subr.bf16.mxu1 %v11698_v2 }
 0x996   : > { %10431 = vmatpush3.bf16.msra.mxu0 %v10960_v44  ;;  %v10990_v44 = vld [vmem:[%s12919_s2 + $0x2c0] sm:$0xff]  }
 0x997   : > { %10432 = vmatprep.subr.bf16.mxu0 %v11698_v2  ;;  %10459 = vmatpush3.bf16.msra.mxu1 %v10977_v17 }
 0x998   : > { %10460 = vmatprep.subr.bf16.mxu1 %v11698_v2 }
 0x99a   : > { %10433 = vmatpush3.bf16.msra.mxu0 %v10961_v43 }
 0x99b   : > { %10434 = vmatprep.subr.bf16.mxu0 %v11698_v2  ;;  %10461 = vmatpush3.bf16.msra.mxu1 %v10979_v60 }
 0x99c   : > { %10462 = vmatprep.subr.bf16.mxu1 %v11698_v2 }
 0x99e   : > { %10435 = vmatpush3.bf16.msra.mxu0 %v10962_v45 }
 0x99f   : > { %10436 = vmatprep.subr.bf16.mxu0 %v11698_v2  ;;  %10463 = vmatpush3.bf16.msra.mxu1 %v10981_v20 }
 0x9a0   : > { %10488 = vmatprep.subr.bf16.mxu1 %v11698_v2 }
 0x9a2   : > { %10437 = vmatpush3.bf16.msra.mxu0 %v10963_v46  ;;  %v10991_v46 = vld [vmem:[%s12919_s2 + $0x378] sm:$0xff]  }
 0x9a3   : > { %10438 = vmatprep.subr.bf16.mxu0 %v11698_v2 }
 0x9a6   : > { %10439 = vmatpush3.bf16.msra.mxu0 %v10964_v47  ;;  %v10992_v47 = vld [vmem:[%s12919_s2 + $0x338] sm:$0xff]  }
 0x9a7   : > { %10440 = vmatprep.subr.bf16.mxu0 %v11698_v2 }
 0x9aa   : > { %10441 = vmatpush3.bf16.msra.mxu0 %v10965_v48  ;;  %v10993_v48 = vld [vmem:[%s12919_s2 + $0x370] sm:$0xff]  }
 0x9ab   : > { %10442 = vmatprep.subr.bf16.mxu0 %v11698_v2 }
 0x9ae   : > { %10443 = vmatpush3.bf16.msra.mxu0 %v10966_v49  ;;  %v10994_v49 = vld [vmem:[%s12919_s2 + $0x330] sm:$0xff]  }
 0x9af   : > { %10468 = vmatprep.subr.bf16.mxu0 %v11698_v2 }
 0xa41   : > { %v4341_v53 = vpop.f32.mrf.mxu1 }
 0xa43   : > { %v10420_v54 = vpop.f32.mrf.mxu1 }
 0xa44   : > { %v10999_v54 = vld [vmem:[%s12919_s2 + $0x358] sm:$0xff]  }
 0xa45   : > { %v4344_v55 = vpop.f32.mrf.mxu1 }
 0xa46   : > { %v11000_v55 = vld [vmem:[%s12919_s2 + $0x318] sm:$0xff]  }
 0xa47   : > { %v10421_v56 = vpop.f32.mrf.mxu1 }
 0xa48   : > { %v11001_v56 = vld [vmem:[%s12919_s2 + $0x350] sm:$0xff]  }
 0xa49   : > { %v4189_v61 = vpop.f32.mrf.mxu0 }
 0xa4a   : > { %v4195_v62 = vadd.f32 %v4189_v61, %v4039_v27  ;;  %v11002_v61 = vld [vmem:[%s12919_s2 + $0x310] sm:$0xff]  }
 0xa4b   : > { %v10394_v63 = vpop.f32.mrf.mxu0 }
 0xa4c   : > { %v4347_v1 = vadd.f32 %v4341_v53, %v4195_v62  ;;  %v10998_v53 = vld [vmem:[%s12919_s2 + $0x320] sm:$0xff]   ;;  %v11003_v62 = vld [vmem:[%s12919_s2 + $0x348] sm:$0xff]  }
 0xa4d   : > { %v4192_v3 = vpop.f32.mrf.mxu0  ;;  %v11004_v63 = vld [vmem:[%s12919_s2 + $0x308] sm:$0xff]  }
 0xa4e   : > { %v11006_v3 = vld [vmem:[%s12919_s2 + $0x300] sm:$0xff]  }
 0xa4f   : > { %v10395_v4 = vpop.f32.mrf.mxu0 }
 0xa51   : > { %v4387_v5 = vpop.f32.mrf.mxu0 }
 0xa52   : > { %v4393_v7 = vpack.c.bf16 %v4387_v5, %v4387_v5 }
 0xa53   : > { %v10426_v57 = vpop.f32.mrf.mxu0 }
 0xa54   : > { %10445 = vmatmul.mubr.bf16.vlgmr.msra.gmra.mxu0 %v4393_v7 }
 0xa55   : > { %v4390_v8 = vpop.f32.mrf.mxu0  ;;  %10469 = vmatpush3.bf16.msra.mxu0 %v10968_v6  ;;  %10484 = vmatprep.mubr.msk.bf16.mxu0 %vm11699_vm4, %v11698_v2 }
 0xa56   : > { %10470 = vmatprep.subr.bf16.mxu0 %v11698_v2 }
 0xa57   : > { %v10427_v10 = vpop.f32.mrf.mxu0 }
 0xa59   : > { %10471 = vmatpush3.bf16.msra.mxu0 %v10970_v9 }
 0xa5a   : > { %10472 = vmatprep.subr.bf16.mxu0 %v11698_v2 }
 0xa5d   : > { %10473 = vmatpush3.bf16.msra.mxu0 %v10972_v11 }
 0xa5e   : > { %10474 = vmatprep.subr.bf16.mxu0 %v11698_v2 }
 0xa61   : > { %10475 = vmatpush3.bf16.msra.mxu0 %v10974_v13  ;;  %v4832_v13 = vld [vmem:[#allocation22 + $0x24] ss:$0 sm:$0xff] }
 0xa62   : > { %10476 = vmatprep.subr.bf16.mxu0 %v11698_v2 }
 0xa65   : > { %10477 = vmatpush3.bf16.msra.mxu0 %v10976_v16  ;;  %v4834_v16 = vld [vmem:[#allocation22 + $0x25] ss:$0 sm:$0xff] }
 0xa66   : > { %10478 = vmatprep.subr.bf16.mxu0 %v11698_v2 }
 0xa69   : > { %10479 = vmatpush3.bf16.msra.mxu0 %v10978_v18 }
 0xa6a   : > { %10480 = vmatprep.subr.bf16.mxu0 %v11698_v2 }
 0xa6d   : > { %10481 = vmatpush3.bf16.msra.mxu0 %v10980_v19 }
 0xa6e   : > { %10482 = vmatprep.subr.bf16.mxu0 %v11698_v2 }
 0xa71   : > { %10483 = vmatpush3.bf16.msra.mxu0 %v10982_v21 }
 0xa72   : > { %10508 = vmatprep.subr.bf16.mxu0 %v11698_v2 }
 0xb14   : > { %v4493_v22 = vpop.f32.mrf.mxu0 }
 0xb15   : > { %v4499_v24 = vadd.f32 %v4493_v22, %v4347_v1  ;;  %v11005_v1 = vld [vmem:[%s12919_s2 + $0x340] sm:$0xff]  }
 0xb16   : > { %v10446_v25 = vpop.f32.mrf.mxu0 }
 0xb17   : > { %v4501_v59 = vmul.f32 %v4500_v23, %v4499_v24 }
 0xb18   : > { %v4496_v26 = vpop.f32.mrf.mxu0 }
 0xb19   : > { %v4503_v27 = vadd.f32 %v4502_v15, %v4501_v59  ;;  %v11007_v15 = vld [vmem:[%s12919_s2 + $0x3b8] sm:$0xff]   ;;  %v11008_v26 = vld [vmem:[%s12919_s2 + $0x3b0] sm:$0xff]  }
 0xb1a   : > { %v10447_v28 = vpop.f32.mrf.mxu0 }
 0xb1b   : > { %vm4504_vm0 = vcmp.ge.f32.partialorder %v4503_v27, 0.0  ;;  %v4505_v29 = vmul.f32 0.01, %v4503_v27  ;;  %v11010_v28 = vld [vmem:[%s12919_s2 + $0x3a0] sm:$0xff]  }
 0xb1d   : > { %v4506_v30 = vsel %vm4504_vm0, %v4503_v27, %v4505_v29  ;;  %v11009_v27 = vld [vmem:[%s12919_s2 + $0x3a8] sm:$0xff]   ;;  %v11011_v29 = vld [vmem:[%s12919_s2 + $0x398] sm:$0xff]  }
 0xb1e   : > { %4509 = vst [vmem:[#allocation8 + $0x1] sm:$0xf] %v4506_v30  ;;  %v11012_v30 = vld [vmem:[%s12919_s2 + $0x390] sm:$0xff]  }
 0xb25   : > { %v4529_v31 = vld [vmem:[#allocation8 + $0x1] sm:$0xf] }
 0xb26   : > { %v4510_v32 = vld [vmem:[#allocation8] sm:$0xf]  ;;  %v4530_v34 = vpack.c.bf16 %v4529_v31, %v4529_v31  ;;  %v11013_v31 = vld [vmem:[%s12919_s2 + $0x388] sm:$0xff]  }
 0xb27   : > { %v4511_v35 = vpack.c.bf16 %v4510_v32, %v4510_v32  ;;  %v4724_v43 = vld [vmem:[#allocation8 + $0x2] sm:$0xf] }
 0xb28   : > { %10465 = vmatmul.mubr.bf16.vlgmr.msra.gmra.mxu1 %v4530_v34  ;;  %v4725_v45 = vpack.c.bf16 %v4724_v43, %v4724_v43  ;;  %v11014_v32 = vld [vmem:[%s12919_s2 + $0x380] sm:$0xff]  }
 0xb29   : > { %10485 = vmatmul.mubr.bf16.vlgmr.msra.gmra.mxu0 %v4511_v35  ;;  %10489 = vmatpush3.bf16.msra.mxu1 %v10983_v33  ;;  %v11017_v33 = vld [vmem:[%s12924_s7 + $0x74] ss:$8 sps:$4 sm:$0xff]   ;;  %v11015_v35 = vld [vmem:[%s12924_s7 + $0x70] ss:$8 sps:$4 sm:$0xff]   ;;  %v11024_v43 = vld [vmem:[%s12924_s7 + $0x40] ss:$8 sps:$4 sm:$0xff]  }
 0xb2a   : > { %10504 = vmatprep.mubr.msk.bf16.mxu1 %vm11699_vm4, %v11698_v2  ;;  %10490 = vmatprep.subr.bf16.mxu1 %v11698_v2 }
 0xb2b   : > { %10524 = vmatprep.mubr.msk.bf16.mxu0 %vm11699_vm4, %v11698_v2  ;;  %10509 = vmatpush3.bf16.msra.mxu0 %v10991_v46  ;;  %v11027_v46 = vld [vmem:[%s12924_s7 + $0x30] ss:$8 sps:$4 sm:$0xff]  }
 0xb2c   : > { %10510 = vmatprep.subr.bf16.mxu0 %v11698_v2 }
 0xb2d   : > { %10491 = vmatpush3.bf16.msra.mxu1 %v10984_v36 }
 0xb2e   : > { %10492 = vmatprep.subr.bf16.mxu1 %v11698_v2 }
 0xb2f   : > { %10511 = vmatpush3.bf16.msra.mxu0 %v10993_v48  ;;  %v11030_v48 = vld [vmem:[%s12924_s7 + $0x20] ss:$8 sps:$4 sm:$0xff]  }
 0xb30   : > { %10512 = vmatprep.subr.bf16.mxu0 %v11698_v2 }
 0xb31   : > { %10493 = vmatpush3.bf16.msra.mxu1 %v10985_v37  ;;  %v11020_v37 = vld [vmem:[%s12924_s7 + $0x64] ss:$8 sps:$4 sm:$0xff]  }
 0xb32   : > { %10494 = vmatprep.subr.bf16.mxu1 %v11698_v2 }
 0xb33   : > { %10513 = vmatpush3.bf16.msra.mxu0 %v10995_v50  ;;  %v11033_v50 = vld [vmem:[%s12924_s7 + $0x10] ss:$8 sps:$4 sm:$0xff]  }
 0xb34   : > { %10514 = vmatprep.subr.bf16.mxu0 %v11698_v2 }
 0xb35   : > { %10495 = vmatpush3.bf16.msra.mxu1 %v10986_v38  ;;  %v11018_v38 = vld [vmem:[%s12924_s7 + $0x60] ss:$8 sps:$4 sm:$0xff]  }
 0xb36   : > { %10496 = vmatprep.subr.bf16.mxu1 %v11698_v2 }
 0xb37   : > { %10515 = vmatpush3.bf16.msra.mxu0 %v10997_v52  ;;  %v11036_v52 = vld [vmem:[%s12924_s7] ss:$8 sps:$4 sm:$0xff]  }
 0xb38   : > { %10516 = vmatprep.subr.bf16.mxu0 %v11698_v2 }
 0xb39   : > { %10497 = vmatpush3.bf16.msra.mxu1 %v10987_v40  ;;  %v11700_v40 = vmov 0  }
 0xb3a   : > { %10498 = vmatprep.subr.bf16.mxu1 %v11698_v2 }
 0xb3b   : > { %10517 = vmatpush3.bf16.msra.mxu0 %v10999_v54  ;;  %v11039_v54 = vld [vmem:[#allocation17 + $0x38] sm:$0xff]  }
 0xb3c   : > { %10518 = vmatprep.subr.bf16.mxu0 %v11698_v2 }
 0xb3d   : > { %10499 = vmatpush3.bf16.msra.mxu1 %v10988_v41  ;;  %v11023_v41 = vld [vmem:[%s12924_s7 + $0x54] ss:$8 sps:$4 sm:$0xff]  }
 0xb3e   : > { %10500 = vmatprep.subr.bf16.mxu1 %v11698_v2 }
 0xb3f   : > { %10519 = vmatpush3.bf16.msra.mxu0 %v11001_v56  ;;  %v11041_v56 = vld [vmem:[#allocation17 + $0x28] sm:$0xff]  }
 0xb40   : > { %10520 = vmatprep.subr.bf16.mxu0 %v11698_v2 }
 0xb41   : > { %10501 = vmatpush3.bf16.msra.mxu1 %v10989_v42  ;;  %v11021_v42 = vld [vmem:[%s12924_s7 + $0x50] ss:$8 sps:$4 sm:$0xff]  }
 0xb42   : > { %10502 = vmatprep.subr.bf16.mxu1 %v11698_v2 }
 0xb43   : > { %10521 = vmatpush3.bf16.msra.mxu0 %v11003_v62  ;;  %v11043_v62 = vld [vmem:[#allocation17 + $0x18] sm:$0xff]  }
 0xb44   : > { %10522 = vmatprep.subr.bf16.mxu0 %v11698_v2 }
 0xb45   : > { %10503 = vmatpush3.bf16.msra.mxu1 %v10990_v44  ;;  %v11026_v44 = vld [vmem:[%s12924_s7 + $0x44] ss:$8 sps:$4 sm:$0xff]  }
 0xb46   : > { %10528 = vmatprep.subr.bf16.mxu1 %v11698_v2 }
 0xb47   : > { %10523 = vmatpush3.bf16.msra.mxu0 %v11005_v1  ;;  %v11046_v1 = vld [vmem:[#allocation17] sm:$0xff]  }
 0xb48   : > { %10505 = vmatmul.mubr.bf16.vlgmr.msra.gmra.mxu1 %v4725_v45  ;;  %10548 = vmatprep.subr.bf16.mxu0 %v11698_v2  ;;  %v11029_v45 = vld [vmem:[%s12924_s7 + $0x34] ss:$8 sps:$4 sm:$0xff]  }
 0xb49   : > { %10544 = vmatprep.mubr.msk.bf16.mxu1 %vm11699_vm4, %v11698_v2  ;;  %10529 = vmatpush3.bf16.msra.mxu1 %v10992_v47  ;;  %v11032_v47 = vld [vmem:[%s12924_s7 + $0x24] ss:$8 sps:$4 sm:$0xff]  }
 0xb4a   : > { %10530 = vmatprep.subr.bf16.mxu1 %v11698_v2 }
 0xb4d   : > { %10531 = vmatpush3.bf16.msra.mxu1 %v10994_v49  ;;  %v11035_v49 = vld [vmem:[%s12924_s7 + $0x14] ss:$8 sps:$4 sm:$0xff]  }
 0xb4e   : > { %10532 = vmatprep.subr.bf16.mxu1 %v11698_v2 }
 0xb51   : > { %10533 = vmatpush3.bf16.msra.mxu1 %v10996_v51  ;;  %v11038_v51 = vld [vmem:[%s12924_s7 + $0x4] ss:$8 sps:$4 sm:$0xff]  }
 0xb52   : > { %10534 = vmatprep.subr.bf16.mxu1 %v11698_v2 }
 0xb55   : > { %10535 = vmatpush3.bf16.msra.mxu1 %v10998_v53  ;;  %v5280_v53 = vpack.c.bf16 %v12465_v39, %v12465_v39  ;;  %v11044_v39 = vld [vmem:[#allocation17 + $0x10] sm:$0xff]  }
 0xb56   : > { %10536 = vmatprep.subr.bf16.mxu1 %v11698_v2 }
 0xb59   : > { %10537 = vmatpush3.bf16.msra.mxu1 %v11000_v55  ;;  %v11040_v55 = vld [vmem:[#allocation17 + $0x30] sm:$0xff]  }
 0xb5a   : > { %10538 = vmatprep.subr.bf16.mxu1 %v11698_v2 }
 0xb5d   : > { %10539 = vmatpush3.bf16.msra.mxu1 %v11002_v61  ;;  %v11042_v61 = vld [vmem:[#allocation17 + $0x20] sm:$0xff]  }
 0xb5e   : > { %10540 = vmatprep.subr.bf16.mxu1 %v11698_v2 }
 0xb61   : > { %10541 = vmatpush3.bf16.msra.mxu1 %v11004_v63  ;;  %v11045_v63 = vld [vmem:[#allocation17 + $0x8] sm:$0xff]  }
 0xb62   : > { %10542 = vmatprep.subr.bf16.mxu1 %v11698_v2 }
 0xb65   : > { %10543 = vmatpush3.bf16.msra.mxu1 %v11006_v3  ;;  %v11049_v3 = vld [vmem:[#allocation25 + $0x74] ss:$8 sps:$4 sm:$0xff]  }
 0xb66   : > { %10568 = vmatprep.subr.bf16.mxu1 %v11698_v2 }
 0xbe8   : > { %v4630_v4 = vpop.f32.mrf.mxu1 }
 0xbe9   : > { %v4718_v5 = vpop.f32.mrf.mxu0 }
 0xbea   : > { %v10466_v6 = vpop.f32.mrf.mxu1  ;;  %v4719_v11 = vadd.f32 %v4718_v5, %v4630_v4 }
 0xbeb   : > { %v10486_v7 = vpop.f32.mrf.mxu0 }
 0xbec   : > { %v4633_v57 = vpop.f32.mrf.mxu1 }
 0xbed   : > { %v4721_v8 = vpop.f32.mrf.mxu0 }
 0xbee   : > { %v10467_v9 = vpop.f32.mrf.mxu1 }
 0xbef   : > { %v10487_v10 = vpop.f32.mrf.mxu0 }
 0xc08   : > { %v4825_v58 = vpop.f32.mrf.mxu1 }
 0xc09   : > { %v4831_v14 = vadd.f32 %v4825_v58, %v4719_v11 }
 0xc0a   : > { %v10506_v17 = vpop.f32.mrf.mxu1 }
 0xc0b   : > { %v4833_v18 = vmul.f32 %v4832_v13, %v4831_v14  ;;  %v5164_v13 = vld [vmem:[#allocation22 + $0x26] ss:$0 sm:$0xff] }
 0xc0c   : > { %v4828_v60 = vpop.f32.mrf.mxu1 }
 0xc0d   : > { %v4835_v19 = vadd.f32 %v4834_v16, %v4833_v18  ;;  %v5166_v16 = vld [vmem:[#allocation22 + $0x27] ss:$0 sm:$0xff] }
 0xc0e   : > { %v10507_v20 = vpop.f32.mrf.mxu1 }
 0xc0f   : > { %vm4836_vm5 = vcmp.ge.f32.partialorder %v4835_v19, 0.0  ;;  %v4837_v21 = vmul.f32 0.01, %v4835_v19 }
 0xc11   : > { %v4838_v22 = vsel %vm4836_vm5, %v4835_v19, %v4837_v21 }
 0xc12   : > { %4841 = vst [vmem:[#allocation9 + $0x1] sm:$0xf] %v4838_v22 }
 0xc19   : > { %v4861_v23 = vld [vmem:[#allocation9 + $0x1] sm:$0xf] }
 0xc1a   : > { %v4842_v24 = vld [vmem:[#allocation9] sm:$0xf]  ;;  %v4862_v25 = vpack.c.bf16 %v4861_v23, %v4861_v23  ;;  %v11047_v23 = vld [vmem:[#allocation25 + $0x70] ss:$8 sps:$4 sm:$0xff]  }
 0xc1b   : > { %v4843_v59 = vpack.c.bf16 %v4842_v24, %v4842_v24  ;;  %v5056_v34 = vld [vmem:[#allocation9 + $0x2] sm:$0xf] }
 0xc1c   : > { %10525 = vmatmul.mubr.bf16.vlgmr.msra.gmra.mxu0 %v4862_v25  ;;  %v5057_v36 = vpack.c.bf16 %v5056_v34, %v5056_v34  ;;  %v11050_v25 = vld [vmem:[#allocation25 + $0x60] ss:$8 sps:$4 sm:$0xff]  }
 0xc1d   : > { %10545 = vmatmul.mubr.bf16.vlgmr.msra.gmra.mxu1 %v4843_v59  ;;  %10549 = vmatpush3.bf16.msra.mxu0 %v11007_v15  ;;  %v11052_v15 = vld [vmem:[#allocation25 + $0x64] ss:$8 sps:$4 sm:$0xff]   ;;  %v11055_v59 = vld [vmem:[#allocation25 + $0x54] ss:$8 sps:$4 sm:$0xff]  }
 0xc1e   : > { %10564 = vmatprep.mubr.msk.bf16.mxu0 %vm11699_vm4, %v11698_v2  ;;  %10550 = vmatprep.subr.bf16.mxu0 %v11698_v2 }
 0xc1f   : > { %10584 = vmatprep.mubr.msk.bf16.mxu1 %vm11699_vm4, %v11698_v2  ;;  %10569 = vmatpush3.bf16.msra.mxu1 %v11039_v54 }
 0xc20   : > { %10570 = vmatprep.subr.bf16.mxu1 %v11698_v2 }
 0xc21   : > { %10551 = vmatpush3.bf16.msra.mxu0 %v11008_v26  ;;  %v11053_v26 = vld [vmem:[#allocation25 + $0x50] ss:$8 sps:$4 sm:$0xff]  }
 0xc22   : > { %10552 = vmatprep.subr.bf16.mxu0 %v11698_v2 }
 0xc23   : > { %10571 = vmatpush3.bf16.msra.mxu1 %v11040_v55  ;;  %v11074_v55 = vld [vmem:[#allocation19 + $0xc0] ss:$16 sps:$4 sm:$0xff]  }
 0xc24   : > { %10572 = vmatprep.subr.bf16.mxu1 %v11698_v2 }
 0xc25   : > { %10553 = vmatpush3.bf16.msra.mxu0 %v11009_v27  ;;  %v11058_v27 = vld [vmem:[#allocation25 + $0x44] ss:$8 sps:$4 sm:$0xff]  }
 0xc26   : > { %10554 = vmatprep.subr.bf16.mxu0 %v11698_v2 }
 0xc27   : > { %10573 = vmatpush3.bf16.msra.mxu1 %v11041_v56  ;;  %v11079_v56 = vld [vmem:[#allocation19 + $0xa4] ss:$16 sps:$4 sm:$0xff]  }
 0xc28   : > { %10574 = vmatprep.subr.bf16.mxu1 %v11698_v2 }
 0xc29   : > { %10555 = vmatpush3.bf16.msra.mxu0 %v11010_v28  ;;  %v11056_v28 = vld [vmem:[#allocation25 + $0x40] ss:$8 sps:$4 sm:$0xff]  }
 0xc2a   : > { %10556 = vmatprep.subr.bf16.mxu0 %v11698_v2 }
 0xc2b   : > { %10575 = vmatpush3.bf16.msra.mxu1 %v11042_v61  ;;  %v11077_v61 = vld [vmem:[#allocation19 + $0xa0] ss:$16 sps:$4 sm:$0xff]  }
 0xc2c   : > { %10576 = vmatprep.subr.bf16.mxu1 %v11698_v2 }
 0xc2d   : > { %10557 = vmatpush3.bf16.msra.mxu0 %v11011_v29  ;;  %v11061_v29 = vld [vmem:[#allocation25 + $0x34] ss:$8 sps:$4 sm:$0xff]  }
 0xc2e   : > { %10558 = vmatprep.subr.bf16.mxu0 %v11698_v2 }
 0xc2f   : > { %10577 = vmatpush3.bf16.msra.mxu1 %v11043_v62  ;;  %v11082_v62 = vld [vmem:[#allocation19 + $0x84] ss:$16 sps:$4 sm:$0xff]  }
 0xc30   : > { %10578 = vmatprep.subr.bf16.mxu1 %v11698_v2 }
 0xc31   : > { %10559 = vmatpush3.bf16.msra.mxu0 %v11012_v30  ;;  %v11059_v30 = vld [vmem:[#allocation25 + $0x30] ss:$8 sps:$4 sm:$0xff]  }
 0xc32   : > { %10560 = vmatprep.subr.bf16.mxu0 %v11698_v2 }
 0xc33   : > { %10579 = vmatpush3.bf16.msra.mxu1 %v11044_v39  ;;  %v11080_v39 = vld [vmem:[#allocation19 + $0x80] ss:$16 sps:$4 sm:$0xff]  }
 0xc34   : > { %10580 = vmatprep.subr.bf16.mxu1 %v11698_v2 }
 0xc35   : > { %10561 = vmatpush3.bf16.msra.mxu0 %v11013_v31  ;;  %v11064_v31 = vld [vmem:[#allocation25 + $0x24] ss:$8 sps:$4 sm:$0xff]  }
 0xc36   : > { %10562 = vmatprep.subr.bf16.mxu0 %v11698_v2 }
 0xc37   : > { %10581 = vmatpush3.bf16.msra.mxu1 %v11045_v63  ;;  %v11085_v63 = vld [vmem:[#allocation19 + $0x64] ss:$16 sps:$4 sm:$0xff]  }
 0xc38   : > { %10582 = vmatprep.subr.bf16.mxu1 %v11698_v2  ;;  %v12816_v2 = vshrl.u32 %v733_v0, 7 }
 0xc39   : > { %10563 = vmatpush3.bf16.msra.mxu0 %v11014_v32  ;;  %v11062_v32 = vld [vmem:[#allocation25 + $0x20] ss:$8 sps:$4 sm:$0xff]  }
 0xc3a   : > { %5377 = vmatprep.subr.bf16.mxu0 %v11017_v33  ;;  %v11067_v33 = vld [vmem:[#allocation25 + $0x14] ss:$8 sps:$4 sm:$0xff]  }
 0xc3b   : > { %10583 = vmatpush3.bf16.msra.mxu1 %v11046_v1  ;;  %v11083_v1 = vld [vmem:[#allocation19 + $0x60] ss:$16 sps:$4 sm:$0xff]  }
 0xc3c   : > { %10565 = vmatmul.mubr.bf16.vlgmr.msra.gmra.mxu0 %v5057_v36  ;;  %5545 = vmatprep.subr.bf16.mxu1 %v11049_v3  ;;  %v11088_v3 = vld [vmem:[#allocation19 + $0x44] ss:$16 sps:$4 sm:$0xff]  }
 0xc3d   : > { %5378 = vmatpush1.bf16.msra.mxu0 %v11015_v35  ;;  %5409 = vmatprep.mubr.bf16.mxu0 %v11700_v40  ;;  %v11065_v35 = vld [vmem:[#allocation25 + $0x10] ss:$8 sps:$4 sm:$0xff]  }
 0xc3e   : > { %5379 = vmatprep.subr.bf16.mxu0 %v11020_v37 }
 0xc41   : > { %5380 = vmatpush1.bf16.msra.mxu0 %v11018_v38 }
 0xc42   : > { %5381 = vmatprep.subr.bf16.mxu0 %v11023_v41  ;;  %v11070_v41 = vld [vmem:[#allocation25 + $0x4] ss:$8 sps:$4 sm:$0xff]  }
 0xc45   : > { %5382 = vmatpush1.bf16.msra.mxu0 %v11021_v42  ;;  %v11068_v42 = vld [vmem:[#allocation25] ss:$8 sps:$4 sm:$0xff]  }
 0xc46   : > { %5383 = vmatprep.subr.bf16.mxu0 %v11026_v44  ;;  %v11073_v44 = vld [vmem:[#allocation19 + $0xe4] ss:$16 sps:$4 sm:$0xff]  }
 0xc49   : > { %5384 = vmatpush1.bf16.msra.mxu0 %v11024_v43  ;;  %v5276_v43 = vld [vmem:[#allocation22 + $0x40] ss:$0 sm:$0xff] }
 0xc4a   : > { %5385 = vmatprep.subr.bf16.mxu0 %v11029_v45 }
 0xc4d   : > { %5386 = vmatpush1.bf16.msra.mxu0 %v11027_v46  ;;  %v5278_v46 = vld [vmem:[#allocation22 + $0x41] ss:$0 sm:$0xff] }
 0xc4e   : > { %5387 = vmatprep.subr.bf16.mxu0 %v11032_v47 }
 0xc51   : > { %5388 = vmatpush1.bf16.msra.mxu0 %v11030_v48 }
 0xc52   : > { %5389 = vmatprep.subr.bf16.mxu0 %v11035_v49 }
 0xc55   : > { %5390 = vmatpush1.bf16.msra.mxu0 %v11033_v50 }
 0xc56   : > { %5391 = vmatprep.subr.bf16.mxu0 %v11038_v51  ;;  %v11071_v51 = vld [vmem:[#allocation19 + $0xe0] ss:$16 sps:$4 sm:$0xff]  }
 0xc59   : > { %5392 = vmatpush1.bf16.msra.mxu0 %v11036_v52 }
 0xc5c   : > { %5410 = vmatmul.mubr.bf16.vlgmr.msra.gmra.mxu0 %v5280_v53  ;;  %v11076_v53 = vld [vmem:[#allocation19 + $0xc4] ss:$16 sps:$4 sm:$0xff]  }
 0xc5d   : > { %5631 = vmatprep.mubr.bf16.mxu0 %v11700_v40 }
 0xcdc   : > { %v4962_v4 = vpop.f32.mrf.mxu0 }
 0xcdd   : > { %v5050_v5 = vpop.f32.mrf.mxu1 }
 0xcde   : > { %v10526_v6 = vpop.f32.mrf.mxu0  ;;  %v5051_v11 = vadd.f32 %v5050_v5, %v4962_v4  ;;  %v11086_v4 = vld [vmem:[#allocation19 + $0x40] ss:$16 sps:$4 sm:$0xff]   ;;  %v11091_v5 = vld [vmem:[#allocation19 + $0x24] ss:$16 sps:$4 sm:$0xff]  }
 0xcdf   : > { %v10546_v7 = vpop.f32.mrf.mxu1  ;;  %v11089_v6 = vld [vmem:[#allocation19 + $0x20] ss:$16 sps:$4 sm:$0xff]  }
 0xce0   : > { %v4965_v57 = vpop.f32.mrf.mxu0  ;;  %v11094_v7 = vld [vmem:[#allocation19 + $0x4] ss:$16 sps:$4 sm:$0xff]  }
 0xce1   : > { %v5053_v8 = vpop.f32.mrf.mxu1  ;;  %v11092_v57 = vld [vmem:[#allocation19] ss:$16 sps:$4 sm:$0xff]  }
 0xce2   : > { %v10527_v9 = vpop.f32.mrf.mxu0  ;;  %v11119_v8 = vld [vmem:[#allocation28 + $0xe0] ss:$16 sps:$4 sm:$0xff]  }
 0xce3   : > { %v10547_v10 = vpop.f32.mrf.mxu1  ;;  %v11121_v9 = vld [vmem:[#allocation28 + $0xe4] ss:$16 sps:$4 sm:$0xff]  }
 0xce4   : > { %v11127_v10 = vld [vmem:[#allocation28 + $0xc4] ss:$16 sps:$4 sm:$0xff]  }
 0xcfc   : > { %v5157_v58 = vpop.f32.mrf.mxu0 }
 0xcfd   : > { %v5163_v14 = vadd.f32 %v5157_v58, %v5051_v11  ;;  %v11125_v11 = vld [vmem:[#allocation28 + $0xc0] ss:$16 sps:$4 sm:$0xff]   ;;  %v11133_v58 = vld [vmem:[#allocation28 + $0xa4] ss:$16 sps:$4 sm:$0xff]  }
 0xcfe   : > { %v10566_v17 = vpop.f32.mrf.mxu0 }
 0xcff   : > { %v5165_v18 = vmul.f32 %v5164_v13, %v5163_v14  ;;  %v11131_v13 = vld [vmem:[#allocation28 + $0xa0] ss:$16 sps:$4 sm:$0xff]   ;;  %v11139_v14 = vld [vmem:[#allocation28 + $0x84] ss:$16 sps:$4 sm:$0xff]  }
 0xd00   : > { %v5160_v60 = vpop.f32.mrf.mxu0  ;;  %v11145_v17 = vld [vmem:[#allocation28 + $0x64] ss:$16 sps:$4 sm:$0xff]  }
 0xd01   : > { %v5167_v19 = vadd.f32 %v5166_v16, %v5165_v18  ;;  %v11137_v16 = vld [vmem:[#allocation28 + $0x80] ss:$16 sps:$4 sm:$0xff]   ;;  %v11151_v60 = vld [vmem:[#allocation28 + $0x44] ss:$16 sps:$4 sm:$0xff]  }
 0xd02   : > { %v10567_v20 = vpop.f32.mrf.mxu0  ;;  %v11143_v18 = vld [vmem:[#allocation28 + $0x60] ss:$16 sps:$4 sm:$0xff]  }
 0xd03   : > { %vm5168_vm4 = vcmp.ge.f32.partialorder %v5167_v19, 0.0  ;;  %v5169_v21 = vmul.f32 0.01, %v5167_v19  ;;  %v11157_v20 = vld [vmem:[#allocation28 + $0x24] ss:$16 sps:$4 sm:$0xff]  }
 0xd05   : > { %v5170_v22 = vsel %vm5168_vm4, %v5167_v19, %v5169_v21  ;;  %v11149_v19 = vld [vmem:[#allocation28 + $0x40] ss:$16 sps:$4 sm:$0xff]  }
 0xd06   : > { %v5171_v24 = vpack.c.bf16 %v5170_v22, %v5170_v22  ;;  %v11155_v21 = vld [vmem:[#allocation28 + $0x20] ss:$16 sps:$4 sm:$0xff]   ;;  %v11163_v22 = vld [vmem:[#allocation28 + $0x4] ss:$16 sps:$4 sm:$0xff]  }
 0xd08   : > { %10585 = vmatmul.mubr.bf16.vlgmr.msra.gmra.mxu1 %v5171_v24  ;;  %v11169_v24 = vld [vmem:[#allocation28 + $0x1e4] ss:$16 sps:$4 sm:$0xff]  }
 0xd09   : > { %5546 = vmatpush1.bf16.msra.mxu1 %v11047_v23  ;;  %5577 = vmatprep.mubr.bf16.mxu1 %v11700_v40  ;;  %v11161_v23 = vld [vmem:[#allocation28] ss:$16 sps:$4 sm:$0xff]  }
 0xd0a   : > { %5547 = vmatprep.subr.bf16.mxu1 %v11052_v15  ;;  %v11167_v15 = vld [vmem:[#allocation28 + $0x1e0] ss:$16 sps:$4 sm:$0xff]  }
 0xd0d   : > { %5548 = vmatpush1.bf16.msra.mxu1 %v11050_v25  ;;  %v11175_v25 = vld [vmem:[#allocation28 + $0x1c4] ss:$16 sps:$4 sm:$0xff]  }
 0xd0e   : > { %5549 = vmatprep.subr.bf16.mxu1 %v11055_v59  ;;  %v11173_v59 = vld [vmem:[#allocation28 + $0x1c0] ss:$16 sps:$4 sm:$0xff]  }
 0xd11   : > { %5550 = vmatpush1.bf16.msra.mxu1 %v11053_v26  ;;  %v11181_v26 = vld [vmem:[#allocation28 + $0x1a4] ss:$16 sps:$4 sm:$0xff]  }
 0xd12   : > { %5551 = vmatprep.subr.bf16.mxu1 %v11058_v27  ;;  %v11179_v27 = vld [vmem:[#allocation28 + $0x1a0] ss:$16 sps:$4 sm:$0xff]  }
 0xd15   : > { %5552 = vmatpush1.bf16.msra.mxu1 %v11056_v28  ;;  %v11187_v28 = vld [vmem:[#allocation28 + $0x184] ss:$16 sps:$4 sm:$0xff]  }
 0xd16   : > { %5553 = vmatprep.subr.bf16.mxu1 %v11061_v29  ;;  %v11185_v29 = vld [vmem:[#allocation28 + $0x180] ss:$16 sps:$4 sm:$0xff]  }
 0xd19   : > { %5554 = vmatpush1.bf16.msra.mxu1 %v11059_v30  ;;  %v11193_v30 = vld [vmem:[#allocation28 + $0x164] ss:$16 sps:$4 sm:$0xff]  }
 0xd1a   : > { %5555 = vmatprep.subr.bf16.mxu1 %v11064_v31  ;;  %v11191_v31 = vld [vmem:[#allocation28 + $0x160] ss:$16 sps:$4 sm:$0xff]  }
 0xd1c   : > { %v12798_v34 = vpop.f32.mrf.mxu0 }
 0xd1d   : > { %5556 = vmatpush1.bf16.msra.mxu1 %v11062_v32  ;;  %v11199_v32 = vld [vmem:[#allocation28 + $0x144] ss:$16 sps:$4 sm:$0xff]  }
 0xd1e   : > { %v12800_v36 = vpop.f32.mrf.mxu0  ;;  %5557 = vmatprep.subr.bf16.mxu1 %v11067_v33  ;;  %v11197_v33 = vld [vmem:[#allocation28 + $0x140] ss:$16 sps:$4 sm:$0xff]  }
 0xd20   : > { %v5415_v37 = vpop.f32.mrf.mxu0 }
 0xd21   : > { %5558 = vmatpush1.bf16.msra.mxu1 %v11065_v35 }
 0xd22   : > { %v5416_v38 = vpop.f32.mrf.mxu0  ;;  %5559 = vmatprep.subr.bf16.mxu1 %v11070_v41 }
 0xd25   : > { %5560 = vmatpush1.bf16.msra.mxu1 %v11068_v42  ;;  %v11097_v42 = vld [vmem:[#allocation19 + $0xec] ss:$16 sps:$4 sm:$0xff]  }
 0xd26   : > { %5833 = vmatprep.subr.bf16.mxu1 %v11073_v44 }
 0xdc8   : > { %v5270_v45 = vpop.f32.mrf.mxu1 }
 0xdc9   : > { %v5277_v47 = vmul.f32 %v5276_v43, %v5270_v45 }
 0xdca   : > { %v10586_v48 = vpop.f32.mrf.mxu1 }
 0xdcb   : > { %v5279_v49 = vadd.f32 %v5278_v46, %v5277_v47  ;;  %v5586_v46 = vld [vmem:[#allocation23] sm:$0xf]  ;;  %v11095_v47 = vld [vmem:[#allocation19 + $0xe8] ss:$16 sps:$4 sm:$0xff]   ;;  %v11100_v48 = vld [vmem:[#allocation19 + $0xcc] ss:$16 sps:$4 sm:$0xff]  }
 0xdcc   : > { %v5273_v50 = vpop.f32.mrf.mxu1 }
 0xdcd   : > { %v5448_v52 = vpack.c.bf16 %v5279_v49, %v5279_v49  ;;  %6629 = vst [vmem:[%s727_s3] sm:$0xf] %v5279_v49  ;;  %v11098_v49 = vld [vmem:[#allocation19 + $0xc8] ss:$16 sps:$4 sm:$0xff]   ;;  %v11103_v50 = vld [vmem:[#allocation19 + $0xac] ss:$16 sps:$4 sm:$0xff]  }
 0xdce   : > { %v10587_v54 = vpop.f32.mrf.mxu1 }
 0xdcf   : > { %5578 = vmatmul.mubr.bf16.vlgmr.msra.gmra.mxu1 %v5448_v52  ;;  %v11106_v52 = vld [vmem:[#allocation19 + $0x8c] ss:$16 sps:$4 sm:$0xff]  }
 0xdd0   : > { %5834 = vmatpush1.bf16.msra.mxu1 %v11071_v51  ;;  %5865 = vmatprep.mubr.bf16.mxu1 %v11700_v40  ;;  %v11101_v51 = vld [vmem:[#allocation19 + $0xa8] ss:$16 sps:$4 sm:$0xff]   ;;  %v11109_v54 = vld [vmem:[#allocation19 + $0x6c] ss:$16 sps:$4 sm:$0xff]  }
 0xdd1   : > { %5835 = vmatprep.subr.bf16.mxu1 %v11076_v53  ;;  %v11104_v53 = vld [vmem:[#allocation19 + $0x88] ss:$16 sps:$4 sm:$0xff]  }
 0xdd4   : > { %5836 = vmatpush1.bf16.msra.mxu1 %v11074_v55  ;;  %v11107_v55 = vld [vmem:[#allocation19 + $0x68] ss:$16 sps:$4 sm:$0xff]  }
 0xdd5   : > { %5837 = vmatprep.subr.bf16.mxu1 %v11079_v56  ;;  %v11112_v56 = vld [vmem:[#allocation19 + $0x4c] ss:$16 sps:$4 sm:$0xff]  }
 0xdd8   : > { %5838 = vmatpush1.bf16.msra.mxu1 %v11077_v61  ;;  %v11110_v61 = vld [vmem:[#allocation19 + $0x48] ss:$16 sps:$4 sm:$0xff]  }
 0xdd9   : > { %5839 = vmatprep.subr.bf16.mxu1 %v11082_v62  ;;  %v11115_v62 = vld [vmem:[#allocation19 + $0x2c] ss:$16 sps:$4 sm:$0xff]  }
 0xddc   : > { %5840 = vmatpush1.bf16.msra.mxu1 %v11080_v39  ;;  %v11113_v39 = vld [vmem:[#allocation19 + $0x28] ss:$16 sps:$4 sm:$0xff]  }
 0xddd   : > { %5841 = vmatprep.subr.bf16.mxu1 %v11085_v63  ;;  %v11118_v63 = vld [vmem:[#allocation19 + $0xc] ss:$16 sps:$4 sm:$0xff]  }
 0xde0   : > { %5842 = vmatpush1.bf16.msra.mxu1 %v11083_v1  ;;  %v11116_v1 = vld [vmem:[#allocation19 + $0x8] ss:$16 sps:$4 sm:$0xff]  }
 0xde1   : > { %5843 = vmatprep.subr.bf16.mxu1 %v11088_v3  ;;  %v11124_v3 = vld [vmem:[#allocation28 + $0xec] ss:$16 sps:$4 sm:$0xff]  }
 0xde4   : > { %5844 = vmatpush1.bf16.msra.mxu1 %v11086_v4  ;;  %v11122_v4 = vld [vmem:[#allocation28 + $0xe8] ss:$16 sps:$4 sm:$0xff]  }
 0xde5   : > { %5845 = vmatprep.subr.bf16.mxu1 %v11091_v5  ;;  %v11130_v5 = vld [vmem:[#allocation28 + $0xcc] ss:$16 sps:$4 sm:$0xff]  }
 0xde8   : > { %5846 = vmatpush1.bf16.msra.mxu1 %v11089_v6  ;;  %v11128_v6 = vld [vmem:[#allocation28 + $0xc8] ss:$16 sps:$4 sm:$0xff]  }
 0xde9   : > { %5847 = vmatprep.subr.bf16.mxu1 %v11094_v7  ;;  %v11136_v7 = vld [vmem:[#allocation28 + $0xac] ss:$16 sps:$4 sm:$0xff]  }
 0xdec   : > { %5848 = vmatpush1.bf16.msra.mxu1 %v11092_v57  ;;  %v11134_v57 = vld [vmem:[#allocation28 + $0xa8] ss:$16 sps:$4 sm:$0xff]  }
 0xded   : > { %6367 = vmatprep.subr.bf16.mxu1 %v11121_v9  ;;  %v11140_v9 = vld [vmem:[#allocation28 + $0x88] ss:$16 sps:$4 sm:$0xff]  }
 0xdef   : > { %5866 = vmatmul.mubr.bf16.vlgmr.msra.gmra.mxu1 %v12143_v12 }
 0xdf0   : > { %6368 = vmatpush1.bf16.msra.mxu1 %v11119_v8  ;;  %v11142_v8 = vld [vmem:[#allocation28 + $0x8c] ss:$16 sps:$4 sm:$0xff]  }
 0xdf1   : > { %6369 = vmatprep.subr.bf16.mxu1 %v11127_v10  ;;  %v11148_v10 = vld [vmem:[#allocation28 + $0x6c] ss:$16 sps:$4 sm:$0xff]  }
 0xdf4   : > { %6370 = vmatpush1.bf16.msra.mxu1 %v11125_v11  ;;  %v11146_v11 = vld [vmem:[#allocation28 + $0x68] ss:$16 sps:$4 sm:$0xff]  }
 0xdf5   : > { %6371 = vmatprep.subr.bf16.mxu1 %v11133_v58  ;;  %v11154_v58 = vld [vmem:[#allocation28 + $0x4c] ss:$16 sps:$4 sm:$0xff]  }
 0xdf8   : > { %6372 = vmatpush1.bf16.msra.mxu1 %v11131_v13  ;;  %v11152_v13 = vld [vmem:[#allocation28 + $0x48] ss:$16 sps:$4 sm:$0xff]  }
 0xdf9   : > { %6373 = vmatprep.subr.bf16.mxu1 %v11139_v14  ;;  %v11158_v14 = vld [vmem:[#allocation28 + $0x28] ss:$16 sps:$4 sm:$0xff]  }
 0xdfc   : > { %6374 = vmatpush1.bf16.msra.mxu1 %v11137_v16  ;;  %v11166_v16 = vld [vmem:[#allocation28 + $0xc] ss:$16 sps:$4 sm:$0xff]  }
 0xdfd   : > { %6375 = vmatprep.subr.bf16.mxu1 %v11145_v17  ;;  %v11164_v17 = vld [vmem:[#allocation28 + $0x8] ss:$16 sps:$4 sm:$0xff]  }
 0xe00   : > { %6376 = vmatpush1.bf16.msra.mxu1 %v11143_v18  ;;  %v11172_v18 = vld [vmem:[#allocation28 + $0x1ec] ss:$16 sps:$4 sm:$0xff]  }
 0xe01   : > { %6377 = vmatprep.subr.bf16.mxu1 %v11151_v60  ;;  %v11170_v60 = vld [vmem:[#allocation28 + $0x1e8] ss:$16 sps:$4 sm:$0xff]  }
 0xe04   : > { %6378 = vmatpush1.bf16.msra.mxu1 %v11149_v19  ;;  %v11178_v19 = vld [vmem:[#allocation28 + $0x1cc] ss:$16 sps:$4 sm:$0xff]  }
 0xe05   : > { %6379 = vmatprep.subr.bf16.mxu1 %v11157_v20  ;;  %v11205_v20 = vld [vmem:[#allocation28 + $0x124] ss:$16 sps:$4 sm:$0xff]  }
 0xe08   : > { %6380 = vmatpush1.bf16.msra.mxu1 %v11155_v21  ;;  %v11203_v21 = vld [vmem:[#allocation28 + $0x120] ss:$16 sps:$4 sm:$0xff]  }
 0xe09   : > { %6381 = vmatprep.subr.bf16.mxu1 %v11163_v22  ;;  %v11176_v22 = vld [vmem:[#allocation28 + $0x1c8] ss:$16 sps:$4 sm:$0xff]  }
 0xe0c   : > { %6382 = vmatpush1.bf16.msra.mxu1 %v11161_v23  ;;  %v11184_v23 = vld [vmem:[#allocation28 + $0x1ac] ss:$16 sps:$4 sm:$0xff]  }
 0xe0d   : > { %6383 = vmatprep.subr.bf16.mxu1 %v11169_v24  ;;  %v11211_v24 = vld [vmem:[#allocation28 + $0x104] ss:$16 sps:$4 sm:$0xff]  }
 0xe10   : > { %6384 = vmatpush2.bf16.msra.mxu1 %v11167_v15  ;;  %v11209_v15 = vld [vmem:[#allocation28 + $0x100] ss:$16 sps:$4 sm:$0xff]  }
 0xe11   : > { %6385 = vmatprep.subr.bf16.mxu1 %v11175_v25  ;;  %v11182_v25 = vld [vmem:[#allocation28 + $0x1a8] ss:$16 sps:$4 sm:$0xff]  }
 0xe14   : > { %6386 = vmatpush2.bf16.msra.mxu1 %v11173_v59  ;;  %v11190_v59 = vld [vmem:[#allocation28 + $0x18c] ss:$16 sps:$4 sm:$0xff]  }
 0xe15   : > { %6387 = vmatprep.subr.bf16.mxu1 %v11181_v26  ;;  %v11188_v26 = vld [vmem:[#allocation28 + $0x188] ss:$16 sps:$4 sm:$0xff]  }
 0xe18   : > { %6388 = vmatpush2.bf16.msra.mxu1 %v11179_v27  ;;  %v11196_v27 = vld [vmem:[#allocation28 + $0x16c] ss:$16 sps:$4 sm:$0xff]  }
 0xe19   : > { %6389 = vmatprep.subr.bf16.mxu1 %v11187_v28  ;;  %v11194_v28 = vld [vmem:[#allocation28 + $0x168] ss:$16 sps:$4 sm:$0xff]  }
 0xe1c   : > { %6390 = vmatpush2.bf16.msra.mxu1 %v11185_v29  ;;  %v11202_v29 = vld [vmem:[#allocation28 + $0x14c] ss:$16 sps:$4 sm:$0xff]  }
 0xe1d   : > { %6391 = vmatprep.subr.bf16.mxu1 %v11193_v30  ;;  %v11200_v30 = vld [vmem:[#allocation28 + $0x148] ss:$16 sps:$4 sm:$0xff]  }
 0xe20   : > { %6392 = vmatpush2.bf16.msra.mxu1 %v11191_v31  ;;  %v11208_v31 = vld [vmem:[#allocation28 + $0x12c] ss:$16 sps:$4 sm:$0xff]  }
 0xe21   : > { %6393 = vmatprep.subr.bf16.mxu1 %v11199_v32  ;;  %v11206_v32 = vld [vmem:[#allocation28 + $0x128] ss:$16 sps:$4 sm:$0xff]  }
 0xe24   : > { %6394 = vmatpush2.bf16.msra.mxu1 %v11197_v33  ;;  %v11214_v33 = vld [vmem:[#allocation28 + $0x10c] ss:$16 sps:$4 sm:$0xff]  }
 0xe25   : > { %6395 = vmatprep.subr.bf16.mxu1 %v11205_v20 }
 0xe28   : > { %6396 = vmatpush2.bf16.msra.mxu1 %v11203_v21 }
 0xe29   : > { %6397 = vmatprep.subr.bf16.mxu1 %v11211_v24 }
 0xe2c   : > { %6398 = vmatpush2.bf16.msra.mxu1 %v11209_v15 }
 0xe8f   : > { %v5579_v35 = vpop.f32.mrf.mxu1 }
 0xe90   : > { %v5587_v37 = vpack.c.bf16 %v5579_v35, %v5579_v35  ;;  %v11212_v35 = vld [vmem:[#allocation28 + $0x108] ss:$16 sps:$4 sm:$0xff]  }
 0xe91   : > { %v5581_v38 = vpop.f32.mrf.mxu1 }
 0xe92   : > { %v5588_v41 = vpack.c.bf16 %v5581_v38, %v5581_v38  ;;  %v5594_v43 = vsel %vm2305_vm9, %v5587_v37, 0  ;;  %v12819_v37 = vsub.s32 0, %v12816_v2  ;;  %v5419_v38 = vld [vmem:[#allocation22 + $0x42] ss:$8 sm:$0x3] }
 0xe93   : > { %v5583_v44 = vpop.f32.mrf.mxu1 }
 0xe94   : > { %9158 = vmatprep.subr.msk.bf16.mxu0 %vm2305_vm9, %v5588_v41  ;;  %v12822_v41 = vsub.s32 1, %v12816_v2  ;;  %v5434_v44 = vld [vmem:[#allocation22 + $0x43] ss:$8 sm:$0x3]  ;;  %vm6460_vm9 = vcmask 64512  }
 0xe95   : > { %v5584_v45 = vpop.f32.mrf.mxu1  ;;  %5614 = vmatpush1.bf16.msra.mxu0 %v5594_v43 }
 0xe96   : > { %5876 = vmatprep.subr.bf16.mxu0 %v11097_v42  ;;  %v5424_v42 = vrot.slane %v5419_v38, %v12819_v37  ;;  %v5428_v43 = vrot.slane %v5419_v38, %v12822_v41  ;;  %v5443_v0 = vrot.slane %v5434_v44, %v12822_v41  ;;  %v11225_v38 = vld [vmem:[#allocation20 + $0x68] sm:$0xff]  }
 0xe98   : > { %9159 = vmatmul.mubr.msk.bf16.vlgmr.msra.gmra.mxu0 %vm5589_vm6, %v5586_v46  ;;  %v5431_v45 = vmul.f32 %v5424_v42, %v12798_v34  ;;  %v5439_v46 = vrot.slane %v5434_v44, %v12819_v37  ;;  %v11226_v42 = vld [vmem:[#allocation20 + $0xa8] sm:$0xff]  }
 0xe99   : > { %5877 = vmatpush1.bf16.msra.mxu0 %v11095_v47  ;;  %5908 = vmatprep.mubr.bf16.mxu0 %v11700_v40  ;;  %v5432_v47 = vmul.f32 %v5428_v43, %v12800_v36  ;;  %v11227_v44 = vld [vmem:[#allocation20 + $0x28] sm:$0xff]   ;;  %v11228_v43 = vld [vmem:[#allocation20 + $0xe0] sm:$0xff]  }
 0xe9a   : > { %5878 = vmatprep.subr.bf16.mxu0 %v11100_v48  ;;  %v5446_v48 = vadd.f32 %v5439_v46, %v5431_v45  ;;  %v11229_v45 = vld [vmem:[#allocation20 + $0x60] sm:$0xff]  }
 0xe9b   : > { %v11230_v46 = vld [vmem:[#allocation20 + $0xa0] sm:$0xff]  }
 0xe9d   : > { %5879 = vmatpush1.bf16.msra.mxu0 %v11098_v49 }
 0xe9e   : > { %5880 = vmatprep.subr.bf16.mxu0 %v11103_v50 }
 0xea1   : > { %5881 = vmatpush1.bf16.msra.mxu0 %v11101_v51  ;;  %v5447_v51 = vadd.f32 %v5443_v0, %v5432_v47  ;;  %v11231_v47 = vld [vmem:[#allocation20 + $0x20] sm:$0xff]   ;;  %v11232_v0 = vld [vmem:[#allocation20 + $0xd8] sm:$0xff]  }
 0xea2   : > { %5882 = vmatprep.subr.bf16.mxu0 %v11106_v52 }
 0xea5   : > { %5883 = vmatpush1.bf16.msra.mxu0 %v11104_v53 }
 0xea6   : > { %5884 = vmatprep.subr.bf16.mxu0 %v11109_v54 }
 0xea9   : > { %5885 = vmatpush1.bf16.msra.mxu0 %v11107_v55 }
 0xeaa   : > { %5886 = vmatprep.subr.bf16.mxu0 %v11112_v56 }
 0xead   : > { %5887 = vmatpush1.bf16.msra.mxu0 %v11110_v61 }
 0xeae   : > { %5888 = vmatprep.subr.bf16.mxu0 %v11115_v62 }
 0xeaf   : > { %v12832_v36 = vpop.f32.mrf.mxu1 }
 0xeb1   : > { %5889 = vmatpush1.bf16.msra.mxu0 %v11113_v39 }
 0xeb2   : > { %5890 = vmatprep.subr.bf16.mxu0 %v11118_v63  ;;  %v12836_v63 = vpop.f32.mrf.mxu1 }
 0xeb5   : > { %5891 = vmatpush1.bf16.msra.mxu0 %v11116_v1 }
 0xeb6   : > { %6408 = vmatprep.subr.bf16.mxu0 %v11124_v3 }
 0xeb8   : > { %5909 = vmatmul.mubr.bf16.vlgmr.msra.gmra.mxu0 %v12143_v12  ;;  %v11160_v12 = vld [vmem:[#allocation28 + $0x2c] ss:$16 sps:$4 sm:$0xff]  }
 0xeb9   : > { %6409 = vmatpush1.bf16.msra.mxu0 %v11122_v4 }
 0xeba   : > { %6410 = vmatprep.subr.bf16.mxu0 %v11130_v5  ;;  %v12840_v5 = vpop.f32.mrf.mxu1 }
 0xebd   : > { %6411 = vmatpush1.bf16.msra.mxu0 %v11128_v6 }
 0xebe   : > { %6412 = vmatprep.subr.bf16.mxu0 %v11136_v7 }
 0xec1   : > { %6413 = vmatpush1.bf16.msra.mxu0 %v11134_v57  ;;  %v12844_v57 = vpop.f32.mrf.mxu1 }
 0xec2   : > { %6414 = vmatprep.subr.bf16.mxu0 %v11142_v8 }
 0xec5   : > { %6415 = vmatpush1.bf16.msra.mxu0 %v11140_v9 }
 0xec6   : > { %6416 = vmatprep.subr.bf16.mxu0 %v11148_v10 }
 0xec9   : > { %6417 = vmatpush1.bf16.msra.mxu0 %v11146_v11 }
 0xeca   : > { %6418 = vmatprep.subr.bf16.mxu0 %v11154_v58 }
 0xecd   : > { %6419 = vmatpush1.bf16.msra.mxu0 %v11152_v13 }
 0xece   : > { %6420 = vmatprep.subr.bf16.mxu0 %v11160_v12 }
 0xed1   : > { %6421 = vmatpush1.bf16.msra.mxu0 %v11158_v14 }
 0xed2   : > { %6422 = vmatprep.subr.bf16.mxu0 %v11166_v16 }
 0xed5   : > { %6423 = vmatpush1.bf16.msra.mxu0 %v11164_v17  ;;  %v11216_v17 = vld [vmem:[#allocation20 + $0xf8] sm:$0xff]  }
 0xed6   : > { %6424 = vmatprep.subr.bf16.mxu0 %v11172_v18  ;;  %v11217_v18 = vld [vmem:[#allocation20 + $0x78] sm:$0xff]  }
 0xed9   : > { %6425 = vmatpush2.bf16.msra.mxu0 %v11170_v60 }
 0xeda   : > { %6426 = vmatprep.subr.bf16.mxu0 %v11178_v19 }
 0xedd   : > { %6427 = vmatpush2.bf16.msra.mxu0 %v11176_v22 }
 0xede   : > { %6428 = vmatprep.subr.bf16.mxu0 %v11184_v23  ;;  %v11215_v23 = vld [vmem:[#allocation26] sm:$0xff]  }
 0xee1   : > { %6429 = vmatpush2.bf16.msra.mxu0 %v11182_v25  ;;  %v11218_v25 = vld [vmem:[#allocation20 + $0xb8] sm:$0xff]  }
 0xee2   : > { %6430 = vmatprep.subr.bf16.mxu0 %v11190_v59 }
 0xee5   : > { %6431 = vmatpush2.bf16.msra.mxu0 %v11188_v26 }
 0xee6   : > { %6432 = vmatprep.subr.bf16.mxu0 %v11196_v27  ;;  %v11219_v27 = vld [vmem:[#allocation20 + $0x38] sm:$0xff]  }
 0xee9   : > { %6433 = vmatpush2.bf16.msra.mxu0 %v11194_v28 }
 0xeea   : > { %6434 = vmatprep.subr.bf16.mxu0 %v11202_v29  ;;  %v11220_v29 = vld [vmem:[#allocation20 + $0xf0] sm:$0xff]  }
 0xeed   : > { %6435 = vmatpush2.bf16.msra.mxu0 %v11200_v30  ;;  %v11221_v30 = vld [vmem:[#allocation20 + $0x70] sm:$0xff]  }
 0xeee   : > { %6436 = vmatprep.subr.bf16.mxu0 %v11208_v31 }
 0xef1   : > { %6437 = vmatpush2.bf16.msra.mxu0 %v11206_v32  ;;  %v11222_v32 = vld [vmem:[#allocation20 + $0xb0] sm:$0xff]  }
 0xef2   : > { %6438 = vmatprep.subr.bf16.mxu0 %v11214_v33  ;;  %v11223_v33 = vld [vmem:[#allocation20 + $0x30] sm:$0xff]  }
 0xef5   : > { %6439 = vmatpush2.bf16.msra.mxu0 %v11212_v35  ;;  %v11224_v35 = vld [vmem:[#allocation20 + $0xe8] sm:$0xff]  }
 0xf58   : > { %v5633_v49 = vpop.f32.mrf.mxu0 }
 0xf59   : > { %v5634_v50 = vadd.f32 %v5633_v49, %v5446_v48  ;;  %v11233_v48 = vld [vmem:[#allocation20 + $0x58] sm:$0xff]  }
 0xf5a   : > { %v5635_v52 = vpop.f32.mrf.mxu0  ;;  %v11234_v49 = vld [vmem:[#allocation20 + $0x98] sm:$0xff]  }
 0xf5b   : > { %v6572_v53 = vrot.slane %v5634_v50, 7  ;;  %v5636_v54 = vadd.f32 %v5635_v52, %v5447_v51  ;;  %v5981_v62 = vpack.c.bf16 %v5634_v50, %v5634_v50  ;;  %v11235_v50 = vld [vmem:[#allocation20 + $0x18] sm:$0xff]   ;;  %v11236_v51 = vld [vmem:[#allocation20 + $0xd0] sm:$0xff]  }
 0xf5c   : > { %v5637_v55 = vpop.f32.mrf.mxu0  ;;  %v11237_v52 = vld [vmem:[#allocation20 + $0x50] sm:$0xff]  }
 0xf5d   : > { %6576 = vst [vmem:[#allocation10] sm:$0xfe] %v6572_v53  ;;  %6578 = vst [vmem:[#allocation10 + $0x10] sm:$0x1] %v6572_v53  ;;  %v5982_v56 = vpack.c.bf16 %v5636_v54, %v5636_v54  ;;  %v6573_v61 = vrot.slane %v5636_v54, 7  ;;  %v11238_v55 = vld [vmem:[#allocation20 + $0x90] sm:$0xff]  }
 0xf5e   : > { %v5638_v34 = vpop.f32.mrf.mxu0 }
 0xf5f   : > { %6577 = vst [vmem:[#allocation10 + $0x8] sm:$0xfe] %v6573_v61  ;;  %6579 = vst [vmem:[#allocation10 + $0x18] sm:$0x1] %v6573_v61  ;;  %6399 = vmatprep.mubr.bf16.mxu1 %v5982_v56  ;;  %6440 = vmatprep.mubr.bf16.mxu0 %v5982_v56  ;;  %v11239_v56 = vld [vmem:[#allocation20 + $0x10] sm:$0xff]   ;;  %v11240_v61 = vld [vmem:[#allocation20 + $0xc8] sm:$0xff]  }
 0xf60   : > { %6400 = vmatmul.mubr.bf16.vlgmr.msra.gmra.mxu1 %v5981_v62  ;;  %6441 = vmatmul.mubr.bf16.vlgmr.msra.gmra.mxu0 %v5981_v62  ;;  %v11241_v34 = vld [vmem:[#allocation20 + $0x48] sm:$0xff]  }
 0xf61   : > { %6509 = vmatprep.mubr.bf16.mxu1 %v11700_v40  ;;  %6552 = vmatprep.mubr.bf16.mxu0 %v11700_v40 }
 0xf64   : > { %v6666_v53 = vld [vmem:[#allocation10] sm:$0xfe]  ;;  %v6668_v54 = vld [vmem:[#allocation10 + $0x10] sm:$0x1] }
 0xf65   : > { %v6670_v62 = vpack.c.bf16 %v6668_v54, %v6666_v53  ;;  %v11274_v53 = vld [vmem:[#allocation12 + $0x428] sm:$0xff]  }
 0xf66   : > { %v6667_v3 = vld [vmem:[#allocation10 + $0x8] sm:$0xfe]  ;;  %v6669_v4 = vld [vmem:[#allocation10 + $0x18] sm:$0x1] }
 0xf67   : > { %v6671_v7 = vpack.c.bf16 %v6669_v4, %v6667_v3  ;;  %v6631_v26 = vld [vmem:[#allocation10 + $0x8] sm:$0xff]  ;;  %v11242_v3 = vld [vmem:[#allocation20 + $0x88] sm:$0xff]  }
 0xf68   : > { %v6633_v31 = vpack.c.bf16 %v6631_v26, %v6631_v26  ;;  %v11243_v4 = vld [vmem:[#allocation20 + $0x8] sm:$0xff]   ;;  %v11254_v26 = vld [vmem:[#allocation20 + $0x160] sm:$0xff]  }
 0xf69   : > { %v6715_v10 = vshll.u32 %v6671_v7, 16  ;;  %v6713_v59 = vshrl.u32 %v6671_v7, 16  ;;  %v11244_v7 = vld [vmem:[#allocation20 + $0xc0] sm:$0xff]  }
 0xf6a   : > { %v11275_v54 = vld [vmem:[#allocation12 + $0x4a8] sm:$0xff]  }
 0xf6b   : > { %v6717_v20 = vrot.slane %v6715_v10, 1  ;;  %v11246_v10 = vld [vmem:[#allocation20 + $0x80] sm:$0xff]  }
 0xf6d   : > { %v6718_v28 = vor.u32 %v6717_v20, %v6713_v59  ;;  %v11253_v59 = vld [vmem:[#allocation20 + $0x128] sm:$0xff]  }
 0xf78   : > { %v12834_v39 = vpop.f32.mrf.mxu0 }
 0xf7a   : > { %v12838_v1 = vpop.f32.mrf.mxu0 }
 0xf7c   : > { %v12842_v6 = vpop.f32.mrf.mxu0 }
 0xf7e   : > { %v12846_v8 = vpop.f32.mrf.mxu0 }
0x1020   : > { %v6401_v40 = vpop.f32.mrf.mxu1  ;;  %v6442_v9 = vpop.f32.mrf.mxu0 }
0x1021   : > { %v6451_v11 = vpack.c.bf16 %v6401_v40, %v6401_v40  ;;  %v6453_v58 = vpack.c.bf16 %v6442_v9, %v6442_v9  ;;  %v6708_v40 = vshll.u32 %v6670_v62, 16  ;;  %v11245_v9 = vld [vmem:[#allocation20 + $0x40] sm:$0xff]  }
0x1022   : > { %v6403_v13 = vpop.f32.mrf.mxu1  ;;  %v6444_v12 = vpop.f32.mrf.mxu0 }
0x1023   : > { %v6452_v14 = vpack.c.bf16 %v6403_v13, %v6403_v13  ;;  %v6454_v16 = vpack.c.bf16 %v6444_v12, %v6444_v12  ;;  %v6466_v21 = vsel %vm6464_vm8, %v6451_v11, 0  ;;  %v6472_v22 = vsel %vm6464_vm8, %v6453_v58, 0  ;;  %v6994_v11 = vld [vmem:[#allocation10 + $0x8] sm:$0xfc]  ;;  %v6996_v58 = vld [vmem:[#allocation10 + $0x18] sm:$0x3] }
0x1024   : > { %v6405_v60 = vpop.f32.mrf.mxu1  ;;  %v6446_v19 = vpop.f32.mrf.mxu0  ;;  %v11247_v13 = vld [vmem:[#allocation20] sm:$0xff]   ;;  %v6710_v12 = vrot.slane %v6708_v40, 1 }
0x1025   : > { %9257 = vmatprep.subr.msk.bf16.mxu1 %vm6464_vm8, %v6452_v14  ;;  %9259 = vmatprep.subr.msk.bf16.mxu0 %vm6464_vm8, %v6454_v16  ;;  %v11248_v14 = vld [vmem:[#allocation20 + $0x178] sm:$0xff]   ;;  %v11264_v16 = vld [vmem:[#allocation12 + $0x478] sm:$0xff]   ;;  %v6998_v60 = vpack.c.bf16 %v6996_v58, %v6994_v11  ;;  %v11286_v40 = vld [vmem:[#allocation12 + $0x410] sm:$0xff]  }
0x1026   : > { %v6406_v24 = vpop.f32.mrf.mxu1  ;;  %v6447_v15 = vpop.f32.mrf.mxu0  ;;  %6492 = vmatpush1.bf16.msra.mxu1 %v6466_v21  ;;  %6535 = vmatpush1.bf16.msra.mxu0 %v6472_v22  ;;  %v11249_v19 = vld [vmem:[#allocation20 + $0x138] sm:$0xff]   ;;  %v11250_v21 = vld [vmem:[#allocation20 + $0x170] sm:$0xff]   ;;  %v11285_v11 = vld [vmem:[#allocation12 + $0x4d0] sm:$0xff]  }
0x1027   : > { %9800 = vmatprep.subr.bf16.mxu1 %v11216_v17  ;;  %9822 = vmatprep.subr.bf16.mxu0 %v11217_v18  ;;  %v6706_v17 = vshrl.u32 %v6670_v62, 16  ;;  %v6630_v18 = vld [vmem:[#allocation10] sm:$0xff]  ;;  %v7035_v24 = vrot.slane %v6998_v60, 1  ;;  %v11290_v58 = vld [vmem:[#allocation12 + $0x408] sm:$0xff]  }
0x1028   : > { %v6632_v22 = vpack.c.bf16 %v6630_v18, %v6630_v18  ;;  %v11251_v15 = vld [vmem:[#allocation20 + $0x130] sm:$0xff]  }
0x1029   : > { %9258 = vmatmul.mubr.msk.bf16.vlgmr.msra.gmra.mxu1 %vm6460_vm9, %v11215_v23  ;;  %9260 = vmatmul.mubr.msk.bf16.vlgmr.msra.gmra.mxu0 %vm6460_vm9, %v11215_v23  ;;  %v6711_v20 = vor.u32 %v6710_v12, %v6706_v17  ;;  %v11266_v23 = vld [vmem:[#allocation12 + $0x438] sm:$0xff]   ;;  %v11279_v62 = vld [vmem:[#allocation12 + $0x4a0] sm:$0xff]   ;;  %v11291_v17 = vld [vmem:[#allocation12 + $0x488] sm:$0xff]  }
0x102a   : > { %9801 = vmatpush3.bf16.msra.mxu1 %v11218_v25  ;;  %6849 = vmatprep.mubr.bf16.mxu1 %v6718_v28  ;;  %v11252_v25 = vld [vmem:[#allocation20 + $0x168] sm:$0xff]   ;;  %v11256_v28 = vld [vmem:[#allocation20 + $0x158] sm:$0xff]  }
0x102b   : > { %9823 = vmatpush3.bf16.msra.mxu0 %v11219_v27  ;;  %6985 = vmatprep.mubr.bf16.mxu0 %v6633_v31  ;;  %v11255_v27 = vld [vmem:[#allocation20 + $0x120] sm:$0xff]   ;;  %v11259_v31 = vld [vmem:[#allocation20 + $0x110] sm:$0xff]  }
0x102c   : > { %9802 = vmatprep.subr.bf16.mxu1 %v11220_v29  ;;  %9824 = vmatprep.subr.bf16.mxu0 %v11221_v30  ;;  %v11257_v29 = vld [vmem:[#allocation20 + $0x118] sm:$0xff]   ;;  %v11258_v30 = vld [vmem:[#allocation20 + $0x150] sm:$0xff]  }
0x102d   : > { %v11292_v12 = vld [vmem:[#allocation12 + $0x440] sm:$0xff]  }
0x102e   : > { %9803 = vmatpush3.bf16.msra.mxu1 %v11222_v32  ;;  %v11260_v32 = vld [vmem:[#allocation20 + $0x148] sm:$0xff]   ;;  %v11293_v18 = vld [vmem:[#allocation12 + $0x4c0] sm:$0xff]  }
0x102f   : > { %9825 = vmatpush3.bf16.msra.mxu0 %v11223_v33  ;;  %9804 = vmatprep.subr.bf16.mxu1 %v11224_v35  ;;  %v11261_v33 = vld [vmem:[#allocation20 + $0x108] sm:$0xff]   ;;  %v11262_v35 = vld [vmem:[#allocation20 + $0x140] sm:$0xff]   ;;  %v11295_v60 = vld [vmem:[#allocation12 + $0x480] sm:$0xff]  }
0x1030   : > { %9826 = vmatprep.subr.bf16.mxu0 %v11225_v38  ;;  %v6993_v38 = vld [vmem:[#allocation10] sm:$0xfc] }
0x1032   : > { %9805 = vmatpush3.bf16.msra.mxu1 %v11226_v42  ;;  %v6995_v42 = vld [vmem:[#allocation10 + $0x10] sm:$0x3] }
0x1033   : > { %9827 = vmatpush3.bf16.msra.mxu0 %v11227_v44  ;;  %9806 = vmatprep.subr.bf16.mxu1 %v11228_v43  ;;  %v11263_v44 = vld [vmem:[#allocation20 + $0x100] sm:$0xff]   ;;  %v6997_v43 = vpack.c.bf16 %v6995_v42, %v6993_v38 }
0x1034   : > { %9828 = vmatprep.subr.bf16.mxu0 %v11229_v45  ;;  %v11265_v45 = vld [vmem:[#allocation12 + $0x4f8] sm:$0xff]  }
0x1036   : > { %9807 = vmatpush3.bf16.msra.mxu1 %v11230_v46  ;;  %v11267_v46 = vld [vmem:[#allocation12 + $0x4b8] sm:$0xff]  }
0x1037   : > { %9829 = vmatpush3.bf16.msra.mxu0 %v11231_v47  ;;  %9808 = vmatprep.subr.bf16.mxu1 %v11232_v0  ;;  %v11268_v47 = vld [vmem:[#allocation12 + $0x470] sm:$0xff]   ;;  %v7034_v0 = vrot.slane %v6997_v43, 1 }
0x1038   : > { %9830 = vmatprep.subr.bf16.mxu0 %v11233_v48  ;;  %v11269_v48 = vld [vmem:[#allocation12 + $0x4f0] sm:$0xff]  }
0x103a   : > { %9809 = vmatpush3.bf16.msra.mxu1 %v11234_v49  ;;  %v11270_v49 = vld [vmem:[#allocation12 + $0x430] sm:$0xff]  }
0x103b   : > { %9831 = vmatpush3.bf16.msra.mxu0 %v11235_v50  ;;  %9810 = vmatprep.subr.bf16.mxu1 %v11236_v51  ;;  %v11271_v50 = vld [vmem:[#allocation12 + $0x4b0] sm:$0xff]   ;;  %v11272_v51 = vld [vmem:[#allocation12 + $0x468] sm:$0xff]  }
0x103c   : > { %9832 = vmatprep.subr.bf16.mxu0 %v11237_v52  ;;  %v11273_v52 = vld [vmem:[#allocation12 + $0x4e8] sm:$0xff]  }
0x103e   : > { %9811 = vmatpush3.bf16.msra.mxu1 %v11238_v55  ;;  %v11276_v55 = vld [vmem:[#allocation12 + $0x460] sm:$0xff]  }
0x103f   : > { %9833 = vmatpush3.bf16.msra.mxu0 %v11239_v56  ;;  %9812 = vmatprep.subr.bf16.mxu1 %v11240_v61  ;;  %v11277_v56 = vld [vmem:[#allocation12 + $0x4e0] sm:$0xff]  }
0x1040   : > { %9834 = vmatprep.subr.bf16.mxu0 %v11241_v34  ;;  %v11278_v61 = vld [vmem:[#allocation12 + $0x420] sm:$0xff]   ;;  %v11280_v34 = vld [vmem:[#allocation12 + $0x458] sm:$0xff]  }
0x1042   : > { %9813 = vmatpush3.bf16.msra.mxu1 %v11242_v3  ;;  %v11281_v3 = vld [vmem:[#allocation12 + $0x4d8] sm:$0xff]  }
0x1043   : > { %9835 = vmatpush3.bf16.msra.mxu0 %v11243_v4  ;;  %9814 = vmatprep.subr.bf16.mxu1 %v11244_v7  ;;  %v11282_v4 = vld [vmem:[#allocation12 + $0x418] sm:$0xff]   ;;  %v11284_v7 = vld [vmem:[#allocation12 + $0x450] sm:$0xff]  }
0x1044   : > { %9836 = vmatprep.subr.bf16.mxu0 %v11245_v9  ;;  %v11283_v9 = vld [vmem:[#allocation12 + $0x498] sm:$0xff]  }
0x1046   : > { %9815 = vmatpush3.bf16.msra.mxu1 %v11246_v10  ;;  %v11288_v10 = vld [vmem:[#allocation12 + $0x448] sm:$0xff]  }
0x1047   : > { %9837 = vmatpush3.bf16.msra.mxu0 %v11247_v13  ;;  %9844 = vmatprep.subr.bf16.mxu1 %v11248_v14  ;;  %v11287_v13 = vld [vmem:[#allocation12 + $0x490] sm:$0xff]   ;;  %v11289_v14 = vld [vmem:[#allocation12 + $0x4c8] sm:$0xff]  }
0x1048   : > { %9866 = vmatprep.subr.bf16.mxu0 %v11264_v16  ;;  %v11294_v16 = vld [vmem:[#allocation12 + $0x400] sm:$0xff]  }
0x1049   : > { %6850 = vmatmul.mubr.bf16.vlgmr.msra.gmra.mxu1 %v6711_v20  ;;  %v11297_v20 = vld [vmem:[#allocation12 + $0x3f8] sm:$0xff]  }
0x104a   : > { %6986 = vmatmul.mubr.bf16.vlgmr.msra.gmra.mxu0 %v6632_v22  ;;  %9845 = vmatpush3.bf16.msra.mxu1 %v11249_v19  ;;  %v11296_v19 = vld [vmem:[#allocation12 + $0x378] sm:$0xff]  }
0x104b   : > { %7166 = vmatprep.mubr.bf16.mxu1 %v7035_v24  ;;  %9846 = vmatprep.subr.bf16.mxu1 %v11250_v21  ;;  %v5932_v21 = vsub.s32 2, %v12816_v2  ;;  %v5920_v22 = vld [vmem:[#allocation22 + $0x44] ss:$8 sm:$0xf] }
0x104c   : > { %9867 = vmatpush3.bf16.msra.mxu0 %v11266_v23  ;;  %v5936_v23 = vsub.s32 3, %v12816_v2  ;;  %v5925_v24 = vrot.slane %v5920_v22, %v12819_v37 }
0x104d   : > { %9868 = vmatprep.subr.bf16.mxu0 %v11268_v47 }
0x104e   : > { %9847 = vmatpush3.bf16.msra.mxu1 %v11251_v15  ;;  %v5933_v15 = vrot.slane %v5920_v22, %v5932_v21 }
0x104f   : > { %9848 = vmatprep.subr.bf16.mxu1 %v11252_v25  ;;  %v5951_v25 = vld [vmem:[#allocation22 + $0x45] ss:$8 sm:$0xf] }
0x1050   : > { %9869 = vmatpush3.bf16.msra.mxu0 %v11270_v49  ;;  %v5960_v2 = vrot.slane %v5951_v25, %v12822_v41  ;;  %v5948_v38 = vmul.f32 %v5933_v15, %v12842_v6 }
0x1051   : > { %9870 = vmatprep.subr.bf16.mxu0 %v11272_v51 }
0x1052   : > { %9849 = vmatpush3.bf16.msra.mxu1 %v11253_v59  ;;  %v5929_v59 = vrot.slane %v5920_v22, %v12822_v41 }
0x1053   : > { %9850 = vmatprep.subr.bf16.mxu1 %v11254_v26  ;;  %v5937_v26 = vrot.slane %v5920_v22, %v5936_v23 }
0x1054   : > { %9871 = vmatpush3.bf16.msra.mxu0 %v11274_v53 }
0x1055   : > { %9872 = vmatprep.subr.bf16.mxu0 %v11276_v55 }
0x1056   : > { %9851 = vmatpush3.bf16.msra.mxu1 %v11255_v27  ;;  %v5942_v27 = vmul.f32 %v5925_v24, %v12832_v36  ;;  %v5947_v36 = vmul.f32 %v5929_v59, %v12844_v57 }
0x1057   : > { %9852 = vmatprep.subr.bf16.mxu1 %v11256_v28  ;;  %v5944_v28 = vmul.f32 %v5933_v15, %v12834_v39  ;;  %v5949_v39 = vmul.f32 %v5937_v26, %v12846_v8 }
0x1058   : > { %9873 = vmatpush3.bf16.msra.mxu0 %v11278_v61  ;;  %v5978_v53 = vadd.f32 %v5960_v2, %v5947_v36 }
0x1059   : > { %9874 = vmatprep.subr.bf16.mxu0 %v11280_v34 }
0x105a   : > { %9853 = vmatpush3.bf16.msra.mxu1 %v11257_v29  ;;  %v5956_v29 = vrot.slane %v5951_v25, %v12819_v37 }
0x105b   : > { %9854 = vmatprep.subr.bf16.mxu1 %v11258_v30  ;;  %v5964_v30 = vrot.slane %v5951_v25, %v5932_v21 }
0x105c   : > { %9875 = vmatpush3.bf16.msra.mxu0 %v11282_v4  ;;  %v5973_v42 = vadd.f32 %v5956_v29, %v5942_v27 }
0x105d   : > { %9876 = vmatprep.subr.bf16.mxu0 %v11284_v7 }
0x105e   : > { %9855 = vmatpush3.bf16.msra.mxu1 %v11259_v31  ;;  %v5943_v31 = vmul.f32 %v5929_v59, %v12836_v63 }
0x105f   : > { %9856 = vmatprep.subr.bf16.mxu1 %v11260_v32  ;;  %v5945_v32 = vmul.f32 %v5937_v26, %v12838_v1 }
0x1060   : > { %9877 = vmatpush3.bf16.msra.mxu0 %v11286_v40  ;;  %v5974_v63 = vadd.f32 %v5960_v2, %v5943_v31 }
0x1061   : > { %9878 = vmatprep.subr.bf16.mxu0 %v11288_v10 }
0x1062   : > { %9857 = vmatpush3.bf16.msra.mxu1 %v11261_v33  ;;  %v5968_v33 = vrot.slane %v5951_v25, %v5936_v23 }
0x1063   : > { %9858 = vmatprep.subr.bf16.mxu1 %v11262_v35  ;;  %v5946_v35 = vmul.f32 %v5925_v24, %v12840_v5 }
0x1064   : > { %9879 = vmatpush3.bf16.msra.mxu0 %v11290_v58  ;;  %v5976_v47 = vadd.f32 %v5968_v33, %v5945_v32  ;;  %v5980_v57 = vadd.f32 %v5968_v33, %v5949_v39 }
0x1065   : > { %9880 = vmatprep.subr.bf16.mxu0 %v11292_v12  ;;  %v5977_v41 = vadd.f32 %v5956_v29, %v5946_v35 }
0x1066   : > { %9859 = vmatpush3.bf16.msra.mxu1 %v11263_v44  ;;  %v5975_v44 = vadd.f32 %v5964_v30, %v5944_v28 }
0x1067   : > { %9888 = vmatprep.subr.bf16.mxu1 %v11265_v45 }
0x1068   : > { %9881 = vmatpush3.bf16.msra.mxu0 %v11294_v16 }
0x1069   : > { %7167 = vmatmul.mubr.bf16.vlgmr.msra.gmra.mxu1 %v7034_v0  ;;  %9910 = vmatprep.subr.bf16.mxu0 %v11296_v19 }
0x106a   : > { %9889 = vmatpush3.bf16.msra.mxu1 %v11267_v46 }
0x106b   : > { %9890 = vmatprep.subr.bf16.mxu1 %v11269_v48  ;;  %v5979_v48 = vadd.f32 %v5964_v30, %v5948_v38 }
0x106e   : > { %9891 = vmatpush3.bf16.msra.mxu1 %v11271_v50 }
0x106f   : > { %9892 = vmatprep.subr.bf16.mxu1 %v11273_v52 }
0x1072   : > { %9893 = vmatpush3.bf16.msra.mxu1 %v11275_v54 }
0x1073   : > { %9894 = vmatprep.subr.bf16.mxu1 %v11277_v56 }
0x1076   : > { %9895 = vmatpush3.bf16.msra.mxu1 %v11279_v62 }
0x1077   : > { %9896 = vmatprep.subr.bf16.mxu1 %v11281_v3 }
0x107a   : > { %9897 = vmatpush3.bf16.msra.mxu1 %v11283_v9 }
0x107b   : > { %9898 = vmatprep.subr.bf16.mxu1 %v11285_v11 }
0x107e   : > { %9899 = vmatpush3.bf16.msra.mxu1 %v11287_v13 }
0x107f   : > { %9900 = vmatprep.subr.bf16.mxu1 %v11289_v14 }
0x1082   : > { %9901 = vmatpush3.bf16.msra.mxu1 %v11291_v17 }
0x1083   : > { %9902 = vmatprep.subr.bf16.mxu1 %v11293_v18 }
0x1086   : > { %9903 = vmatpush3.bf16.msra.mxu1 %v11295_v60 }
0x1087   : > { %9932 = vmatprep.subr.bf16.mxu1 %v11297_v20 }
0x10e9   : > { %v6511_v43 = vpop.f32.mrf.mxu1  ;;  %v6554_v37 = vpop.f32.mrf.mxu0 }
0x10ea   : > { %v6512_v45 = vadd.f32 %v6511_v43, %v5973_v42  ;;  %v6555_v46 = vadd.f32 %v6554_v37, %v5975_v44 }
0x10eb   : > { %v6513_v1 = vpop.f32.mrf.mxu1  ;;  %v6556_v0 = vpop.f32.mrf.mxu0 }
0x10ec   : > { %v6593_v49 = vrot.slane %v6512_v45, 7  ;;  %v6595_v5 = vrot.slane %v6555_v46, 7  ;;  %v6514_v50 = vadd.f32 %v6513_v1, %v5974_v63  ;;  %v6557_v6 = vadd.f32 %v6556_v0, %v5976_v47 }
0x10ed   : > { %v6515_v51 = vpop.f32.mrf.mxu1  ;;  %v6558_v52 = vpop.f32.mrf.mxu0 }
0x10ee   : > { %6617 = vst [vmem:[#allocation11] sm:$0xfe] %v6593_v49  ;;  %6619 = vst [vmem:[#allocation11 + $0x10] sm:$0xfe] %v6595_v5  ;;  %v6594_v8 = vrot.slane %v6514_v50, 7  ;;  %v6596_v54 = vrot.slane %v6557_v6, 7  ;;  %v6516_v55 = vadd.f32 %v6515_v51, %v5977_v41  ;;  %v6559_v56 = vadd.f32 %v6558_v52, %v5979_v48 }
0x10ef   : > { %v6517_v61 = vpop.f32.mrf.mxu1  ;;  %v6560_v62 = vpop.f32.mrf.mxu0  ;;  %v11298_v41 = vld [vmem:[#allocation12 + $0x338] sm:$0xff]  }
0x10f0   : > { %6618 = vst [vmem:[#allocation11 + $0x8] sm:$0xfe] %v6594_v8  ;;  %6620 = vst [vmem:[#allocation11 + $0x18] sm:$0xfe] %v6596_v54  ;;  %v6597_v34 = vrot.slane %v6516_v55, 7  ;;  %v6601_v3 = vrot.slane %v6559_v56, 7  ;;  %v6518_v4 = vadd.f32 %v6517_v61, %v5978_v53  ;;  %v6561_v7 = vadd.f32 %v6560_v62, %v5980_v57 }
0x10f1   : > { %v11302_v61 = vld [vmem:[#allocation12 + $0x330] sm:$0xff]  }
0x10f2   : > { %v12863_v40 = vsel %vm758_vm1, %v6593_v49, %v6597_v34  ;;  %6625 = vst [vmem:[#allocation11 + $0x40] sm:$0x1] %v6597_v34  ;;  %v12866_v9 = vsel %vm758_vm1, %v6595_v5, %v6601_v3  ;;  %6627 = vst [vmem:[#allocation11 + $0x50] sm:$0x1] %v6601_v3  ;;  %v6599_v10 = vrot.slane %v6518_v4, 7  ;;  %v6603_v11 = vrot.slane %v6561_v7, 7 }
0x10f3   : > { %v11299_v5 = vld [vmem:[#allocation12 + $0x3b8] sm:$0xff]   ;;  %v11303_v62 = vld [vmem:[#allocation12 + $0x3b0] sm:$0xff]   ;;  %v11304_v34 = vld [vmem:[#allocation12 + $0x368] sm:$0xff]  }
0x10f4   : > { %v12869_v58 = vsel %vm758_vm1, %v6594_v8, %v6599_v10  ;;  %6626 = vst [vmem:[#allocation11 + $0x48] sm:$0x1] %v6599_v10  ;;  %v12872_v13 = vsel %vm758_vm1, %v6596_v54, %v6603_v11  ;;  %6628 = vst [vmem:[#allocation11 + $0x58] sm:$0x1] %v6603_v11  ;;  %v11300_v8 = vld [vmem:[#allocation12 + $0x370] sm:$0xff]   ;;  %v11305_v3 = vld [vmem:[#allocation12 + $0x3e8] sm:$0xff]  }
0x10f5   : > { %v7257_v12 = vld [vmem:[#allocation11] sm:$0xfe]  ;;  %v7259_v14 = vld [vmem:[#allocation11 + $0x10] sm:$0xfe]  ;;  %v11306_v7 = vld [vmem:[#allocation12 + $0x328] sm:$0xff]  }
0x10f6   : > { %v7265_v16 = vpack.c.bf16 %v12863_v40, %v7257_v12  ;;  %v7267_v17 = vpack.c.bf16 %v12866_v9, %v7259_v14  ;;  %v11301_v54 = vld [vmem:[#allocation12 + $0x3f0] sm:$0xff]   ;;  %v11307_v10 = vld [vmem:[#allocation12 + $0x3a8] sm:$0xff]   ;;  %v11308_v12 = vld [vmem:[#allocation12 + $0x360] sm:$0xff]  }
0x10f7   : > { %v7258_v18 = vld [vmem:[#allocation11 + $0x8] sm:$0xfe]  ;;  %v7260_v60 = vld [vmem:[#allocation11 + $0x18] sm:$0xfe]  ;;  %v11309_v14 = vld [vmem:[#allocation12 + $0x3e0] sm:$0xff]  }
0x10f8   : > { %v7266_v19 = vpack.c.bf16 %v12869_v58, %v7258_v18  ;;  %v7268_v20 = vpack.c.bf16 %v12872_v13, %v7260_v60  ;;  %v7341_v22 = vshll.u32 %v7265_v16, 16  ;;  %v7365_v24 = vshll.u32 %v7267_v17, 16  ;;  %v7181_v50 = vld [vmem:[#allocation11 + $0x8] sm:$0xff]  ;;  %v7183_v6 = vld [vmem:[#allocation11 + $0x18] sm:$0xff]  ;;  %v11310_v60 = vld [vmem:[#allocation12 + $0x320] sm:$0xff]  }
0x10f9   : > { %v7261_v21 = vld [vmem:[#allocation11 + $0x40] sm:$0x1]  ;;  %v7263_v23 = vld [vmem:[#allocation11 + $0x50] sm:$0x1]  ;;  %v7339_v43 = vshrl.u32 %v7265_v16, 16  ;;  %v7363_v45 = vshrl.u32 %v7267_v17, 16  ;;  %v7189_v55 = vpack.c.bf16 %v12869_v58, %v7181_v50  ;;  %v7191_v56 = vpack.c.bf16 %v12872_v13, %v7183_v6 }
0x10fa   : > { %v7353_v15 = vshll.u32 %v7266_v19, 16  ;;  %v7377_v25 = vshll.u32 %v7268_v20, 16  ;;  %v7269_v27 = vpack.c.bf16 %v7261_v21, %v7261_v21  ;;  %v7271_v28 = vpack.c.bf16 %v7263_v23, %v7263_v23  ;;  %v11312_v21 = vld [vmem:[#allocation12 + $0x358] sm:$0xff]  }
0x10fb   : > { %v7262_v59 = vld [vmem:[#allocation11 + $0x48] sm:$0x1]  ;;  %v7264_v26 = vld [vmem:[#allocation11 + $0x58] sm:$0x1]  ;;  %v7343_v2 = vrot.slane %v7341_v22, 1  ;;  %v7367_v35 = vrot.slane %v7365_v24, 1 }
0x10fc   : > { %v7270_v29 = vpack.c.bf16 %v7262_v59, %v7262_v59  ;;  %v7355_v30 = vrot.slane %v7353_v15, 1  ;;  %v7272_v31 = vpack.c.bf16 %v7264_v26, %v7264_v26  ;;  %v7379_v32 = vrot.slane %v7377_v25, 1  ;;  %v11313_v22 = vld [vmem:[#allocation12 + $0x3d8] sm:$0xff]   ;;  %v11316_v59 = vld [vmem:[#allocation12 + $0x350] sm:$0xff]  }
0x10fd   : > { %v7346_v33 = vshll.u32 %v7269_v27, 16  ;;  %v7370_v38 = vshll.u32 %v7271_v28, 16  ;;  %v7351_v42 = vshrl.u32 %v7266_v19, 16  ;;  %v7375_v36 = vshrl.u32 %v7268_v20, 16  ;;  %v11311_v19 = vld [vmem:[#allocation12 + $0x3a0] sm:$0xff]   ;;  %v11314_v15 = vld [vmem:[#allocation12 + $0x318] sm:$0xff]  }
0x10fe   : > { %v7358_v44 = vshll.u32 %v7270_v29, 16  ;;  %v7382_v39 = vshll.u32 %v7272_v31, 16  ;;  %v7344_v48 = vor.u32 %v7343_v2, %v7339_v43  ;;  %v7368_v49 = vor.u32 %v7367_v35, %v7363_v45  ;;  %v11315_v25 = vld [vmem:[#allocation12 + $0x398] sm:$0xff]   ;;  %v11317_v26 = vld [vmem:[#allocation12 + $0x3d0] sm:$0xff]   ;;  %v11320_v29 = vld [vmem:[#allocation12 + $0x348] sm:$0xff]  }
0x10ff   : > { %v7348_v37 = vrot.slane %v7346_v33, 1  ;;  %v7372_v46 = vrot.slane %v7370_v38, 1  ;;  %v7356_v63 = vor.u32 %v7355_v30, %v7351_v42  ;;  %v7380_v1 = vor.u32 %v7379_v32, %v7375_v36  ;;  %v11318_v27 = vld [vmem:[#allocation12 + $0x310] sm:$0xff]   ;;  %v11321_v30 = vld [vmem:[#allocation12 + $0x3c8] sm:$0xff]   ;;  %v11324_v33 = vld [vmem:[#allocation12 + $0x340] sm:$0xff]  }
0x1100   : > { %v7360_v47 = vrot.slane %v7358_v44, 1  ;;  %v7384_v0 = vrot.slane %v7382_v39, 1  ;;  %v11319_v28 = vld [vmem:[#allocation12 + $0x390] sm:$0xff]   ;;  %v11322_v31 = vld [vmem:[#allocation12 + $0x308] sm:$0xff]   ;;  %v11325_v35 = vld [vmem:[#allocation12 + $0x3c0] sm:$0xff]  }
0x1101   : > { %v7349_v53 = vsel %vm952_vm2, %v7344_v48, %v7348_v37  ;;  %v7373_v57 = vsel %vm952_vm2, %v7368_v49, %v7372_v46  ;;  %v11323_v32 = vld [vmem:[#allocation12 + $0x388] sm:$0xff]   ;;  %v7945_v38 = vld [vmem:[#allocation11 + $0x58] sm:$0x3]  ;;  %v7941_v36 = vld [vmem:[#allocation11 + $0x18] sm:$0xfc] }
0x1102   : > { %v7361_v51 = vsel %vm952_vm2, %v7356_v63, %v7360_v47  ;;  %v7385_v52 = vsel %vm952_vm2, %v7380_v1, %v7384_v0  ;;  %v7943_v2 = vld [vmem:[#allocation11 + $0x48] sm:$0x3]  ;;  %v7939_v42 = vld [vmem:[#allocation11 + $0x8] sm:$0xfc]  ;;  %v11326_v39 = vld [vmem:[#allocation12 + $0x300] sm:$0xff]   ;;  %v7953_v37 = vpack.c.bf16 %v7945_v38, %v7945_v38  ;;  %v7949_v0 = vpack.c.bf16 %v12872_v13, %v7941_v36 }
0x1103   : > { %7614 = vmatprep.mubr.bf16.mxu0 %v7361_v51  ;;  %7655 = vmatprep.mubr.bf16.mxu1 %v7385_v52  ;;  %v7951_v44 = vpack.c.bf16 %v7943_v2, %v7943_v2  ;;  %v11327_v43 = vld [vmem:[#allocation12 + $0x380] sm:$0xff]   ;;  %v11328_v45 = vld [vmem:[#allocation12 + $0x578] sm:$0xff]   ;;  %v7947_v63 = vpack.c.bf16 %v12869_v58, %v7939_v42  ;;  %v7182_v1 = vld [vmem:[#allocation11 + $0x10] sm:$0xff] }
0x1104   : > { %7615 = vmatmul.mubr.bf16.vlgmr.msra.gmra.mxu0 %v7349_v53  ;;  %7656 = vmatmul.mubr.bf16.vlgmr.msra.gmra.mxu1 %v7373_v57  ;;  %v11329_v46 = vld [vmem:[#allocation12 + $0x5f8] sm:$0xff]   ;;  %v7180_v47 = vld [vmem:[#allocation11] sm:$0xff]  ;;  %v8037_v49 = vrot.slane %v7953_v37, 1  ;;  %v7190_v50 = vpack.c.bf16 %v12866_v9, %v7182_v1  ;;  %v8036_v52 = vrot.slane %v7949_v0, 1  ;;  %v11332_v53 = vld [vmem:[#allocation12 + $0x570] sm:$0xff]  }
0x1105   : > { %9911 = vmatpush3.bf16.msra.mxu0 %v11298_v41  ;;  %9933 = vmatpush3.bf16.msra.mxu1 %v11299_v5  ;;  %v8031_v41 = vrot.slane %v7951_v44, 1  ;;  %v11330_v48 = vld [vmem:[#allocation12 + $0x538] sm:$0xff]   ;;  %v7188_v5 = vpack.c.bf16 %v12863_v40, %v7180_v47  ;;  %v8030_v6 = vrot.slane %v7947_v63, 1  ;;  %v11333_v58 = vld [vmem:[#allocation12 + $0x5f0] sm:$0xff]   ;;  %v11354_v2 = vld [vmem:[#allocation12 + $0x508] sm:$0xff]  }
0x1106   : > { %7888 = vmatprep.mubr.bf16.mxu0 %v7189_v55  ;;  %7929 = vmatprep.mubr.bf16.mxu1 %v7191_v56  ;;  %v11331_v51 = vld [vmem:[#allocation12 + $0x5b8] sm:$0xff]   ;;  %v8038_v57 = vsel %vm1642_vm3, %v8036_v52, %v8037_v49  ;;  %v11336_v55 = vld [vmem:[#allocation12 + $0x568] sm:$0xff]   ;;  %v11356_v38 = vld [vmem:[#allocation12 + $0x540] sm:$0xff]  }
0x1107   : > { %9912 = vmatprep.subr.bf16.mxu0 %v11300_v8  ;;  %9934 = vmatprep.subr.bf16.mxu1 %v11301_v54  ;;  %v8032_v13 = vsel %vm1642_vm3, %v8030_v6, %v8031_v41  ;;  %v11334_v8 = vld [vmem:[#allocation12 + $0x530] sm:$0xff]   ;;  %v11337_v56 = vld [vmem:[#allocation12 + $0x5e8] sm:$0xff]   ;;  %v7938_v42 = vld [vmem:[#allocation11] sm:$0xfc] }
0x1108   : > { %v11335_v54 = vld [vmem:[#allocation12 + $0x5b0] sm:$0xff]   ;;  %v11357_v44 = vld [vmem:[#allocation12 + $0x5c0] sm:$0xff]  }
0x1109   : > { %v12884_v4 = vpop.f32.mrf.mxu1  ;;  %9913 = vmatpush3.bf16.msra.mxu0 %v11302_v61  ;;  %9935 = vmatpush3.bf16.msra.mxu1 %v11303_v62  ;;  %v11358_v37 = vld [vmem:[#allocation12 + $0x500] sm:$0xff]  }
0x110a   : > { %v12886_v11 = vpop.f32.mrf.mxu0  ;;  %9914 = vmatprep.subr.bf16.mxu0 %v11304_v34  ;;  %9936 = vmatprep.subr.bf16.mxu1 %v11305_v3  ;;  %v11338_v3 = vld [vmem:[#allocation12 + $0x528] sm:$0xff]  }
0x110b   : > { %v12888_v16 = vpop.f32.mrf.mxu1 }
0x110c   : > { %v12890_v17 = vpop.f32.mrf.mxu0  ;;  %v9818_v61 = vadd.f32 %v12888_v16, %v12884_v4  ;;  %v11342_v4 = vld [vmem:[#allocation12 + $0x520] sm:$0xff]  }
0x110d   : > { %v9819_v18 = vpop.f32.mrf.mxu1  ;;  %9915 = vmatpush3.bf16.msra.mxu0 %v11306_v7  ;;  %9937 = vmatpush3.bf16.msra.mxu1 %v11307_v10  ;;  %v9840_v62 = vadd.f32 %v12890_v17, %v12886_v11  ;;  %v11339_v7 = vld [vmem:[#allocation12 + $0x5a8] sm:$0xff]   ;;  %v11340_v10 = vld [vmem:[#allocation12 + $0x560] sm:$0xff]   ;;  %v11344_v17 = vld [vmem:[#allocation12 + $0x558] sm:$0xff]  }
0x110e   : > { %v9841_v20 = vpop.f32.mrf.mxu0  ;;  %9916 = vmatprep.subr.bf16.mxu0 %v11308_v12  ;;  %9938 = vmatprep.subr.bf16.mxu1 %v11309_v14  ;;  %v11341_v14 = vld [vmem:[#allocation12 + $0x5e0] sm:$0xff]  }
0x110f   : > { %v9820_v23 = vpop.f32.mrf.mxu1  ;;  %v6988_v18 = vadd.f32 %v9840_v62, %v9818_v61  ;;  %v11343_v11 = vld [vmem:[#allocation12 + $0x5a0] sm:$0xff]  }
0x1110   : > { %v9842_v24 = vpop.f32.mrf.mxu0  ;;  %v11345_v23 = vld [vmem:[#allocation12 + $0x5d8] sm:$0xff]  }
0x1111   : > { %9917 = vmatpush3.bf16.msra.mxu0 %v11310_v60  ;;  %9939 = vmatpush3.bf16.msra.mxu1 %v11311_v19  ;;  %v7175_v19 = vld [vmem:[#allocation22 + $0x46] ss:$0 sm:$0xff] }
0x1112   : > { %9918 = vmatprep.subr.bf16.mxu0 %v11312_v21  ;;  %9940 = vmatprep.subr.bf16.mxu1 %v11313_v22  ;;  %v7177_v21 = vld [vmem:[#allocation22 + $0x47] ss:$0 sm:$0xff] }
0x1115   : > { %9919 = vmatpush3.bf16.msra.mxu0 %v11314_v15  ;;  %9941 = vmatpush3.bf16.msra.mxu1 %v11315_v25  ;;  %v11346_v15 = vld [vmem:[#allocation12 + $0x518] sm:$0xff]  }
0x1116   : > { %9920 = vmatprep.subr.bf16.mxu0 %v11316_v59  ;;  %9942 = vmatprep.subr.bf16.mxu1 %v11317_v26  ;;  %v11347_v59 = vld [vmem:[#allocation12 + $0x598] sm:$0xff]   ;;  %v11348_v26 = vld [vmem:[#allocation12 + $0x550] sm:$0xff]  }
0x1119   : > { %9921 = vmatpush3.bf16.msra.mxu0 %v11318_v27  ;;  %9943 = vmatpush3.bf16.msra.mxu1 %v11319_v28  ;;  %v11349_v27 = vld [vmem:[#allocation12 + $0x5d0] sm:$0xff]  }
0x111a   : > { %9922 = vmatprep.subr.bf16.mxu0 %v11320_v29  ;;  %9944 = vmatprep.subr.bf16.mxu1 %v11321_v30  ;;  %v11350_v28 = vld [vmem:[#allocation12 + $0x510] sm:$0xff]   ;;  %v11352_v30 = vld [vmem:[#allocation12 + $0x548] sm:$0xff]  }
0x111b   : > { %v11351_v29 = vld [vmem:[#allocation12 + $0x590] sm:$0xff]  }
0x111d   : > { %9923 = vmatpush3.bf16.msra.mxu0 %v11322_v31  ;;  %9945 = vmatpush3.bf16.msra.mxu1 %v11323_v32  ;;  %v11353_v31 = vld [vmem:[#allocation12 + $0x5c8] sm:$0xff]   ;;  %v7942_v32 = vld [vmem:[#allocation11 + $0x40] sm:$0x3] }
0x111e   : > { %9924 = vmatprep.subr.bf16.mxu0 %v11324_v33  ;;  %9946 = vmatprep.subr.bf16.mxu1 %v11325_v35  ;;  %v7944_v33 = vld [vmem:[#allocation11 + $0x50] sm:$0x3]  ;;  %v11355_v35 = vld [vmem:[#allocation12 + $0x588] sm:$0xff]   ;;  %v7950_v36 = vpack.c.bf16 %v7942_v32, %v7942_v32 }
0x111f   : > { %v8322_v32 = vld [vmem:[#allocation22 + $0x61] ss:$0 sm:$0xff] }
0x1120   : > { %v8028_v47 = vrot.slane %v7950_v36, 1 }
0x1121   : > { %9925 = vmatpush3.bf16.msra.mxu0 %v11326_v39  ;;  %9947 = vmatpush3.bf16.msra.mxu1 %v11327_v43  ;;  %v7940_v39 = vld [vmem:[#allocation11 + $0x10] sm:$0xfc]  ;;  %v7952_v43 = vpack.c.bf16 %v7944_v33, %v7944_v33 }
0x1122   : > { %9954 = vmatprep.subr.bf16.mxu0 %v11328_v45  ;;  %9976 = vmatprep.subr.bf16.mxu1 %v11329_v46  ;;  %v7946_v45 = vpack.c.bf16 %v12863_v40, %v7938_v42  ;;  %v11359_v46 = vld [vmem:[#allocation12 + $0x580] sm:$0xff]   ;;  %v7948_v63 = vpack.c.bf16 %v12866_v9, %v7940_v39 }
0x1123   : > { %v8034_v1 = vrot.slane %v7952_v43, 1 }
0x1124   : > { %7889 = vmatmul.mubr.bf16.vlgmr.msra.gmra.mxu0 %v7188_v5  ;;  %7930 = vmatmul.mubr.bf16.vlgmr.msra.gmra.mxu1 %v7190_v50  ;;  %v8027_v0 = vrot.slane %v7946_v45, 1  ;;  %v8033_v41 = vrot.slane %v7948_v63, 1 }
0x1125   : > { %9955 = vmatpush3.bf16.msra.mxu0 %v11330_v48  ;;  %8267 = vmatprep.mubr.bf16.mxu0 %v8032_v13 }
0x1126   : > { %9977 = vmatpush3.bf16.msra.mxu1 %v11331_v51  ;;  %8308 = vmatprep.mubr.bf16.mxu1 %v8038_v57  ;;  %v8029_v48 = vsel %vm1642_vm3, %v8027_v0, %v8028_v47  ;;  %v8035_v49 = vsel %vm1642_vm3, %v8033_v41, %v8034_v1 }
0x1127   : > { %9956 = vmatprep.subr.bf16.mxu0 %v11332_v53  ;;  %9978 = vmatprep.subr.bf16.mxu1 %v11333_v58 }
0x1129   : > { %v9860_v34 = vpop.f32.mrf.mxu1  ;;  %9957 = vmatpush3.bf16.msra.mxu0 %v11334_v8 }
0x112a   : > { %9979 = vmatpush3.bf16.msra.mxu1 %v11335_v54  ;;  %9958 = vmatprep.subr.bf16.mxu0 %v11336_v55 }
0x112b   : > { %v9861_v12 = vpop.f32.mrf.mxu1  ;;  %9980 = vmatprep.subr.bf16.mxu1 %v11337_v56 }
0x112c   : > { %v9862_v60 = vadd.f32 %v9861_v12, %v9860_v34 }
0x112d   : > { %v9863_v20 = vpop.f32.mrf.mxu1  ;;  %9959 = vmatpush3.bf16.msra.mxu0 %v11338_v3 }
0x112e   : > { %v7174_v16 = vadd.f32 %v9862_v60, %v6988_v18  ;;  %9981 = vmatpush3.bf16.msra.mxu1 %v11339_v7  ;;  %9960 = vmatprep.subr.bf16.mxu0 %v11340_v10 }
0x112f   : > { %v9864_v22 = vpop.f32.mrf.mxu1  ;;  %9982 = vmatprep.subr.bf16.mxu1 %v11341_v14 }
0x1130   : > { %v7176_v24 = vmul.f32 %v7175_v19, %v7174_v16 }
0x1131   : > { %9961 = vmatpush3.bf16.msra.mxu0 %v11342_v4 }
0x1132   : > { %v7178_v25 = vadd.f32 %v7177_v21, %v7176_v24  ;;  %9983 = vmatpush3.bf16.msra.mxu1 %v11343_v11  ;;  %9962 = vmatprep.subr.bf16.mxu0 %v11344_v17 }
0x1133   : > { %9984 = vmatprep.subr.bf16.mxu1 %v11345_v23 }
0x1134   : > { %7179 = vst [vmem:[%s723_s26] sm:$0xff] %v7178_v25 }
0x1135   : > { %9963 = vmatpush3.bf16.msra.mxu0 %v11346_v15 }
0x1136   : > { %9985 = vmatpush3.bf16.msra.mxu1 %v11347_v59  ;;  %9964 = vmatprep.subr.bf16.mxu0 %v11348_v26  ;;  %v8319_v26 = vld [vmem:[#allocation22 + $0x60] ss:$0 sm:$0xff] }
0x1137   : > { %9986 = vmatprep.subr.bf16.mxu1 %v11349_v27 }
0x1139   : > { %9965 = vmatpush3.bf16.msra.mxu0 %v11350_v28 }
0x113a   : > { %9987 = vmatpush3.bf16.msra.mxu1 %v11351_v29  ;;  %9966 = vmatprep.subr.bf16.mxu0 %v11352_v30 }
0x113b   : > { %9988 = vmatprep.subr.bf16.mxu1 %v11353_v31 }
0x113d   : > { %9967 = vmatpush3.bf16.msra.mxu0 %v11354_v2 }
0x113e   : > { %9989 = vmatpush3.bf16.msra.mxu1 %v11355_v35  ;;  %9968 = vmatprep.subr.bf16.mxu0 %v11356_v38 }
0x113f   : > { %9990 = vmatprep.subr.bf16.mxu1 %v11357_v44 }
0x1141   : > { %9969 = vmatpush3.bf16.msra.mxu0 %v11358_v37 }
0x1142   : > { %9991 = vmatpush3.bf16.msra.mxu1 %v11359_v46 }
0x1144   : > { %8268 = vmatmul.mubr.bf16.vlgmr.msra.gmra.mxu0 %v8029_v48 }
0x1145   : > { %8309 = vmatmul.mubr.bf16.vlgmr.msra.gmra.mxu1 %v8035_v49 }
0x11c4   : > { %v9882_v5 = vpop.f32.mrf.mxu0  ;;  %v9904_v40 = vpop.f32.mrf.mxu1 }
0x11c6   : > { %v9883_v50 = vpop.f32.mrf.mxu0  ;;  %v9905_v6 = vpop.f32.mrf.mxu1 }
0x11c7   : > { %v9884_v56 = vadd.f32 %v9883_v50, %v9882_v5  ;;  %v9906_v61 = vadd.f32 %v9905_v6, %v9904_v40 }
0x11c8   : > { %v9885_v51 = vpop.f32.mrf.mxu0  ;;  %v9907_v52 = vpop.f32.mrf.mxu1 }
0x11c9   : > { %v7658_v7 = vadd.f32 %v9906_v61, %v9884_v56 }
0x11ca   : > { %v9886_v9 = vpop.f32.mrf.mxu0  ;;  %v9908_v53 = vpop.f32.mrf.mxu1 }
0x11cb   : > { %v9887_v10 = vadd.f32 %v9886_v9, %v9885_v51  ;;  %v9909_v12 = vadd.f32 %v9908_v53, %v9907_v52 }
0x11cd   : > { %v7661_v11 = vadd.f32 %v9909_v12, %v9887_v10 }
0x11e4   : > { %v9926_v58 = vpop.f32.mrf.mxu0  ;;  %v9948_v13 = vpop.f32.mrf.mxu1 }
0x11e6   : > { %v9927_v57 = vpop.f32.mrf.mxu0  ;;  %v9949_v8 = vpop.f32.mrf.mxu1 }
0x11e7   : > { %v9928_v62 = vadd.f32 %v9927_v57, %v9926_v58  ;;  %v9950_v17 = vadd.f32 %v9949_v8, %v9948_v13 }
0x11e8   : > { %v9929_v54 = vpop.f32.mrf.mxu0  ;;  %v9951_v55 = vpop.f32.mrf.mxu1 }
0x11e9   : > { %v7891_v60 = vadd.f32 %v9928_v62, %v7658_v7 }
0x11ea   : > { %v9930_v34 = vpop.f32.mrf.mxu0  ;;  %v9952_v3 = vpop.f32.mrf.mxu1 }
0x11eb   : > { %v9931_v19 = vadd.f32 %v9930_v34, %v9929_v54  ;;  %v7932_v24 = vadd.f32 %v9950_v17, %v7891_v60  ;;  %v9953_v29 = vadd.f32 %v9952_v3, %v9951_v55 }
0x11ed   : > { %v7894_v15 = vadd.f32 %v9931_v19, %v7661_v11 }
0x11ef   : > { %v7935_v2 = vadd.f32 %v9953_v29, %v7894_v15 }
0x1204   : > { %v9970_v14 = vpop.f32.mrf.mxu0 }
0x1205   : > { %v9992_v18 = vpop.f32.mrf.mxu1 }
0x1206   : > { %v9971_v20 = vpop.f32.mrf.mxu0 }
0x1207   : > { %v9972_v4 = vadd.f32 %v9971_v20, %v9970_v14  ;;  %v9993_v16 = vpop.f32.mrf.mxu1 }
0x1208   : > { %v9994_v21 = vadd.f32 %v9993_v16, %v9992_v18  ;;  %v9973_v22 = vpop.f32.mrf.mxu0 }
0x1209   : > { %v9995_v23 = vpop.f32.mrf.mxu1 }
0x120a   : > { %v8311_v25 = vadd.f32 %v9994_v21, %v9972_v4  ;;  %v9974_v59 = vpop.f32.mrf.mxu0 }
0x120b   : > { %v9975_v27 = vadd.f32 %v9974_v59, %v9973_v22  ;;  %v9996_v28 = vpop.f32.mrf.mxu1 }
0x120c   : > { %v8317_v30 = vadd.f32 %v8311_v25, %v7932_v24  ;;  %v9997_v31 = vadd.f32 %v9996_v28, %v9995_v23 }
0x120e   : > { %v8320_v33 = vmul.f32 %v8319_v26, %v8317_v30  ;;  %v8314_v35 = vadd.f32 %v9997_v31, %v9975_v27 }
0x1210   : > { %v8323_v38 = vadd.f32 %v8322_v32, %v8320_v33  ;;  %v8318_v42 = vadd.f32 %v8314_v35, %v7935_v2 }
0x1212   : > { %8325 = vst [vmem:[%s719_s20] sm:$0xff] %v8323_v38  ;;  %v8321_v44 = vmul.f32 %v8319_v26, %v8318_v42 }
0x1214   : > { %v8324_v36 = vadd.f32 %v8322_v32, %v8321_v44 }
0x1216   : > { %8326 = vst [vmem:[%s719_s20 + $0x8] sm:$0xff] %v8324_v36 }
0x1217 PF: > { %s34_s24 = sadd.s32 1, %s11676_s24  }
0x1218   : > { %p31_p3 = scmp.ge.s32.totalorder %s34_s24, 4  }
0x121a   :  { %33 = sbr.rel (!%p31_p3) target bundleno = 10 (0xa), region = 224 }
0x121f   :  { %8376 = vsyncpa [#allocation13], 1 }
0x1220   :  { %8378 = vsyncpa [#allocation13 + $0x1], 1 }
0x1221   :  { %8379 = vsyncpa [#allocation15], 1 }
0x1222   :  { %8380 = vsyncpa [#allocation18], 1 }
0x1223   :  { %8381 = vsyncpa [#allocation21], 1 }
0x1224   :  { %8382 = vsyncpa [#allocation24], 1 }
0x1225   :  { %8383 = vsyncpa [#allocation27], 1 }

</bundles_post_ra>
